<compile_context>
chip_gen: v7x
topology: tpu7x:2x2x1
jax: 0.10.0
libtpu: 0.0.40
codegen_flags: <defaults>
</compile_context>

<pallas_src>
import functools

import jax
import jax.numpy as jnp
import numpy as np
from jax.experimental import pallas as pl
from jax.experimental.pallas import tpu as pltpu

EPS = 1e-5
VMEM_SPEC = pl.BlockSpec(memory_space=pltpu.MemorySpace.VMEM)


def _vmem_limit_bytes():
    # 128 MiB physical on v5e/v6e, 64 MiB per core on v7x: budget 3/4 of what
    # we find, capped at 96 MiB (48 MiB fallback if the query is unavailable).
    try:
        cap = pltpu.get_tpu_info().vmem_capacity_bytes
        return int(min(96 * 1024 * 1024, cap * 3 // 4))
    except Exception:
        return 48 * 1024 * 1024


_VMEM_LIMIT = _vmem_limit_bytes()


# --------------------------- lane-shift primitive --------------------------- #
# The conv taps need out[..., p] = v[..., p + s] (wrapped lanes get masked by
# the caller).  pltpu.roll is the cheap XLU rotation; its rotation convention
# is verified once by a tiny probe kernel so correctness never depends on it,
# with a jnp.roll (slice+concat) fallback if the primitive is unavailable.

_LANE_ROLL_SIGN = 0  # 0 -> jnp.roll fallback; +1 / -1 -> pltpu.roll convention


def _roll_probe_kernel(x_ref, o_ref):
    o_ref[...] = pltpu.roll(x_ref[...], shift=1, axis=1)


def _init_lane_roll():
    """Probe pltpu.roll's convention.  Must run OUTSIDE jit (reads values)."""
    global _LANE_ROLL_SIGN
    try:
        base = np.arange(128, dtype=np.float32)
        out = pl.pallas_call(
            _roll_probe_kernel,
            out_shape=jax.ShapeDtypeStruct((1, 128), jnp.float32),
        )(jnp.asarray(base).reshape(1, 128))
        got = np.asarray(jax.block_until_ready(out))[0]
        if np.array_equal(got, np.roll(base, 1)):      # same as jnp.roll
            _LANE_ROLL_SIGN = 1
        elif np.array_equal(got, np.roll(base, -1)):   # opposite convention
            _LANE_ROLL_SIGN = -1
        else:
            _LANE_ROLL_SIGN = 0
    except Exception:
        _LANE_ROLL_SIGN = 0


def _shift_lanes(v, s):
    """out[..., p] = v[..., (p + s) % L]  (circular; caller masks wrapped lanes)."""
    if s == 0:
        return v
    length = v.shape[-1]
    if _LANE_ROLL_SIGN == 0:
        return jnp.roll(v, -s, axis=-1)
    amount = (_LANE_ROLL_SIGN * (-s)) % length
    return pltpu.roll(v, shift=amount, axis=v.ndim - 1)


# ----------------------------- Pallas kernels ------------------------------ #

def _conv3x3_cbn_kernel(pos_ref, x_ref, *rest, H, W, fuse_input_affine):
    """3x3 conv (stride 1, pad 1, no bias) on one image, taps built in-kernel.

    pos_ref : (2, P_pad) int32   [row idx; col idx]  (sentinels on padded lanes)
    x_ref   : (1, Cin, P_pad)    f32 raw input (conv1) or bf16 feature (conv2)
    scale/shift (fused only): (1, Cin, 1) f32 -> previous CBN affine + ReLU is
        applied to the input on the fly (bn1 fused into conv2).
    w_ref   : (9, Cout, Cin) bf16, tap-major (ky, kx)
    o_ref   : (1, Cout, P_pad) bf16
    psum/psq: (1, 1, P_pad) f32 per-image channel-reduced sum / sum-of-squares
              taken from the f32 accumulator (CBN whole-tensor stats).
    """
    if fuse_input_affine:
        scale_ref, shift_ref, w_ref, o_ref, psum_ref, psq_ref = rest
    else:
        w_ref, o_ref, psum_ref, psq_ref = rest

    xin = x_ref[0].astype(jnp.float32)                       # (Cin, P_pad)
    if fuse_input_affine:
        xin = jnp.maximum(xin * scale_ref[0] + shift_ref[0], 0.0)

    pos = pos_ref[...]
    py = pos[0:1, :]                                         # (1, P_pad)
    px = pos[1:2, :]

    cout = w_ref.shape[1]
    p_pad = xin.shape[-1]
    acc = jnp.zeros((cout, p_pad), jnp.float32)
    for t in range(9):
        dy = t // 3 - 1
        dx = t % 3 - 1
        shifted = _shift_lanes(xin, dy * W + dx)
        mask = ((py + dy >= 0) & (py + dy < H) &
                (px + dx >= 0) & (px + dx < W))
        tap = jnp.where(mask, shifted, 0.0).astype(jnp.bfloat16)
        acc = acc + jnp.dot(w_ref[t], tap, preferred_element_type=jnp.float32)

    o_ref[0] = acc.astype(jnp.bfloat16)
    psum_ref[0] = jnp.sum(acc, axis=0, keepdims=True)
    psq_ref[0] = jnp.sum(acc * acc, axis=0, keepdims=True)


def _cbn_scale_shift_kernel(emb_ref, gw1, gb1, gw2, gb2, bw1, bb1, bw2, bb2,
                            gammas_ref, betas_ref, psum_ref, psq_ref,
                            scale_ref, shift_ref, *, count, eps):
    """fc_gamma + fc_beta MLPs fused with the whole-tensor mean/var finalize:
    emits per-(n, c) scale = gamma * rstd and shift = beta - mean * scale."""
    e = emb_ref[...]
    hg = jnp.maximum(
        jnp.dot(e, gw1[...], preferred_element_type=jnp.float32) + gb1[...], 0.0)
    dg = jnp.dot(hg.astype(jnp.bfloat16), gw2[...],
                 preferred_element_type=jnp.float32) + gb2[...]
    hb = jnp.maximum(
        jnp.dot(e, bw1[...], preferred_element_type=jnp.float32) + bb1[...], 0.0)
    db = jnp.dot(hb.astype(jnp.bfloat16), bw2[...],
                 preferred_element_type=jnp.float32) + bb2[...]
    gamma = gammas_ref[...] + dg
    beta = betas_ref[...] + db

    s = jnp.sum(psum_ref[...])
    ss = jnp.sum(psq_ref[...])
    mean = s / count
    var = (ss - count * mean * mean) / (count - 1.0)          # torch.var (n-1)
    rstd = jax.lax.rsqrt(var + eps)
    scale = gamma * rstd
    scale_ref[...] = scale
    shift_ref[...] = beta - mean * scale


def _affine_residual_relu_kernel(f_ref, scale_ref, shift_ref, res_ref, o_ref):
    # out = relu(scale * feat + shift + residual), lane-dense f32 store.
    out = f_ref[0].astype(jnp.float32) * scale_ref[0] + shift_ref[0] + res_ref[0]
    o_ref[0] = jnp.maximum(out, 0.0)


# --------------------------- pallas_call wrappers --------------------------- #

def _make_pos(H, W, P_pad):
    """Row / col index per flattened spatial lane; padded lanes get sentinels so
    every tap mask rejects them (keeps the conv output & stats clean)."""
    p = np.arange(P_pad)
    py = np.where(p < H * W, p // W, H + 1)
    px = np.where(p < H * W, p % W, W + 1)
    return jnp.asarray(np.stack([py, px]).astype(np.int32))


def conv3x3_cbn_pallas(x_ncp, w_oihw, pos, H, W,
                       input_scale=None, input_shift=None):
    """Returns (feat (N,Cout,P_pad) bf16, psum (N,1,P_pad) f32, psq (N,1,P_pad) f32).
    If input_scale/shift are given, relu(scale*x + shift) is applied to the
    input inside the kernel (previous CBN fused into this conv)."""
    N, Cin, P_pad = x_ncp.shape
    Cout = w_oihw.shape[0]
    w9 = jnp.transpose(w_oihw, (2, 3, 0, 1)).reshape(9, Cout, Cin).astype(jnp.bfloat16)
    fuse = input_scale is not None
    kern = functools.partial(_conv3x3_cbn_kernel, H=H, W=W, fuse_input_affine=fuse)

    in_specs = [
        pl.BlockSpec((2, P_pad), lambda n: (0, 0)),             # pos (constant)
        pl.BlockSpec((1, Cin, P_pad), lambda n: (n, 0, 0)),     # x / feat
    ]
    args = [pos, x_ncp]
    if fuse:
        in_specs += [pl.BlockSpec((1, Cin, 1), lambda n: (n, 0, 0))] * 2
        args += [input_scale.reshape(N, Cin, 1), input_shift.reshape(N, Cin, 1)]
    in_specs += [pl.BlockSpec((9, Cout, Cin), lambda n: (0, 0, 0))]
    args += [w9]

    feat, psum, psq = pl.pallas_call(
        kern,
        grid=(N,),
        in_specs=in_specs,
        out_specs=(
            pl.BlockSpec((1, Cout, P_pad), lambda n: (n, 0, 0)),
            pl.BlockSpec((1, 1, P_pad), lambda n: (n, 0, 0)),
            pl.BlockSpec((1, 1, P_pad), lambda n: (n, 0, 0)),
        ),
        out_shape=(
            jax.ShapeDtypeStruct((N, Cout, P_pad), jnp.bfloat16),
            jax.ShapeDtypeStruct((N, 1, P_pad), jnp.float32),
            jax.ShapeDtypeStruct((N, 1, P_pad), jnp.float32),
        ),
        compiler_params=pltpu.CompilerParams(
            dimension_semantics=("parallel",),
            vmem_limit_bytes=_VMEM_LIMIT),
    )(*args)
    return feat, psum, psq


def cbn_scale_shift_pallas(lstm_emb, p, psum, psq, count):
    """One tiny launch: gamma/beta MLPs + mean/var finalize -> (scale, shift) (N, C)."""
    N = lstm_emb.shape[0]
    C = p['fcg_w2'].shape[1]
    bf = lambda a: a.astype(jnp.bfloat16)
    kern = functools.partial(_cbn_scale_shift_kernel, count=float(count), eps=EPS)
    scale, shift = pl.pallas_call(
        kern,
        out_shape=(jax.ShapeDtypeStruct((N, C), jnp.float32),
                   jax.ShapeDtypeStruct((N, C), jnp.float32)),
        in_specs=[VMEM_SPEC] * 13,
        out_specs=(VMEM_SPEC, VMEM_SPEC),
    )(bf(lstm_emb),
      bf(p['fcg_w1']), p['fcg_b1'], bf(p['fcg_w2']), p['fcg_b2'],
      bf(p['fcb_w1']), p['fcb_b1'], bf(p['fcb_w2']), p['fcb_b2'],
      p['gammas'], p['betas'], psum, psq)
    return scale, shift


def _spatial_tile(P_pad, pref=2048):
    t = min(P_pad, pref)
    while P_pad % t:
        t -= 128
    return max(t, 128)


def affine_residual_relu_pallas(feat, scale, shift, residual):
    """out = relu(scale * feat + shift + residual), f32, lane-dense tiles."""
    N, C, P_pad = feat.shape
    tile = _spatial_tile(P_pad)
    return pl.pallas_call(
        _affine_residual_relu_kernel,
        grid=(N, P_pad // tile),
        in_specs=[
            pl.BlockSpec((1, C, tile), lambda n, p: (n, 0, p)),
            pl.BlockSpec((1, C, 1), lambda n, p: (n, 0, 0)),
            pl.BlockSpec((1, C, 1), lambda n, p: (n, 0, 0)),
            pl.BlockSpec((1, C, tile), lambda n, p: (n, 0, p)),
        ],
        out_specs=pl.BlockSpec((1, C, tile), lambda n, p: (n, 0, p)),
        out_shape=jax.ShapeDtypeStruct((N, C, P_pad), jnp.float32),
        compiler_params=pltpu.CompilerParams(
            dimension_semantics=("parallel", "parallel"),
            vmem_limit_bytes=_VMEM_LIMIT),
    )(feat, scale.reshape(N, C, 1), shift.reshape(N, C, 1), residual)


# ------------------------------ BasicBlock ---------------------------------- #

def init_params(key, inplanes, planes, lstm_size, emb_size, batch):
    ks = jax.random.split(key, 10)

    def xavier(k, fan_in, fan_out):
        a = (6.0 / (fan_in + fan_out)) ** 0.5
        return jax.random.uniform(k, (fan_in, fan_out), jnp.float32, -a, a)

    def cbn_params(k):
        kk = jax.random.split(k, 4)
        return dict(
            fcg_w1=xavier(kk[0], lstm_size, emb_size),
            fcg_b1=jnp.full((1, emb_size), 0.1, jnp.float32),
            fcg_w2=xavier(kk[1], emb_size, planes),
            fcg_b2=jnp.full((1, planes), 0.1, jnp.float32),
            fcb_w1=xavier(kk[2], lstm_size, emb_size),
            fcb_b1=jnp.full((1, emb_size), 0.1, jnp.float32),
            fcb_w2=xavier(kk[3], emb_size, planes),
            fcb_b2=jnp.full((1, planes), 0.1, jnp.float32),
            betas=jnp.zeros((batch, planes), jnp.float32),   # nn.Parameter zeros
            gammas=jnp.ones((batch, planes), jnp.float32),   # nn.Parameter ones
        )

    return dict(
        conv1_w=jax.random.normal(ks[0], (planes, inplanes, 3, 3), jnp.float32) * 0.1,
        conv2_w=jax.random.normal(ks[1], (planes, planes, 3, 3), jnp.float32) * 0.1,
        bn1=cbn_params(ks[2]),
        bn2=cbn_params(ks[3]),
    )


def basic_block_forward(params, x_nchw, lstm_emb):
    """BasicBlock.forward (stride=1, downsample=None). Returns (out_nchw, lstm_emb)."""
    N, C, H, W = x_nchw.shape
    P = H * W
    P_pad = ((P + 127) // 128) * 128
    x_flat = x_nchw.reshape(N, C, P).astype(jnp.float32)
    if P_pad != P:
        x_flat = jnp.pad(x_flat, ((0, 0), (0, 0), (0, P_pad - P)))
    pos = _make_pos(H, W, P_pad)

    # conv1 (raw conv + per-image partial stats from the f32 accumulator)
    feat1, s1, q1 = conv3x3_cbn_pallas(x_flat, params['conv1_w'], pos, H, W)
    scale1, shift1 = cbn_scale_shift_pallas(
        lstm_emb, params['bn1'], s1, q1, count=N * feat1.shape[1] * P)

    # conv2 with bn1's normalize + ReLU fused into its patch construction
    feat2, s2, q2 = conv3x3_cbn_pallas(feat1, params['conv2_w'], pos, H, W,
                                       input_scale=scale1, input_shift=shift1)
    scale2, shift2 = cbn_scale_shift_pallas(
        lstm_emb, params['bn2'], s2, q2, count=N * feat2.shape[1] * P)

    out = affine_residual_relu_pallas(feat2, scale2, shift2, x_flat)
    if P_pad != P:
        out = out[:, :, :P]
    return out.reshape(N, -1, H, W), lstm_emb


# ------------------------- precision-matched reference ---------------------- #
# Independent XLA reference mirroring the module's math.  It matches the
# kernel's precision decisions (bf16 MXU operands; features stored as bf16;
# stats taken from the f32 conv output) so the comparison isolates structure.

def _conv_ref(x_nchw, w_oihw):
    return jax.lax.conv_general_dilated(
        x_nchw.astype(jnp.bfloat16), w_oihw.astype(jnp.bfloat16),
        (1, 1), ((1, 1), (1, 1)),
        dimension_numbers=('NCHW', 'OIHW', 'NCHW'),
        preferred_element_type=jnp.float32)


def _mlp_ref(emb, w1, b1, w2, b2):
    h = jnp.maximum(jnp.dot(emb.astype(jnp.bfloat16), w1.astype(jnp.bfloat16),
                            preferred_element_type=jnp.float32) + b1, 0.0)
    return jnp.dot(h.astype(jnp.bfloat16), w2.astype(jnp.bfloat16),
                   preferred_element_type=jnp.float32) + b2


def _cbn_ref(feat_f32, feat_store, lstm_emb, p, eps=EPS):
    dg = _mlp_ref(lstm_emb, p['fcg_w1'], p['fcg_b1'], p['fcg_w2'], p['fcg_b2'])
    db = _mlp_ref(lstm_emb, p['fcb_w1'], p['fcb_b1'], p['fcb_w2'], p['fcb_b2'])
    gamma = (p['gammas'] + dg)[:, :, None, None]
    beta = (p['betas'] + db)[:, :, None, None]
    mean = jnp.mean(feat_f32)                                     # torch.mean
    var = jnp.sum((feat_f32 - mean) ** 2) / (feat_f32.size - 1)   # torch.var
    norm = (feat_store.astype(jnp.float32) - mean) / jnp.sqrt(var + eps)
    return norm * gamma + beta


def basic_block_ref(params, x_nchw, lstm_emb):
    f1 = _conv_ref(x_nchw, params['conv1_w'])
    f1_store = f1.astype(jnp.bfloat16)          # kernel stores features as bf16
    h1 = jnp.maximum(_cbn_ref(f1, f1_store, lstm_emb, params['bn1']), 0.0)
    f2 = _conv_ref(h1, params['conv2_w'])
    f2_store = f2.astype(jnp.bfloat16)
    o = _cbn_ref(f2, f2_store, lstm_emb, params['bn2'])
    return jnp.maximum(o + x_nchw, 0.0)


# ----------------------------------- main ----------------------------------- #

if __name__ == "__main__":
    _init_lane_roll()                    # probe pltpu.roll (outside jit)

    N, C, H, W = 2, 4, 16, 16            # inplanes == planes == 4, stride = 1
    LSTM, EMB = 8, 32

    key = jax.random.PRNGKey(0)
    kx, ke, kp = jax.random.split(key, 3)
    x = jax.random.normal(kx, (N, C, H, W), jnp.float32)
    lstm_emb = jax.random.normal(ke, (N, LSTM), jnp.float32)
    params = init_params(kp, C, C, LSTM, EMB, N)

    fwd = jax.jit(basic_block_forward)
    out, _ = fwd(params, x, lstm_emb)
    out = jax.block_until_ready(out)

    ref = jax.block_until_ready(basic_block_ref(params, x, lstm_emb))
    assert out.shape == (N, C, H, W)
    err = float(jnp.max(jnp.abs(out - ref)))
    # Tolerance covers bf16 feature storage (rounding-flip propagation through
    # the second conv) against an independent XLA reference; structural bugs
    # (wrong tap/mask/roll) would show up at O(0.1) or more.
    assert err < 2e-2, f"mismatch vs reference: {err}"

    print("KERNEL_OK")
</pallas_src>

<mosaic_0001>
module attributes {stable_mosaic.version = 11 : i64} {
  func.func @_roll_probe_kernel(%arg0: memref<1x128xf32, #tpu.memory_space<vmem>>, %arg1: memref<1x128xf32, #tpu.memory_space<vmem>>) attributes {dimension_semantics = [], scalar_prefetch = 0 : i64, scratch_operands = 0 : i64, tpu.core_type = #tpu.core_type<tc>} {
    %c0 = arith.constant 0 : index
    %c0_0 = arith.constant 0 : index
    %0 = vector.load %arg0[%c0, %c0_0] : memref<1x128xf32, #tpu.memory_space<vmem>>, vector<1x128xf32>
    %c1_i32 = arith.constant 1 : i32
    %1 = tpu.dynamic_rotate %0 by %c1_i32 dim 1 : vector<1x128xf32>, i32 -> vector<1x128xf32>
    %c0_1 = arith.constant 0 : index
    %c0_2 = arith.constant 0 : index
    %2 = vector.load %arg1[%c0_1, %c0_2] : memref<1x128xf32, #tpu.memory_space<vmem>>, vector<1x128xf32>
    tpu.vector_store %arg1[%c0_1, %c0_2], %1 {strides = array<i32>} : memref<1x128xf32, #tpu.memory_space<vmem>>, vector<1x128xf32>,
    return
  }
}

module attributes {stable_mosaic.version = 11 : i64} {
  func.func @_cbn_scale_shift_kernel(%arg0: memref<2x8xbf16, #tpu.memory_space<vmem>>, %arg1: memref<8x32xbf16, #tpu.memory_space<vmem>>, %arg2: memref<1x32xf32, #tpu.memory_space<vmem>>, %arg3: memref<32x4xbf16, #tpu.memory_space<vmem>>, %arg4: memref<1x4xf32, #tpu.memory_space<vmem>>, %arg5: memref<8x32xbf16, #tpu.memory_space<vmem>>, %arg6: memref<1x32xf32, #tpu.memory_space<vmem>>, %arg7: memref<32x4xbf16, #tpu.memory_space<vmem>>, %arg8: memref<1x4xf32, #tpu.memory_space<vmem>>, %arg9: memref<2x4xf32, #tpu.memory_space<vmem>>, %arg10: memref<2x4xf32, #tpu.memory_space<vmem>>, %arg11: memref<2x1x256xf32, #tpu.memory_space<vmem>>, %arg12: memref<2x1x256xf32, #tpu.memory_space<vmem>>, %arg13: memref<2x4xf32, #tpu.memory_space<vmem>>, %arg14: memref<2x4xf32, #tpu.memory_space<vmem>>) attributes {dimension_semantics = [], scalar_prefetch = 0 : i64, scratch_operands = 0 : i64, tpu.core_type = #tpu.core_type<tc>} {
    %c0 = arith.constant 0 : index
    %c0_0 = arith.constant 0 : index
    %0 = vector.load %arg0[%c0, %c0_0] : memref<2x8xbf16, #tpu.memory_space<vmem>>, vector<2x8xbf16>
    %c0_1 = arith.constant 0 : index
    %c0_2 = arith.constant 0 : index
    %1 = vector.load %arg1[%c0_1, %c0_2] : memref<8x32xbf16, #tpu.memory_space<vmem>>, vector<8x32xbf16>
    %cst = arith.constant dense<0.000000e+00> : vector<2x32xf32>
    %2 = tpu.matmul %0, %1, %cst {dimension_numbers = #tpu.dot_dimension_numbers<[1], [0], [0], [1], [0, 0, 1, 1], [], []>} : vector<2x8xbf16>, vector<8x32xbf16>, vector<2x32xf32> -> vector<2x32xf32>
    %c0_3 = arith.constant 0 : index
    %c0_4 = arith.constant 0 : index
    %3 = vector.load %arg2[%c0_3, %c0_4] : memref<1x32xf32, #tpu.memory_space<vmem>>, vector<1x32xf32>
    %4 = vector.broadcast %3 : vector<1x32xf32> to vector<2x32xf32>
    %5 = arith.addf %2, %4 : vector<2x32xf32>
    %cst_5 = arith.constant 0.000000e+00 : f32
    %6 = vector.broadcast %cst_5 : f32 to vector<2x32xf32>
    %7 = arith.maximumf %5, %6 : vector<2x32xf32>
    %8 = arith.truncf %7 : vector<2x32xf32> to vector<2x32xbf16>
    %c0_6 = arith.constant 0 : index
    %c0_7 = arith.constant 0 : index
    %9 = vector.load %arg3[%c0_6, %c0_7] : memref<32x4xbf16, #tpu.memory_space<vmem>>, vector<32x4xbf16>
    %cst_8 = arith.constant dense<0.000000e+00> : vector<2x4xf32>
    %10 = tpu.matmul %8, %9, %cst_8 {dimension_numbers = #tpu.dot_dimension_numbers<[1], [0], [0], [1], [0, 0, 1, 1], [], []>} : vector<2x32xbf16>, vector<32x4xbf16>, vector<2x4xf32> -> vector<2x4xf32>
    %c0_9 = arith.constant 0 : index
    %c0_10 = arith.constant 0 : index
    %11 = vector.load %arg4[%c0_9, %c0_10] : memref<1x4xf32, #tpu.memory_space<vmem>>, vector<1x4xf32>
    %12 = vector.broadcast %11 : vector<1x4xf32> to vector<2x4xf32>
    %13 = arith.addf %10, %12 : vector<2x4xf32>
    %c0_11 = arith.constant 0 : index
    %c0_12 = arith.constant 0 : index
    %14 = vector.load %arg5[%c0_11, %c0_12] : memref<8x32xbf16, #tpu.memory_space<vmem>>, vector<8x32xbf16>
    %cst_13 = arith.constant dense<0.000000e+00> : vector<2x32xf32>
    %15 = tpu.matmul %0, %14, %cst_13 {dimension_numbers = #tpu.dot_dimension_numbers<[1], [0], [0], [1], [0, 0, 1, 1], [], []>} : vector<2x8xbf16>, vector<8x32xbf16>, vector<2x32xf32> -> vector<2x32xf32>
    %c0_14 = arith.constant 0 : index
    %c0_15 = arith.constant 0 : index
    %16 = vector.load %arg6[%c0_14, %c0_15] : memref<1x32xf32, #tpu.memory_space<vmem>>, vector<1x32xf32>
    %17 = vector.broadcast %16 : vector<1x32xf32> to vector<2x32xf32>
    %18 = arith.addf %15, %17 : vector<2x32xf32>
    %cst_16 = arith.constant 0.000000e+00 : f32
    %19 = vector.broadcast %cst_16 : f32 to vector<2x32xf32>
    %20 = arith.maximumf %18, %19 : vector<2x32xf32>
    %21 = arith.truncf %20 : vector<2x32xf32> to vector<2x32xbf16>
    %c0_17 = arith.constant 0 : index
    %c0_18 = arith.constant 0 : index
    %22 = vector.load %arg7[%c0_17, %c0_18] : memref<32x4xbf16, #tpu.memory_space<vmem>>, vector<32x4xbf16>
    %cst_19 = arith.constant dense<0.000000e+00> : vector<2x4xf32>
    %23 = tpu.matmul %21, %22, %cst_19 {dimension_numbers = #tpu.dot_dimension_numbers<[1], [0], [0], [1], [0, 0, 1, 1], [], []>} : vector<2x32xbf16>, vector<32x4xbf16>, vector<2x4xf32> -> vector<2x4xf32>
    %c0_20 = arith.constant 0 : index
    %c0_21 = arith.constant 0 : index
    %24 = vector.load %arg8[%c0_20, %c0_21] : memref<1x4xf32, #tpu.memory_space<vmem>>, vector<1x4xf32>
    %25 = vector.broadcast %24 : vector<1x4xf32> to vector<2x4xf32>
    %26 = arith.addf %23, %25 : vector<2x4xf32>
    %c0_22 = arith.constant 0 : index
    %c0_23 = arith.constant 0 : index
    %27 = vector.load %arg9[%c0_22, %c0_23] : memref<2x4xf32, #tpu.memory_space<vmem>>, vector<2x4xf32>
    %28 = arith.addf %27, %13 : vector<2x4xf32>
    %c0_24 = arith.constant 0 : index
    %c0_25 = arith.constant 0 : index
    %29 = vector.load %arg10[%c0_24, %c0_25] : memref<2x4xf32, #tpu.memory_space<vmem>>, vector<2x4xf32>
    %30 = arith.addf %29, %26 : vector<2x4xf32>
    %c0_26 = arith.constant 0 : index
    %c0_27 = arith.constant 0 : index
    %c0_28 = arith.constant 0 : index
    %31 = vector.load %arg11[%c0_26, %c0_27, %c0_28] : memref<2x1x256xf32, #tpu.memory_space<vmem>>, vector<2x1x256xf32>
    %32 = vector.shape_cast %31 : vector<2x1x256xf32> to vector<1x2x1x256xf32>
    %cst_29 = arith.constant dense<0.000000e+00> : vector<1xf32>
    %33 = vector.multi_reduction <add>, %32, %cst_29 [1, 2, 3] : vector<1x2x1x256xf32> to vector<1xf32>
    %34 = vector.shape_cast %33 : vector<1xf32> to vector<1x1x1x1xf32>
    %35 = vector.extract %34[0, 0, 0, 0] : f32 from vector<1x1x1x1xf32>
    %c0_30 = arith.constant 0 : index
    %c0_31 = arith.constant 0 : index
    %c0_32 = arith.constant 0 : index
    %36 = vector.load %arg12[%c0_30, %c0_31, %c0_32] : memref<2x1x256xf32, #tpu.memory_space<vmem>>, vector<2x1x256xf32>
    %37 = vector.shape_cast %36 : vector<2x1x256xf32> to vector<1x2x1x256xf32>
    %cst_33 = arith.constant dense<0.000000e+00> : vector<1xf32>
    %38 = vector.multi_reduction <add>, %37, %cst_33 [1, 2, 3] : vector<1x2x1x256xf32> to vector<1xf32>
    %39 = vector.shape_cast %38 : vector<1xf32> to vector<1x1x1x1xf32>
    %40 = vector.extract %39[0, 0, 0, 0] : f32 from vector<1x1x1x1xf32>
    %cst_34 = arith.constant 2.048000e+03 : f32
    %41 = arith.divf %35, %cst_34 : f32
    %cst_35 = arith.constant 2.048000e+03 : f32
    %42 = arith.mulf %cst_35, %41 : f32
    %43 = arith.mulf %42, %41 : f32
    %44 = arith.subf %40, %43 : f32
    %cst_36 = arith.constant 2.047000e+03 : f32
    %45 = arith.divf %44, %cst_36 : f32
    %cst_37 = arith.constant 9.99999974E-6 : f32
    %46 = arith.addf %45, %cst_37 : f32
    %47 = math.rsqrt %46 : f32
    %48 = vector.broadcast %47 : f32 to vector<2x4xf32>
    %49 = arith.mulf %28, %48 : vector<2x4xf32>
    %c0_38 = arith.constant 0 : index
    %c0_39 = arith.constant 0 : index
    %50 = vector.load %arg13[%c0_38, %c0_39] : memref<2x4xf32, #tpu.memory_space<vmem>>, vector<2x4xf32>
    tpu.vector_store %arg13[%c0_38, %c0_39], %49 {strides = array<i32>} : memref<2x4xf32, #tpu.memory_space<vmem>>, vector<2x4xf32>,
    %51 = vector.broadcast %41 : f32 to vector<2x4xf32>
    %52 = arith.mulf %51, %49 : vector<2x4xf32>
    %53 = arith.subf %30, %52 : vector<2x4xf32>
    %c0_40 = arith.constant 0 : index
    %c0_41 = arith.constant 0 : index
    %54 = vector.load %arg14[%c0_40, %c0_41] : memref<2x4xf32, #tpu.memory_space<vmem>>, vector<2x4xf32>
    tpu.vector_store %arg14[%c0_40, %c0_41], %53 {strides = array<i32>} : memref<2x4xf32, #tpu.memory_space<vmem>>, vector<2x4xf32>,
    return
  }
}

module attributes {stable_mosaic.version = 11 : i64} {
  func.func @_conv3x3_cbn_kernel(%arg0: i32, %arg1: memref<2x256xi32, #tpu.memory_space<vmem>>, %arg2: memref<1x4x256xf32, #tpu.memory_space<vmem>>, %arg3: memref<9x4x4xbf16, #tpu.memory_space<vmem>>, %arg4: memref<1x4x256xbf16, #tpu.memory_space<vmem>>, %arg5: memref<1x1x256xf32, #tpu.memory_space<vmem>>, %arg6: memref<1x1x256xf32, #tpu.memory_space<vmem>>) attributes {dimension_semantics = [#tpu.dimension_semantics<parallel>], iteration_bounds = array<i64: 2>, scalar_prefetch = 0 : i64, scratch_operands = 0 : i64, tpu.core_type = #tpu.core_type<tc>, window_params = [{pipeline_mode = #tpu.pipeline_mode<synchronous>, transform_indices = @transform_0, window_bounds = array<i64: 2, 256>}, {transform_indices = @transform_1, window_bounds = array<i64: 1, 4, 256>}, {pipeline_mode = #tpu.pipeline_mode<synchronous>, transform_indices = @transform_2, window_bounds = array<i64: 9, 4, 4>}, {transform_indices = @transform_3, window_bounds = array<i64: 1, 4, 256>}, {transform_indices = @transform_4, window_bounds = array<i64: 1, 1, 256>}, {transform_indices = @transform_5, window_bounds = array<i64: 1, 1, 256>}]} {
    %c0 = arith.constant 0 : index
    %c0_0 = arith.constant 0 : index
    %c0_1 = arith.constant 0 : index
    %0 = vector.load %arg2[%c0, %c0_0, %c0_1] : memref<1x4x256xf32, #tpu.memory_space<vmem>>, vector<1x4x256xf32>
    %1 = vector.shape_cast %0 : vector<1x4x256xf32> to vector<4x256xf32>
    %c0_2 = arith.constant 0 : index
    %c0_3 = arith.constant 0 : index
    %2 = vector.load %arg1[%c0_2, %c0_3] : memref<2x256xi32, #tpu.memory_space<vmem>>, vector<2x256xi32>
    %3 = vector.extract_strided_slice %2 {offsets = [0, 0], sizes = [1, 256], strides = [1, 1]} : vector<2x256xi32> to vector<1x256xi32>
    %4 = vector.extract_strided_slice %2 {offsets = [1, 0], sizes = [1, 256], strides = [1, 1]} : vector<2x256xi32> to vector<1x256xi32>
    %cst = arith.constant 0.000000e+00 : f32
    %5 = vector.broadcast %cst : f32 to vector<4x256xf32>
    %6 = vector.extract_strided_slice %1 {offsets = [0, 239], sizes = [4, 17], strides = [1, 1]} : vector<4x256xf32> to vector<4x17xf32>
    %7 = vector.extract_strided_slice %1 {offsets = [0, 0], sizes = [4, 239], strides = [1, 1]} : vector<4x256xf32> to vector<4x239xf32>
    %8 = tpu.concatenate %6, %7 in 1 : vector<4x17xf32>, vector<4x239xf32> -> vector<4x256xf32>
    %c-1_i32 = arith.constant -1 : i32
    %9 = vector.broadcast %c-1_i32 : i32 to vector<1x256xi32>
    %10 = arith.addi %3, %9 : vector<1x256xi32>
    %c0_i32 = arith.constant 0 : i32
    %11 = vector.broadcast %c0_i32 : i32 to vector<1x256xi32>
    %12 = arith.cmpi sge, %10, %11 : vector<1x256xi32>
    %c-1_i32_4 = arith.constant -1 : i32
    %13 = vector.broadcast %c-1_i32_4 : i32 to vector<1x256xi32>
    %14 = arith.addi %3, %13 : vector<1x256xi32>
    %c16_i32 = arith.constant 16 : i32
    %15 = vector.broadcast %c16_i32 : i32 to vector<1x256xi32>
    %16 = arith.cmpi slt, %14, %15 : vector<1x256xi32>
    %17 = arith.andi %12, %16 : vector<1x256xi1>
    %c-1_i32_5 = arith.constant -1 : i32
    %18 = vector.broadcast %c-1_i32_5 : i32 to vector<1x256xi32>
    %19 = arith.addi %4, %18 : vector<1x256xi32>
    %c0_i32_6 = arith.constant 0 : i32
    %20 = vector.broadcast %c0_i32_6 : i32 to vector<1x256xi32>
    %21 = arith.cmpi sge, %19, %20 : vector<1x256xi32>
    %22 = arith.andi %17, %21 : vector<1x256xi1>
    %c-1_i32_7 = arith.constant -1 : i32
    %23 = vector.broadcast %c-1_i32_7 : i32 to vector<1x256xi32>
    %24 = arith.addi %4, %23 : vector<1x256xi32>
    %c16_i32_8 = arith.constant 16 : i32
    %25 = vector.broadcast %c16_i32_8 : i32 to vector<1x256xi32>
    %26 = arith.cmpi slt, %24, %25 : vector<1x256xi32>
    %27 = arith.andi %22, %26 : vector<1x256xi1>
    %cst_9 = arith.constant 0.000000e+00 : f32
    %28 = vector.shape_cast %27 : vector<1x256xi1> to vector<1x256xi1>
    %29 = vector.broadcast %28 : vector<1x256xi1> to vector<4x256xi1>
    %30 = vector.broadcast %cst_9 : f32 to vector<4x256xf32>
    %31 = arith.select %29, %8, %30 : vector<4x256xi1>, vector<4x256xf32>
    %32 = arith.truncf %31 : vector<4x256xf32> to vector<4x256xbf16>
    %c0_10 = arith.constant 0 : index
    %c0_11 = arith.constant 0 : index
    %c0_12 = arith.constant 0 : index
    %33 = vector.load %arg3[%c0_10, %c0_11, %c0_12] : memref<9x4x4xbf16, #tpu.memory_space<vmem>>, vector<1x4x4xbf16>
    %34 = vector.shape_cast %33 : vector<1x4x4xbf16> to vector<4x4xbf16>
    %cst_13 = arith.constant dense<0.000000e+00> : vector<4x256xf32>
    %35 = tpu.matmul %34, %32, %cst_13 {dimension_numbers = #tpu.dot_dimension_numbers<[1], [0], [0], [1], [0, 0, 1, 1], [], []>} : vector<4x4xbf16>, vector<4x256xbf16>, vector<4x256xf32> -> vector<4x256xf32>
    %36 = arith.addf %5, %35 : vector<4x256xf32>
    %37 = vector.extract_strided_slice %1 {offsets = [0, 240], sizes = [4, 16], strides = [1, 1]} : vector<4x256xf32> to vector<4x16xf32>
    %38 = vector.extract_strided_slice %1 {offsets = [0, 0], sizes = [4, 240], strides = [1, 1]} : vector<4x256xf32> to vector<4x240xf32>
    %39 = tpu.concatenate %37, %38 in 1 : vector<4x16xf32>, vector<4x240xf32> -> vector<4x256xf32>
    %c-1_i32_14 = arith.constant -1 : i32
    %40 = vector.broadcast %c-1_i32_14 : i32 to vector<1x256xi32>
    %41 = arith.addi %3, %40 : vector<1x256xi32>
    %c0_i32_15 = arith.constant 0 : i32
    %42 = vector.broadcast %c0_i32_15 : i32 to vector<1x256xi32>
    %43 = arith.cmpi sge, %41, %42 : vector<1x256xi32>
    %c-1_i32_16 = arith.constant -1 : i32
    %44 = vector.broadcast %c-1_i32_16 : i32 to vector<1x256xi32>
    %45 = arith.addi %3, %44 : vector<1x256xi32>
    %c16_i32_17 = arith.constant 16 : i32
    %46 = vector.broadcast %c16_i32_17 : i32 to vector<1x256xi32>
    %47 = arith.cmpi slt, %45, %46 : vector<1x256xi32>
    %48 = arith.andi %43, %47 : vector<1x256xi1>
    %c0_i32_18 = arith.constant 0 : i32
    %49 = vector.broadcast %c0_i32_18 : i32 to vector<1x256xi32>
    %50 = arith.addi %4, %49 : vector<1x256xi32>
    %c0_i32_19 = arith.constant 0 : i32
    %51 = vector.broadcast %c0_i32_19 : i32 to vector<1x256xi32>
    %52 = arith.cmpi sge, %50, %51 : vector<1x256xi32>
    %53 = arith.andi %48, %52 : vector<1x256xi1>
    %c0_i32_20 = arith.constant 0 : i32
    %54 = vector.broadcast %c0_i32_20 : i32 to vector<1x256xi32>
    %55 = arith.addi %4, %54 : vector<1x256xi32>
    %c16_i32_21 = arith.constant 16 : i32
    %56 = vector.broadcast %c16_i32_21 : i32 to vector<1x256xi32>
    %57 = arith.cmpi slt, %55, %56 : vector<1x256xi32>
    %58 = arith.andi %53, %57 : vector<1x256xi1>
    %cst_22 = arith.constant 0.000000e+00 : f32
    %59 = vector.shape_cast %58 : vector<1x256xi1> to vector<1x256xi1>
    %60 = vector.broadcast %59 : vector<1x256xi1> to vector<4x256xi1>
    %61 = vector.broadcast %cst_22 : f32 to vector<4x256xf32>
    %62 = arith.select %60, %39, %61 : vector<4x256xi1>, vector<4x256xf32>
    %63 = arith.truncf %62 : vector<4x256xf32> to vector<4x256xbf16>
    %c1 = arith.constant 1 : index
    %c0_23 = arith.constant 0 : index
    %c0_24 = arith.constant 0 : index
    %64 = vector.load %arg3[%c1, %c0_23, %c0_24] : memref<9x4x4xbf16, #tpu.memory_space<vmem>>, vector<1x4x4xbf16>
    %65 = vector.shape_cast %64 : vector<1x4x4xbf16> to vector<4x4xbf16>
    %cst_25 = arith.constant dense<0.000000e+00> : vector<4x256xf32>
    %66 = tpu.matmul %65, %63, %cst_25 {dimension_numbers = #tpu.dot_dimension_numbers<[1], [0], [0], [1], [0, 0, 1, 1], [], []>} : vector<4x4xbf16>, vector<4x256xbf16>, vector<4x256xf32> -> vector<4x256xf32>
    %67 = arith.addf %36, %66 : vector<4x256xf32>
    %68 = vector.extract_strided_slice %1 {offsets = [0, 241], sizes = [4, 15], strides = [1, 1]} : vector<4x256xf32> to vector<4x15xf32>
    %69 = vector.extract_strided_slice %1 {offsets = [0, 0], sizes = [4, 241], strides = [1, 1]} : vector<4x256xf32> to vector<4x241xf32>
    %70 = tpu.concatenate %68, %69 in 1 : vector<4x15xf32>, vector<4x241xf32> -> vector<4x256xf32>
    %c-1_i32_26 = arith.constant -1 : i32
    %71 = vector.broadcast %c-1_i32_26 : i32 to vector<1x256xi32>
    %72 = arith.addi %3, %71 : vector<1x256xi32>
    %c0_i32_27 = arith.constant 0 : i32
    %73 = vector.broadcast %c0_i32_27 : i32 to vector<1x256xi32>
    %74 = arith.cmpi sge, %72, %73 : vector<1x256xi32>
    %c-1_i32_28 = arith.constant -1 : i32
    %75 = vector.broadcast %c-1_i32_28 : i32 to vector<1x256xi32>
    %76 = arith.addi %3, %75 : vector<1x256xi32>
    %c16_i32_29 = arith.constant 16 : i32
    %77 = vector.broadcast %c16_i32_29 : i32 to vector<1x256xi32>
    %78 = arith.cmpi slt, %76, %77 : vector<1x256xi32>
    %79 = arith.andi %74, %78 : vector<1x256xi1>
    %c1_i32 = arith.constant 1 : i32
    %80 = vector.broadcast %c1_i32 : i32 to vector<1x256xi32>
    %81 = arith.addi %4, %80 : vector<1x256xi32>
    %c0_i32_30 = arith.constant 0 : i32
    %82 = vector.broadcast %c0_i32_30 : i32 to vector<1x256xi32>
    %83 = arith.cmpi sge, %81, %82 : vector<1x256xi32>
    %84 = arith.andi %79, %83 : vector<1x256xi1>
    %c1_i32_31 = arith.constant 1 : i32
    %85 = vector.broadcast %c1_i32_31 : i32 to vector<1x256xi32>
    %86 = arith.addi %4, %85 : vector<1x256xi32>
    %c16_i32_32 = arith.constant 16 : i32
    %87 = vector.broadcast %c16_i32_32 : i32 to vector<1x256xi32>
    %88 = arith.cmpi slt, %86, %87 : vector<1x256xi32>
    %89 = arith.andi %84, %88 : vector<1x256xi1>
    %cst_33 = arith.constant 0.000000e+00 : f32
    %90 = vector.shape_cast %89 : vector<1x256xi1> to vector<1x256xi1>
    %91 = vector.broadcast %90 : vector<1x256xi1> to vector<4x256xi1>
    %92 = vector.broadcast %cst_33 : f32 to vector<4x256xf32>
    %93 = arith.select %91, %70, %92 : vector<4x256xi1>, vector<4x256xf32>
    %94 = arith.truncf %93 : vector<4x256xf32> to vector<4x256xbf16>
    %c2 = arith.constant 2 : index
    %c0_34 = arith.constant 0 : index
    %c0_35 = arith.constant 0 : index
    %95 = vector.load %arg3[%c2, %c0_34, %c0_35] : memref<9x4x4xbf16, #tpu.memory_space<vmem>>, vector<1x4x4xbf16>
    %96 = vector.shape_cast %95 : vector<1x4x4xbf16> to vector<4x4xbf16>
    %cst_36 = arith.constant dense<0.000000e+00> : vector<4x256xf32>
    %97 = tpu.matmul %96, %94, %cst_36 {dimension_numbers = #tpu.dot_dimension_numbers<[1], [0], [0], [1], [0, 0, 1, 1], [], []>} : vector<4x4xbf16>, vector<4x256xbf16>, vector<4x256xf32> -> vector<4x256xf32>
    %98 = arith.addf %67, %97 : vector<4x256xf32>
    %99 = vector.extract_strided_slice %1 {offsets = [0, 255], sizes = [4, 1], strides = [1, 1]} : vector<4x256xf32> to vector<4x1xf32>
    %100 = vector.extract_strided_slice %1 {offsets = [0, 0], sizes = [4, 255], strides = [1, 1]} : vector<4x256xf32> to vector<4x255xf32>
    %101 = tpu.concatenate %99, %100 in 1 : vector<4x1xf32>, vector<4x255xf32> -> vector<4x256xf32>
    %c0_i32_37 = arith.constant 0 : i32
    %102 = vector.broadcast %c0_i32_37 : i32 to vector<1x256xi32>
    %103 = arith.addi %3, %102 : vector<1x256xi32>
    %c0_i32_38 = arith.constant 0 : i32
    %104 = vector.broadcast %c0_i32_38 : i32 to vector<1x256xi32>
    %105 = arith.cmpi sge, %103, %104 : vector<1x256xi32>
    %c0_i32_39 = arith.constant 0 : i32
    %106 = vector.broadcast %c0_i32_39 : i32 to vector<1x256xi32>
    %107 = arith.addi %3, %106 : vector<1x256xi32>
    %c16_i32_40 = arith.constant 16 : i32
    %108 = vector.broadcast %c16_i32_40 : i32 to vector<1x256xi32>
    %109 = arith.cmpi slt, %107, %108 : vector<1x256xi32>
    %110 = arith.andi %105, %109 : vector<1x256xi1>
    %c-1_i32_41 = arith.constant -1 : i32
    %111 = vector.broadcast %c-1_i32_41 : i32 to vector<1x256xi32>
    %112 = arith.addi %4, %111 : vector<1x256xi32>
    %c0_i32_42 = arith.constant 0 : i32
    %113 = vector.broadcast %c0_i32_42 : i32 to vector<1x256xi32>
    %114 = arith.cmpi sge, %112, %113 : vector<1x256xi32>
    %115 = arith.andi %110, %114 : vector<1x256xi1>
    %c-1_i32_43 = arith.constant -1 : i32
    %116 = vector.broadcast %c-1_i32_43 : i32 to vector<1x256xi32>
    %117 = arith.addi %4, %116 : vector<1x256xi32>
    %c16_i32_44 = arith.constant 16 : i32
    %118 = vector.broadcast %c16_i32_44 : i32 to vector<1x256xi32>
    %119 = arith.cmpi slt, %117, %118 : vector<1x256xi32>
    %120 = arith.andi %115, %119 : vector<1x256xi1>
    %cst_45 = arith.constant 0.000000e+00 : f32
    %121 = vector.shape_cast %120 : vector<1x256xi1> to vector<1x256xi1>
    %122 = vector.broadcast %121 : vector<1x256xi1> to vector<4x256xi1>
    %123 = vector.broadcast %cst_45 : f32 to vector<4x256xf32>
    %124 = arith.select %122, %101, %123 : vector<4x256xi1>, vector<4x256xf32>
    %125 = arith.truncf %124 : vector<4x256xf32> to vector<4x256xbf16>
    %c3 = arith.constant 3 : index
    %c0_46 = arith.constant 0 : index
    %c0_47 = arith.constant 0 : index
    %126 = vector.load %arg3[%c3, %c0_46, %c0_47] : memref<9x4x4xbf16, #tpu.memory_space<vmem>>, vector<1x4x4xbf16>
    %127 = vector.shape_cast %126 : vector<1x4x4xbf16> to vector<4x4xbf16>
    %cst_48 = arith.constant dense<0.000000e+00> : vector<4x256xf32>
    %128 = tpu.matmul %127, %125, %cst_48 {dimension_numbers = #tpu.dot_dimension_numbers<[1], [0], [0], [1], [0, 0, 1, 1], [], []>} : vector<4x4xbf16>, vector<4x256xbf16>, vector<4x256xf32> -> vector<4x256xf32>
    %129 = arith.addf %98, %128 : vector<4x256xf32>
    %c0_i32_49 = arith.constant 0 : i32
    %130 = vector.broadcast %c0_i32_49 : i32 to vector<1x256xi32>
    %131 = arith.addi %3, %130 : vector<1x256xi32>
    %c0_i32_50 = arith.constant 0 : i32
    %132 = vector.broadcast %c0_i32_50 : i32 to vector<1x256xi32>
    %133 = arith.cmpi sge, %131, %132 : vector<1x256xi32>
    %c0_i32_51 = arith.constant 0 : i32
    %134 = vector.broadcast %c0_i32_51 : i32 to vector<1x256xi32>
    %135 = arith.addi %3, %134 : vector<1x256xi32>
    %c16_i32_52 = arith.constant 16 : i32
    %136 = vector.broadcast %c16_i32_52 : i32 to vector<1x256xi32>
    %137 = arith.cmpi slt, %135, %136 : vector<1x256xi32>
    %138 = arith.andi %133, %137 : vector<1x256xi1>
    %c0_i32_53 = arith.constant 0 : i32
    %139 = vector.broadcast %c0_i32_53 : i32 to vector<1x256xi32>
    %140 = arith.addi %4, %139 : vector<1x256xi32>
    %c0_i32_54 = arith.constant 0 : i32
    %141 = vector.broadcast %c0_i32_54 : i32 to vector<1x256xi32>
    %142 = arith.cmpi sge, %140, %141 : vector<1x256xi32>
    %143 = arith.andi %138, %142 : vector<1x256xi1>
    %c0_i32_55 = arith.constant 0 : i32
    %144 = vector.broadcast %c0_i32_55 : i32 to vector<1x256xi32>
    %145 = arith.addi %4, %144 : vector<1x256xi32>
    %c16_i32_56 = arith.constant 16 : i32
    %146 = vector.broadcast %c16_i32_56 : i32 to vector<1x256xi32>
    %147 = arith.cmpi slt, %145, %146 : vector<1x256xi32>
    %148 = arith.andi %143, %147 : vector<1x256xi1>
    %cst_57 = arith.constant 0.000000e+00 : f32
    %149 = vector.shape_cast %148 : vector<1x256xi1> to vector<1x256xi1>
    %150 = vector.broadcast %149 : vector<1x256xi1> to vector<4x256xi1>
    %151 = vector.broadcast %cst_57 : f32 to vector<4x256xf32>
    %152 = arith.select %150, %1, %151 : vector<4x256xi1>, vector<4x256xf32>
    %153 = arith.truncf %152 : vector<4x256xf32> to vector<4x256xbf16>
    %c4 = arith.constant 4 : index
    %c0_58 = arith.constant 0 : index
    %c0_59 = arith.constant 0 : index
    %154 = vector.load %arg3[%c4, %c0_58, %c0_59] : memref<9x4x4xbf16, #tpu.memory_space<vmem>>, vector<1x4x4xbf16>
    %155 = vector.shape_cast %154 : vector<1x4x4xbf16> to vector<4x4xbf16>
    %cst_60 = arith.constant dense<0.000000e+00> : vector<4x256xf32>
    %156 = tpu.matmul %155, %153, %cst_60 {dimension_numbers = #tpu.dot_dimension_numbers<[1], [0], [0], [1], [0, 0, 1, 1], [], []>} : vector<4x4xbf16>, vector<4x256xbf16>, vector<4x256xf32> -> vector<4x256xf32>
    %157 = arith.addf %129, %156 : vector<4x256xf32>
    %158 = vector.extract_strided_slice %1 {offsets = [0, 1], sizes = [4, 255], strides = [1, 1]} : vector<4x256xf32> to vector<4x255xf32>
    %159 = vector.extract_strided_slice %1 {offsets = [0, 0], sizes = [4, 1], strides = [1, 1]} : vector<4x256xf32> to vector<4x1xf32>
    %160 = tpu.concatenate %158, %159 in 1 : vector<4x255xf32>, vector<4x1xf32> -> vector<4x256xf32>
    %c0_i32_61 = arith.constant 0 : i32
    %161 = vector.broadcast %c0_i32_61 : i32 to vector<1x256xi32>
    %162 = arith.addi %3, %161 : vector<1x256xi32>
    %c0_i32_62 = arith.constant 0 : i32
    %163 = vector.broadcast %c0_i32_62 : i32 to vector<1x256xi32>
    %164 = arith.cmpi sge, %162, %163 : vector<1x256xi32>
    %c0_i32_63 = arith.constant 0 : i32
    %165 = vector.broadcast %c0_i32_63 : i32 to vector<1x256xi32>
    %166 = arith.addi %3, %165 : vector<1x256xi32>
    %c16_i32_64 = arith.constant 16 : i32
    %167 = vector.broadcast %c16_i32_64 : i32 to vector<1x256xi32>
    %168 = arith.cmpi slt, %166, %167 : vector<1x256xi32>
    %169 = arith.andi %164, %168 : vector<1x256xi1>
    %c1_i32_65 = arith.constant 1 : i32
    %170 = vector.broadcast %c1_i32_65 : i32 to vector<1x256xi32>
    %171 = arith.addi %4, %170 : vector<1x256xi32>
    %c0_i32_66 = arith.constant 0 : i32
    %172 = vector.broadcast %c0_i32_66 : i32 to vector<1x256xi32>
    %173 = arith.cmpi sge, %171, %172 : vector<1x256xi32>
    %174 = arith.andi %169, %173 : vector<1x256xi1>
    %c1_i32_67 = arith.constant 1 : i32
    %175 = vector.broadcast %c1_i32_67 : i32 to vector<1x256xi32>
    %176 = arith.addi %4, %175 : vector<1x256xi32>
    %c16_i32_68 = arith.constant 16 : i32
    %177 = vector.broadcast %c16_i32_68 : i32 to vector<1x256xi32>
    %178 = arith.cmpi slt, %176, %177 : vector<1x256xi32>
    %179 = arith.andi %174, %178 : vector<1x256xi1>
    %cst_69 = arith.constant 0.000000e+00 : f32
    %180 = vector.shape_cast %179 : vector<1x256xi1> to vector<1x256xi1>
    %181 = vector.broadcast %180 : vector<1x256xi1> to vector<4x256xi1>
    %182 = vector.broadcast %cst_69 : f32 to vector<4x256xf32>
    %183 = arith.select %181, %160, %182 : vector<4x256xi1>, vector<4x256xf32>
    %184 = arith.truncf %183 : vector<4x256xf32> to vector<4x256xbf16>
    %c5 = arith.constant 5 : index
    %c0_70 = arith.constant 0 : index
    %c0_71 = arith.constant 0 : index
    %185 = vector.load %arg3[%c5, %c0_70, %c0_71] : memref<9x4x4xbf16, #tpu.memory_space<vmem>>, vector<1x4x4xbf16>
    %186 = vector.shape_cast %185 : vector<1x4x4xbf16> to vector<4x4xbf16>
    %cst_72 = arith.constant dense<0.000000e+00> : vector<4x256xf32>
    %187 = tpu.matmul %186, %184, %cst_72 {dimension_numbers = #tpu.dot_dimension_numbers<[1], [0], [0], [1], [0, 0, 1, 1], [], []>} : vector<4x4xbf16>, vector<4x256xbf16>, vector<4x256xf32> -> vector<4x256xf32>
    %188 = arith.addf %157, %187 : vector<4x256xf32>
    %189 = vector.extract_strided_slice %1 {offsets = [0, 15], sizes = [4, 241], strides = [1, 1]} : vector<4x256xf32> to vector<4x241xf32>
    %190 = vector.extract_strided_slice %1 {offsets = [0, 0], sizes = [4, 15], strides = [1, 1]} : vector<4x256xf32> to vector<4x15xf32>
    %191 = tpu.concatenate %189, %190 in 1 : vector<4x241xf32>, vector<4x15xf32> -> vector<4x256xf32>
    %c1_i32_73 = arith.constant 1 : i32
    %192 = vector.broadcast %c1_i32_73 : i32 to vector<1x256xi32>
    %193 = arith.addi %3, %192 : vector<1x256xi32>
    %c0_i32_74 = arith.constant 0 : i32
    %194 = vector.broadcast %c0_i32_74 : i32 to vector<1x256xi32>
    %195 = arith.cmpi sge, %193, %194 : vector<1x256xi32>
    %c1_i32_75 = arith.constant 1 : i32
    %196 = vector.broadcast %c1_i32_75 : i32 to vector<1x256xi32>
    %197 = arith.addi %3, %196 : vector<1x256xi32>
    %c16_i32_76 = arith.constant 16 : i32
    %198 = vector.broadcast %c16_i32_76 : i32 to vector<1x256xi32>
    %199 = arith.cmpi slt, %197, %198 : vector<1x256xi32>
    %200 = arith.andi %195, %199 : vector<1x256xi1>
    %c-1_i32_77 = arith.constant -1 : i32
    %201 = vector.broadcast %c-1_i32_77 : i32 to vector<1x256xi32>
    %202 = arith.addi %4, %201 : vector<1x256xi32>
    %c0_i32_78 = arith.constant 0 : i32
    %203 = vector.broadcast %c0_i32_78 : i32 to vector<1x256xi32>
    %204 = arith.cmpi sge, %202, %203 : vector<1x256xi32>
    %205 = arith.andi %200, %204 : vector<1x256xi1>
    %c-1_i32_79 = arith.constant -1 : i32
    %206 = vector.broadcast %c-1_i32_79 : i32 to vector<1x256xi32>
    %207 = arith.addi %4, %206 : vector<1x256xi32>
    %c16_i32_80 = arith.constant 16 : i32
    %208 = vector.broadcast %c16_i32_80 : i32 to vector<1x256xi32>
    %209 = arith.cmpi slt, %207, %208 : vector<1x256xi32>
    %210 = arith.andi %205, %209 : vector<1x256xi1>
    %cst_81 = arith.constant 0.000000e+00 : f32
    %211 = vector.shape_cast %210 : vector<1x256xi1> to vector<1x256xi1>
    %212 = vector.broadcast %211 : vector<1x256xi1> to vector<4x256xi1>
    %213 = vector.broadcast %cst_81 : f32 to vector<4x256xf32>
    %214 = arith.select %212, %191, %213 : vector<4x256xi1>, vector<4x256xf32>
    %215 = arith.truncf %214 : vector<4x256xf32> to vector<4x256xbf16>
    %c6 = arith.constant 6 : index
    %c0_82 = arith.constant 0 : index
    %c0_83 = arith.constant 0 : index
    %216 = vector.load %arg3[%c6, %c0_82, %c0_83] : memref<9x4x4xbf16, #tpu.memory_space<vmem>>, vector<1x4x4xbf16>
    %217 = vector.shape_cast %216 : vector<1x4x4xbf16> to vector<4x4xbf16>
    %cst_84 = arith.constant dense<0.000000e+00> : vector<4x256xf32>
    %218 = tpu.matmul %217, %215, %cst_84 {dimension_numbers = #tpu.dot_dimension_numbers<[1], [0], [0], [1], [0, 0, 1, 1], [], []>} : vector<4x4xbf16>, vector<4x256xbf16>, vector<4x256xf32> -> vector<4x256xf32>
    %219 = arith.addf %188, %218 : vector<4x256xf32>
    %220 = vector.extract_strided_slice %1 {offsets = [0, 16], sizes = [4, 240], strides = [1, 1]} : vector<4x256xf32> to vector<4x240xf32>
    %221 = vector.extract_strided_slice %1 {offsets = [0, 0], sizes = [4, 16], strides = [1, 1]} : vector<4x256xf32> to vector<4x16xf32>
    %222 = tpu.concatenate %220, %221 in 1 : vector<4x240xf32>, vector<4x16xf32> -> vector<4x256xf32>
    %c1_i32_85 = arith.constant 1 : i32
    %223 = vector.broadcast %c1_i32_85 : i32 to vector<1x256xi32>
    %224 = arith.addi %3, %223 : vector<1x256xi32>
    %c0_i32_86 = arith.constant 0 : i32
    %225 = vector.broadcast %c0_i32_86 : i32 to vector<1x256xi32>
    %226 = arith.cmpi sge, %224, %225 : vector<1x256xi32>
    %c1_i32_87 = arith.constant 1 : i32
    %227 = vector.broadcast %c1_i32_87 : i32 to vector<1x256xi32>
    %228 = arith.addi %3, %227 : vector<1x256xi32>
    %c16_i32_88 = arith.constant 16 : i32
    %229 = vector.broadcast %c16_i32_88 : i32 to vector<1x256xi32>
    %230 = arith.cmpi slt, %228, %229 : vector<1x256xi32>
    %231 = arith.andi %226, %230 : vector<1x256xi1>
    %c0_i32_89 = arith.constant 0 : i32
    %232 = vector.broadcast %c0_i32_89 : i32 to vector<1x256xi32>
    %233 = arith.addi %4, %232 : vector<1x256xi32>
    %c0_i32_90 = arith.constant 0 : i32
    %234 = vector.broadcast %c0_i32_90 : i32 to vector<1x256xi32>
    %235 = arith.cmpi sge, %233, %234 : vector<1x256xi32>
    %236 = arith.andi %231, %235 : vector<1x256xi1>
    %c0_i32_91 = arith.constant 0 : i32
    %237 = vector.broadcast %c0_i32_91 : i32 to vector<1x256xi32>
    %238 = arith.addi %4, %237 : vector<1x256xi32>
    %c16_i32_92 = arith.constant 16 : i32
    %239 = vector.broadcast %c16_i32_92 : i32 to vector<1x256xi32>
    %240 = arith.cmpi slt, %238, %239 : vector<1x256xi32>
    %241 = arith.andi %236, %240 : vector<1x256xi1>
    %cst_93 = arith.constant 0.000000e+00 : f32
    %242 = vector.shape_cast %241 : vector<1x256xi1> to vector<1x256xi1>
    %243 = vector.broadcast %242 : vector<1x256xi1> to vector<4x256xi1>
    %244 = vector.broadcast %cst_93 : f32 to vector<4x256xf32>
    %245 = arith.select %243, %222, %244 : vector<4x256xi1>, vector<4x256xf32>
    %246 = arith.truncf %245 : vector<4x256xf32> to vector<4x256xbf16>
    %c7 = arith.constant 7 : index
    %c0_94 = arith.constant 0 : index
    %c0_95 = arith.constant 0 : index
    %247 = vector.load %arg3[%c7, %c0_94, %c0_95] : memref<9x4x4xbf16, #tpu.memory_space<vmem>>, vector<1x4x4xbf16>
    %248 = vector.shape_cast %247 : vector<1x4x4xbf16> to vector<4x4xbf16>
    %cst_96 = arith.constant dense<0.000000e+00> : vector<4x256xf32>
    %249 = tpu.matmul %248, %246, %cst_96 {dimension_numbers = #tpu.dot_dimension_numbers<[1], [0], [0], [1], [0, 0, 1, 1], [], []>} : vector<4x4xbf16>, vector<4x256xbf16>, vector<4x256xf32> -> vector<4x256xf32>
    %250 = arith.addf %219, %249 : vector<4x256xf32>
    %251 = vector.extract_strided_slice %1 {offsets = [0, 17], sizes = [4, 239], strides = [1, 1]} : vector<4x256xf32> to vector<4x239xf32>
    %252 = vector.extract_strided_slice %1 {offsets = [0, 0], sizes = [4, 17], strides = [1, 1]} : vector<4x256xf32> to vector<4x17xf32>
    %253 = tpu.concatenate %251, %252 in 1 : vector<4x239xf32>, vector<4x17xf32> -> vector<4x256xf32>
    %c1_i32_97 = arith.constant 1 : i32
    %254 = vector.broadcast %c1_i32_97 : i32 to vector<1x256xi32>
    %255 = arith.addi %3, %254 : vector<1x256xi32>
    %c0_i32_98 = arith.constant 0 : i32
    %256 = vector.broadcast %c0_i32_98 : i32 to vector<1x256xi32>
    %257 = arith.cmpi sge, %255, %256 : vector<1x256xi32>
    %c1_i32_99 = arith.constant 1 : i32
    %258 = vector.broadcast %c1_i32_99 : i32 to vector<1x256xi32>
    %259 = arith.addi %3, %258 : vector<1x256xi32>
    %c16_i32_100 = arith.constant 16 : i32
    %260 = vector.broadcast %c16_i32_100 : i32 to vector<1x256xi32>
    %261 = arith.cmpi slt, %259, %260 : vector<1x256xi32>
    %262 = arith.andi %257, %261 : vector<1x256xi1>
    %c1_i32_101 = arith.constant 1 : i32
    %263 = vector.broadcast %c1_i32_101 : i32 to vector<1x256xi32>
    %264 = arith.addi %4, %263 : vector<1x256xi32>
    %c0_i32_102 = arith.constant 0 : i32
    %265 = vector.broadcast %c0_i32_102 : i32 to vector<1x256xi32>
    %266 = arith.cmpi sge, %264, %265 : vector<1x256xi32>
    %267 = arith.andi %262, %266 : vector<1x256xi1>
    %c1_i32_103 = arith.constant 1 : i32
    %268 = vector.broadcast %c1_i32_103 : i32 to vector<1x256xi32>
    %269 = arith.addi %4, %268 : vector<1x256xi32>
    %c16_i32_104 = arith.constant 16 : i32
    %270 = vector.broadcast %c16_i32_104 : i32 to vector<1x256xi32>
    %271 = arith.cmpi slt, %269, %270 : vector<1x256xi32>
    %272 = arith.andi %267, %271 : vector<1x256xi1>
    %cst_105 = arith.constant 0.000000e+00 : f32
    %273 = vector.shape_cast %272 : vector<1x256xi1> to vector<1x256xi1>
    %274 = vector.broadcast %273 : vector<1x256xi1> to vector<4x256xi1>
    %275 = vector.broadcast %cst_105 : f32 to vector<4x256xf32>
    %276 = arith.select %274, %253, %275 : vector<4x256xi1>, vector<4x256xf32>
    %277 = arith.truncf %276 : vector<4x256xf32> to vector<4x256xbf16>
    %c8 = arith.constant 8 : index
    %c0_106 = arith.constant 0 : index
    %c0_107 = arith.constant 0 : index
    %278 = vector.load %arg3[%c8, %c0_106, %c0_107] : memref<9x4x4xbf16, #tpu.memory_space<vmem>>, vector<1x4x4xbf16>
    %279 = vector.shape_cast %278 : vector<1x4x4xbf16> to vector<4x4xbf16>
    %cst_108 = arith.constant dense<0.000000e+00> : vector<4x256xf32>
    %280 = tpu.matmul %279, %277, %cst_108 {dimension_numbers = #tpu.dot_dimension_numbers<[1], [0], [0], [1], [0, 0, 1, 1], [], []>} : vector<4x4xbf16>, vector<4x256xbf16>, vector<4x256xf32> -> vector<4x256xf32>
    %281 = arith.addf %250, %280 : vector<4x256xf32>
    %282 = arith.truncf %281 : vector<4x256xf32> to vector<4x256xbf16>
    %c0_109 = arith.constant 0 : index
    %c0_110 = arith.constant 0 : index
    %c0_111 = arith.constant 0 : index
    %283 = vector.load %arg4[%c0_109, %c0_110, %c0_111] : memref<1x4x256xbf16, #tpu.memory_space<vmem>>, vector<1x4x256xbf16>
    %284 = vector.shape_cast %283 : vector<1x4x256xbf16> to vector<4x256xbf16>
    %285 = vector.shape_cast %282 : vector<4x256xbf16> to vector<1x4x256xbf16>
    tpu.vector_store %arg4[%c0_109, %c0_110, %c0_111], %285 {strides = array<i32>} : memref<1x4x256xbf16, #tpu.memory_space<vmem>>, vector<1x4x256xbf16>,
    %cst_112 = arith.constant dense<0.000000e+00> : vector<256xf32>
    %286 = vector.multi_reduction <add>, %281, %cst_112 [0] : vector<4x256xf32> to vector<256xf32>
    %287 = vector.shape_cast %286 : vector<256xf32> to vector<1x256xf32>
    %c0_113 = arith.constant 0 : index
    %c0_114 = arith.constant 0 : index
    %c0_115 = arith.constant 0 : index
    %288 = vector.load %arg5[%c0_113, %c0_114, %c0_115] : memref<1x1x256xf32, #tpu.memory_space<vmem>>, vector<1x1x256xf32>
    %289 = vector.shape_cast %288 : vector<1x1x256xf32> to vector<1x256xf32>
    %290 = vector.shape_cast %287 : vector<1x256xf32> to vector<1x1x256xf32>
    tpu.vector_store %arg5[%c0_113, %c0_114, %c0_115], %290 {strides = array<i32>} : memref<1x1x256xf32, #tpu.memory_space<vmem>>, vector<1x1x256xf32>,
    %291 = arith.mulf %281, %281 : vector<4x256xf32>
    %cst_116 = arith.constant dense<0.000000e+00> : vector<256xf32>
    %292 = vector.multi_reduction <add>, %291, %cst_116 [0] : vector<4x256xf32> to vector<256xf32>
    %293 = vector.shape_cast %292 : vector<256xf32> to vector<1x256xf32>
    %c0_117 = arith.constant 0 : index
    %c0_118 = arith.constant 0 : index
    %c0_119 = arith.constant 0 : index
    %294 = vector.load %arg6[%c0_117, %c0_118, %c0_119] : memref<1x1x256xf32, #tpu.memory_space<vmem>>, vector<1x1x256xf32>
    %295 = vector.shape_cast %294 : vector<1x1x256xf32> to vector<1x256xf32>
    %296 = vector.shape_cast %293 : vector<1x256xf32> to vector<1x1x256xf32>
    tpu.vector_store %arg6[%c0_117, %c0_118, %c0_119], %296 {strides = array<i32>} : memref<1x1x256xf32, #tpu.memory_space<vmem>>, vector<1x1x256xf32>,
    return
  }
  func.func @transform_0(%arg0: i32) -> (i32, i32) {
    %c0_i32 = arith.constant 0 : i32
    %c0_i32_0 = arith.constant 0 : i32
    %c0_i32_1 = arith.constant 0 : i32
    return %c0_i32, %c0_i32_0 : i32, i32
  }
  func.func @transform_1(%arg0: i32) -> (i32, i32, i32) {
    %c0_i32 = arith.constant 0 : i32
    %c0_i32_0 = arith.constant 0 : i32
    %c0_i32_1 = arith.constant 0 : i32
    return %arg0, %c0_i32, %c0_i32_0 : i32, i32, i32
  }
  func.func @transform_2(%arg0: i32) -> (i32, i32, i32) {
    %c0_i32 = arith.constant 0 : i32
    %c0_i32_0 = arith.constant 0 : i32
    %c0_i32_1 = arith.constant 0 : i32
    %c0_i32_2 = arith.constant 0 : i32
    return %c0_i32, %c0_i32_0, %c0_i32_1 : i32, i32, i32
  }
  func.func @transform_3(%arg0: i32) -> (i32, i32, i32) {
    %c0_i32 = arith.constant 0 : i32
    %c0_i32_0 = arith.constant 0 : i32
    %c0_i32_1 = arith.constant 0 : i32
    return %arg0, %c0_i32, %c0_i32_0 : i32, i32, i32
  }
  func.func @transform_4(%arg0: i32) -> (i32, i32, i32) {
    %c0_i32 = arith.constant 0 : i32
    %c0_i32_0 = arith.constant 0 : i32
    %c0_i32_1 = arith.constant 0 : i32
    return %arg0, %c0_i32, %c0_i32_0 : i32, i32, i32
  }
  func.func @transform_5(%arg0: i32) -> (i32, i32, i32) {
    %c0_i32 = arith.constant 0 : i32
    %c0_i32_0 = arith.constant 0 : i32
    %c0_i32_1 = arith.constant 0 : i32
    return %arg0, %c0_i32, %c0_i32_0 : i32, i32, i32
  }
}

module attributes {stable_mosaic.version = 11 : i64} {
  func.func @_affine_residual_relu_kernel(%arg0: i32, %arg1: i32, %arg2: memref<1x4x256xbf16, #tpu.memory_space<vmem>>, %arg3: memref<1x4x1xf32, #tpu.memory_space<vmem>>, %arg4: memref<1x4x1xf32, #tpu.memory_space<vmem>>, %arg5: memref<1x4x256xf32, #tpu.memory_space<vmem>>, %arg6: memref<1x4x256xf32, #tpu.memory_space<vmem>>) attributes {dimension_semantics = [#tpu.dimension_semantics<parallel>, #tpu.dimension_semantics<parallel>], iteration_bounds = array<i64: 2, 1>, scalar_prefetch = 0 : i64, scratch_operands = 0 : i64, tpu.core_type = #tpu.core_type<tc>, window_params = [{transform_indices = @transform_0, window_bounds = array<i64: 1, 4, 256>}, {transform_indices = @transform_1, window_bounds = array<i64: 1, 4, 1>}, {transform_indices = @transform_2, window_bounds = array<i64: 1, 4, 1>}, {transform_indices = @transform_3, window_bounds = array<i64: 1, 4, 256>}, {transform_indices = @transform_4, window_bounds = array<i64: 1, 4, 256>}]} {
    %c0 = arith.constant 0 : index
    %c0_0 = arith.constant 0 : index
    %c0_1 = arith.constant 0 : index
    %0 = vector.load %arg2[%c0, %c0_0, %c0_1] : memref<1x4x256xbf16, #tpu.memory_space<vmem>>, vector<1x4x256xbf16>
    %1 = vector.shape_cast %0 : vector<1x4x256xbf16> to vector<4x256xbf16>
    %2 = arith.extf %1 : vector<4x256xbf16> to vector<4x256xf32>
    %c0_2 = arith.constant 0 : index
    %c0_3 = arith.constant 0 : index
    %c0_4 = arith.constant 0 : index
    %3 = vector.load %arg3[%c0_2, %c0_3, %c0_4] : memref<1x4x1xf32, #tpu.memory_space<vmem>>, vector<1x4x1xf32>
    %4 = vector.shape_cast %3 : vector<1x4x1xf32> to vector<4x1xf32>
    %5 = vector.broadcast %4 : vector<4x1xf32> to vector<4x256xf32>
    %6 = arith.mulf %2, %5 : vector<4x256xf32>
    %c0_5 = arith.constant 0 : index
    %c0_6 = arith.constant 0 : index
    %c0_7 = arith.constant 0 : index
    %7 = vector.load %arg4[%c0_5, %c0_6, %c0_7] : memref<1x4x1xf32, #tpu.memory_space<vmem>>, vector<1x4x1xf32>
    %8 = vector.shape_cast %7 : vector<1x4x1xf32> to vector<4x1xf32>
    %9 = vector.broadcast %8 : vector<4x1xf32> to vector<4x256xf32>
    %10 = arith.addf %6, %9 : vector<4x256xf32>
    %c0_8 = arith.constant 0 : index
    %c0_9 = arith.constant 0 : index
    %c0_10 = arith.constant 0 : index
    %11 = vector.load %arg5[%c0_8, %c0_9, %c0_10] : memref<1x4x256xf32, #tpu.memory_space<vmem>>, vector<1x4x256xf32>
    %12 = vector.shape_cast %11 : vector<1x4x256xf32> to vector<4x256xf32>
    %13 = arith.addf %10, %12 : vector<4x256xf32>
    %cst = arith.constant 0.000000e+00 : f32
    %14 = vector.broadcast %cst : f32 to vector<4x256xf32>
    %15 = arith.maximumf %13, %14 : vector<4x256xf32>
    %c0_11 = arith.constant 0 : index
    %c0_12 = arith.constant 0 : index
    %c0_13 = arith.constant 0 : index
    %16 = vector.load %arg6[%c0_11, %c0_12, %c0_13] : memref<1x4x256xf32, #tpu.memory_space<vmem>>, vector<1x4x256xf32>
    %17 = vector.shape_cast %16 : vector<1x4x256xf32> to vector<4x256xf32>
    %18 = vector.shape_cast %15 : vector<4x256xf32> to vector<1x4x256xf32>
    tpu.vector_store %arg6[%c0_11, %c0_12, %c0_13], %18 {strides = array<i32>} : memref<1x4x256xf32, #tpu.memory_space<vmem>>, vector<1x4x256xf32>,
    return
  }
  func.func @transform_0(%arg0: i32, %arg1: i32) -> (i32, i32, i32) {
    %c0_i32 = arith.constant 0 : i32
    %c0_i32_0 = arith.constant 0 : i32
    return %arg0, %c0_i32, %arg1 : i32, i32, i32
  }
  func.func @transform_1(%arg0: i32, %arg1: i32) -> (i32, i32, i32) {
    %c0_i32 = arith.constant 0 : i32
    %c0_i32_0 = arith.constant 0 : i32
    %c0_i32_1 = arith.constant 0 : i32
    return %arg0, %c0_i32, %c0_i32_0 : i32, i32, i32
  }
  func.func @transform_2(%arg0: i32, %arg1: i32) -> (i32, i32, i32) {
    %c0_i32 = arith.constant 0 : i32
    %c0_i32_0 = arith.constant 0 : i32
    %c0_i32_1 = arith.constant 0 : i32
    return %arg0, %c0_i32, %c0_i32_0 : i32, i32, i32
  }
  func.func @transform_3(%arg0: i32, %arg1: i32) -> (i32, i32, i32) {
    %c0_i32 = arith.constant 0 : i32
    %c0_i32_0 = arith.constant 0 : i32
    return %arg0, %c0_i32, %arg1 : i32, i32, i32
  }
  func.func @transform_4(%arg0: i32, %arg1: i32) -> (i32, i32, i32) {
    %c0_i32 = arith.constant 0 : i32
    %c0_i32_0 = arith.constant 0 : i32
    return %arg0, %c0_i32, %arg1 : i32, i32, i32
  }
}

module attributes {stable_mosaic.version = 11 : i64} {
  func.func @_conv3x3_cbn_kernel(%arg0: i32, %arg1: memref<2x256xi32, #tpu.memory_space<vmem>>, %arg2: memref<1x4x256xbf16, #tpu.memory_space<vmem>>, %arg3: memref<1x4x1xf32, #tpu.memory_space<vmem>>, %arg4: memref<1x4x1xf32, #tpu.memory_space<vmem>>, %arg5: memref<9x4x4xbf16, #tpu.memory_space<vmem>>, %arg6: memref<1x4x256xbf16, #tpu.memory_space<vmem>>, %arg7: memref<1x1x256xf32, #tpu.memory_space<vmem>>, %arg8: memref<1x1x256xf32, #tpu.memory_space<vmem>>) attributes {dimension_semantics = [#tpu.dimension_semantics<parallel>], iteration_bounds = array<i64: 2>, scalar_prefetch = 0 : i64, scratch_operands = 0 : i64, tpu.core_type = #tpu.core_type<tc>, window_params = [{pipeline_mode = #tpu.pipeline_mode<synchronous>, transform_indices = @transform_0, window_bounds = array<i64: 2, 256>}, {transform_indices = @transform_1, window_bounds = array<i64: 1, 4, 256>}, {transform_indices = @transform_2, window_bounds = array<i64: 1, 4, 1>}, {transform_indices = @transform_3, window_bounds = array<i64: 1, 4, 1>}, {pipeline_mode = #tpu.pipeline_mode<synchronous>, transform_indices = @transform_4, window_bounds = array<i64: 9, 4, 4>}, {transform_indices = @transform_5, window_bounds = array<i64: 1, 4, 256>}, {transform_indices = @transform_6, window_bounds = array<i64: 1, 1, 256>}, {transform_indices = @transform_7, window_bounds = array<i64: 1, 1, 256>}]} {
    %c0 = arith.constant 0 : index
    %c0_0 = arith.constant 0 : index
    %c0_1 = arith.constant 0 : index
    %0 = vector.load %arg2[%c0, %c0_0, %c0_1] : memref<1x4x256xbf16, #tpu.memory_space<vmem>>, vector<1x4x256xbf16>
    %1 = vector.shape_cast %0 : vector<1x4x256xbf16> to vector<4x256xbf16>
    %2 = arith.extf %1 : vector<4x256xbf16> to vector<4x256xf32>
    %c0_2 = arith.constant 0 : index
    %c0_3 = arith.constant 0 : index
    %c0_4 = arith.constant 0 : index
    %3 = vector.load %arg3[%c0_2, %c0_3, %c0_4] : memref<1x4x1xf32, #tpu.memory_space<vmem>>, vector<1x4x1xf32>
    %4 = vector.shape_cast %3 : vector<1x4x1xf32> to vector<4x1xf32>
    %5 = vector.broadcast %4 : vector<4x1xf32> to vector<4x256xf32>
    %6 = arith.mulf %2, %5 : vector<4x256xf32>
    %c0_5 = arith.constant 0 : index
    %c0_6 = arith.constant 0 : index
    %c0_7 = arith.constant 0 : index
    %7 = vector.load %arg4[%c0_5, %c0_6, %c0_7] : memref<1x4x1xf32, #tpu.memory_space<vmem>>, vector<1x4x1xf32>
    %8 = vector.shape_cast %7 : vector<1x4x1xf32> to vector<4x1xf32>
    %9 = vector.broadcast %8 : vector<4x1xf32> to vector<4x256xf32>
    %10 = arith.addf %6, %9 : vector<4x256xf32>
    %cst = arith.constant 0.000000e+00 : f32
    %11 = vector.broadcast %cst : f32 to vector<4x256xf32>
    %12 = arith.maximumf %10, %11 : vector<4x256xf32>
    %c0_8 = arith.constant 0 : index
    %c0_9 = arith.constant 0 : index
    %13 = vector.load %arg1[%c0_8, %c0_9] : memref<2x256xi32, #tpu.memory_space<vmem>>, vector<2x256xi32>
    %14 = vector.extract_strided_slice %13 {offsets = [0, 0], sizes = [1, 256], strides = [1, 1]} : vector<2x256xi32> to vector<1x256xi32>
    %15 = vector.extract_strided_slice %13 {offsets = [1, 0], sizes = [1, 256], strides = [1, 1]} : vector<2x256xi32> to vector<1x256xi32>
    %cst_10 = arith.constant 0.000000e+00 : f32
    %16 = vector.broadcast %cst_10 : f32 to vector<4x256xf32>
    %17 = vector.extract_strided_slice %12 {offsets = [0, 239], sizes = [4, 17], strides = [1, 1]} : vector<4x256xf32> to vector<4x17xf32>
    %18 = vector.extract_strided_slice %12 {offsets = [0, 0], sizes = [4, 239], strides = [1, 1]} : vector<4x256xf32> to vector<4x239xf32>
    %19 = tpu.concatenate %17, %18 in 1 : vector<4x17xf32>, vector<4x239xf32> -> vector<4x256xf32>
    %c-1_i32 = arith.constant -1 : i32
    %20 = vector.broadcast %c-1_i32 : i32 to vector<1x256xi32>
    %21 = arith.addi %14, %20 : vector<1x256xi32>
    %c0_i32 = arith.constant 0 : i32
    %22 = vector.broadcast %c0_i32 : i32 to vector<1x256xi32>
    %23 = arith.cmpi sge, %21, %22 : vector<1x256xi32>
    %c-1_i32_11 = arith.constant -1 : i32
    %24 = vector.broadcast %c-1_i32_11 : i32 to vector<1x256xi32>
    %25 = arith.addi %14, %24 : vector<1x256xi32>
    %c16_i32 = arith.constant 16 : i32
    %26 = vector.broadcast %c16_i32 : i32 to vector<1x256xi32>
    %27 = arith.cmpi slt, %25, %26 : vector<1x256xi32>
    %28 = arith.andi %23, %27 : vector<1x256xi1>
    %c-1_i32_12 = arith.constant -1 : i32
    %29 = vector.broadcast %c-1_i32_12 : i32 to vector<1x256xi32>
    %30 = arith.addi %15, %29 : vector<1x256xi32>
    %c0_i32_13 = arith.constant 0 : i32
    %31 = vector.broadcast %c0_i32_13 : i32 to vector<1x256xi32>
    %32 = arith.cmpi sge, %30, %31 : vector<1x256xi32>
    %33 = arith.andi %28, %32 : vector<1x256xi1>
    %c-1_i32_14 = arith.constant -1 : i32
    %34 = vector.broadcast %c-1_i32_14 : i32 to vector<1x256xi32>
    %35 = arith.addi %15, %34 : vector<1x256xi32>
    %c16_i32_15 = arith.constant 16 : i32
    %36 = vector.broadcast %c16_i32_15 : i32 to vector<1x256xi32>
    %37 = arith.cmpi slt, %35, %36 : vector<1x256xi32>
    %38 = arith.andi %33, %37 : vector<1x256xi1>
    %cst_16 = arith.constant 0.000000e+00 : f32
    %39 = vector.shape_cast %38 : vector<1x256xi1> to vector<1x256xi1>
    %40 = vector.broadcast %39 : vector<1x256xi1> to vector<4x256xi1>
    %41 = vector.broadcast %cst_16 : f32 to vector<4x256xf32>
    %42 = arith.select %40, %19, %41 : vector<4x256xi1>, vector<4x256xf32>
    %43 = arith.truncf %42 : vector<4x256xf32> to vector<4x256xbf16>
    %c0_17 = arith.constant 0 : index
    %c0_18 = arith.constant 0 : index
    %c0_19 = arith.constant 0 : index
    %44 = vector.load %arg5[%c0_17, %c0_18, %c0_19] : memref<9x4x4xbf16, #tpu.memory_space<vmem>>, vector<1x4x4xbf16>
    %45 = vector.shape_cast %44 : vector<1x4x4xbf16> to vector<4x4xbf16>
    %cst_20 = arith.constant dense<0.000000e+00> : vector<4x256xf32>
    %46 = tpu.matmul %45, %43, %cst_20 {dimension_numbers = #tpu.dot_dimension_numbers<[1], [0], [0], [1], [0, 0, 1, 1], [], []>} : vector<4x4xbf16>, vector<4x256xbf16>, vector<4x256xf32> -> vector<4x256xf32>
    %47 = arith.addf %16, %46 : vector<4x256xf32>
    %48 = vector.extract_strided_slice %12 {offsets = [0, 240], sizes = [4, 16], strides = [1, 1]} : vector<4x256xf32> to vector<4x16xf32>
    %49 = vector.extract_strided_slice %12 {offsets = [0, 0], sizes = [4, 240], strides = [1, 1]} : vector<4x256xf32> to vector<4x240xf32>
    %50 = tpu.concatenate %48, %49 in 1 : vector<4x16xf32>, vector<4x240xf32> -> vector<4x256xf32>
    %c-1_i32_21 = arith.constant -1 : i32
    %51 = vector.broadcast %c-1_i32_21 : i32 to vector<1x256xi32>
    %52 = arith.addi %14, %51 : vector<1x256xi32>
    %c0_i32_22 = arith.constant 0 : i32
    %53 = vector.broadcast %c0_i32_22 : i32 to vector<1x256xi32>
    %54 = arith.cmpi sge, %52, %53 : vector<1x256xi32>
    %c-1_i32_23 = arith.constant -1 : i32
    %55 = vector.broadcast %c-1_i32_23 : i32 to vector<1x256xi32>
    %56 = arith.addi %14, %55 : vector<1x256xi32>
    %c16_i32_24 = arith.constant 16 : i32
    %57 = vector.broadcast %c16_i32_24 : i32 to vector<1x256xi32>
    %58 = arith.cmpi slt, %56, %57 : vector<1x256xi32>
    %59 = arith.andi %54, %58 : vector<1x256xi1>
    %c0_i32_25 = arith.constant 0 : i32
    %60 = vector.broadcast %c0_i32_25 : i32 to vector<1x256xi32>
    %61 = arith.addi %15, %60 : vector<1x256xi32>
    %c0_i32_26 = arith.constant 0 : i32
    %62 = vector.broadcast %c0_i32_26 : i32 to vector<1x256xi32>
    %63 = arith.cmpi sge, %61, %62 : vector<1x256xi32>
    %64 = arith.andi %59, %63 : vector<1x256xi1>
    %c0_i32_27 = arith.constant 0 : i32
    %65 = vector.broadcast %c0_i32_27 : i32 to vector<1x256xi32>
    %66 = arith.addi %15, %65 : vector<1x256xi32>
    %c16_i32_28 = arith.constant 16 : i32
    %67 = vector.broadcast %c16_i32_28 : i32 to vector<1x256xi32>
    %68 = arith.cmpi slt, %66, %67 : vector<1x256xi32>
    %69 = arith.andi %64, %68 : vector<1x256xi1>
    %cst_29 = arith.constant 0.000000e+00 : f32
    %70 = vector.shape_cast %69 : vector<1x256xi1> to vector<1x256xi1>
    %71 = vector.broadcast %70 : vector<1x256xi1> to vector<4x256xi1>
    %72 = vector.broadcast %cst_29 : f32 to vector<4x256xf32>
    %73 = arith.select %71, %50, %72 : vector<4x256xi1>, vector<4x256xf32>
    %74 = arith.truncf %73 : vector<4x256xf32> to vector<4x256xbf16>
    %c1 = arith.constant 1 : index
    %c0_30 = arith.constant 0 : index
    %c0_31 = arith.constant 0 : index
    %75 = vector.load %arg5[%c1, %c0_30, %c0_31] : memref<9x4x4xbf16, #tpu.memory_space<vmem>>, vector<1x4x4xbf16>
    %76 = vector.shape_cast %75 : vector<1x4x4xbf16> to vector<4x4xbf16>
    %cst_32 = arith.constant dense<0.000000e+00> : vector<4x256xf32>
    %77 = tpu.matmul %76, %74, %cst_32 {dimension_numbers = #tpu.dot_dimension_numbers<[1], [0], [0], [1], [0, 0, 1, 1], [], []>} : vector<4x4xbf16>, vector<4x256xbf16>, vector<4x256xf32> -> vector<4x256xf32>
    %78 = arith.addf %47, %77 : vector<4x256xf32>
    %79 = vector.extract_strided_slice %12 {offsets = [0, 241], sizes = [4, 15], strides = [1, 1]} : vector<4x256xf32> to vector<4x15xf32>
    %80 = vector.extract_strided_slice %12 {offsets = [0, 0], sizes = [4, 241], strides = [1, 1]} : vector<4x256xf32> to vector<4x241xf32>
    %81 = tpu.concatenate %79, %80 in 1 : vector<4x15xf32>, vector<4x241xf32> -> vector<4x256xf32>
    %c-1_i32_33 = arith.constant -1 : i32
    %82 = vector.broadcast %c-1_i32_33 : i32 to vector<1x256xi32>
    %83 = arith.addi %14, %82 : vector<1x256xi32>
    %c0_i32_34 = arith.constant 0 : i32
    %84 = vector.broadcast %c0_i32_34 : i32 to vector<1x256xi32>
    %85 = arith.cmpi sge, %83, %84 : vector<1x256xi32>
    %c-1_i32_35 = arith.constant -1 : i32
    %86 = vector.broadcast %c-1_i32_35 : i32 to vector<1x256xi32>
    %87 = arith.addi %14, %86 : vector<1x256xi32>
    %c16_i32_36 = arith.constant 16 : i32
    %88 = vector.broadcast %c16_i32_36 : i32 to vector<1x256xi32>
    %89 = arith.cmpi slt, %87, %88 : vector<1x256xi32>
    %90 = arith.andi %85, %89 : vector<1x256xi1>
    %c1_i32 = arith.constant 1 : i32
    %91 = vector.broadcast %c1_i32 : i32 to vector<1x256xi32>
    %92 = arith.addi %15, %91 : vector<1x256xi32>
    %c0_i32_37 = arith.constant 0 : i32
    %93 = vector.broadcast %c0_i32_37 : i32 to vector<1x256xi32>
    %94 = arith.cmpi sge, %92, %93 : vector<1x256xi32>
    %95 = arith.andi %90, %94 : vector<1x256xi1>
    %c1_i32_38 = arith.constant 1 : i32
    %96 = vector.broadcast %c1_i32_38 : i32 to vector<1x256xi32>
    %97 = arith.addi %15, %96 : vector<1x256xi32>
    %c16_i32_39 = arith.constant 16 : i32
    %98 = vector.broadcast %c16_i32_39 : i32 to vector<1x256xi32>
    %99 = arith.cmpi slt, %97, %98 : vector<1x256xi32>
    %100 = arith.andi %95, %99 : vector<1x256xi1>
    %cst_40 = arith.constant 0.000000e+00 : f32
    %101 = vector.shape_cast %100 : vector<1x256xi1> to vector<1x256xi1>
    %102 = vector.broadcast %101 : vector<1x256xi1> to vector<4x256xi1>
    %103 = vector.broadcast %cst_40 : f32 to vector<4x256xf32>
    %104 = arith.select %102, %81, %103 : vector<4x256xi1>, vector<4x256xf32>
    %105 = arith.truncf %104 : vector<4x256xf32> to vector<4x256xbf16>
    %c2 = arith.constant 2 : index
    %c0_41 = arith.constant 0 : index
    %c0_42 = arith.constant 0 : index
    %106 = vector.load %arg5[%c2, %c0_41, %c0_42] : memref<9x4x4xbf16, #tpu.memory_space<vmem>>, vector<1x4x4xbf16>
    %107 = vector.shape_cast %106 : vector<1x4x4xbf16> to vector<4x4xbf16>
    %cst_43 = arith.constant dense<0.000000e+00> : vector<4x256xf32>
    %108 = tpu.matmul %107, %105, %cst_43 {dimension_numbers = #tpu.dot_dimension_numbers<[1], [0], [0], [1], [0, 0, 1, 1], [], []>} : vector<4x4xbf16>, vector<4x256xbf16>, vector<4x256xf32> -> vector<4x256xf32>
    %109 = arith.addf %78, %108 : vector<4x256xf32>
    %110 = vector.extract_strided_slice %12 {offsets = [0, 255], sizes = [4, 1], strides = [1, 1]} : vector<4x256xf32> to vector<4x1xf32>
    %111 = vector.extract_strided_slice %12 {offsets = [0, 0], sizes = [4, 255], strides = [1, 1]} : vector<4x256xf32> to vector<4x255xf32>
    %112 = tpu.concatenate %110, %111 in 1 : vector<4x1xf32>, vector<4x255xf32> -> vector<4x256xf32>
    %c0_i32_44 = arith.constant 0 : i32
    %113 = vector.broadcast %c0_i32_44 : i32 to vector<1x256xi32>
    %114 = arith.addi %14, %113 : vector<1x256xi32>
    %c0_i32_45 = arith.constant 0 : i32
    %115 = vector.broadcast %c0_i32_45 : i32 to vector<1x256xi32>
    %116 = arith.cmpi sge, %114, %115 : vector<1x256xi32>
    %c0_i32_46 = arith.constant 0 : i32
    %117 = vector.broadcast %c0_i32_46 : i32 to vector<1x256xi32>
    %118 = arith.addi %14, %117 : vector<1x256xi32>
    %c16_i32_47 = arith.constant 16 : i32
    %119 = vector.broadcast %c16_i32_47 : i32 to vector<1x256xi32>
    %120 = arith.cmpi slt, %118, %119 : vector<1x256xi32>
    %121 = arith.andi %116, %120 : vector<1x256xi1>
    %c-1_i32_48 = arith.constant -1 : i32
    %122 = vector.broadcast %c-1_i32_48 : i32 to vector<1x256xi32>
    %123 = arith.addi %15, %122 : vector<1x256xi32>
    %c0_i32_49 = arith.constant 0 : i32
    %124 = vector.broadcast %c0_i32_49 : i32 to vector<1x256xi32>
    %125 = arith.cmpi sge, %123, %124 : vector<1x256xi32>
    %126 = arith.andi %121, %125 : vector<1x256xi1>
    %c-1_i32_50 = arith.constant -1 : i32
    %127 = vector.broadcast %c-1_i32_50 : i32 to vector<1x256xi32>
    %128 = arith.addi %15, %127 : vector<1x256xi32>
    %c16_i32_51 = arith.constant 16 : i32
    %129 = vector.broadcast %c16_i32_51 : i32 to vector<1x256xi32>
    %130 = arith.cmpi slt, %128, %129 : vector<1x256xi32>
    %131 = arith.andi %126, %130 : vector<1x256xi1>
    %cst_52 = arith.constant 0.000000e+00 : f32
    %132 = vector.shape_cast %131 : vector<1x256xi1> to vector<1x256xi1>
    %133 = vector.broadcast %132 : vector<1x256xi1> to vector<4x256xi1>
    %134 = vector.broadcast %cst_52 : f32 to vector<4x256xf32>
    %135 = arith.select %133, %112, %134 : vector<4x256xi1>, vector<4x256xf32>
    %136 = arith.truncf %135 : vector<4x256xf32> to vector<4x256xbf16>
    %c3 = arith.constant 3 : index
    %c0_53 = arith.constant 0 : index
    %c0_54 = arith.constant 0 : index
    %137 = vector.load %arg5[%c3, %c0_53, %c0_54] : memref<9x4x4xbf16, #tpu.memory_space<vmem>>, vector<1x4x4xbf16>
    %138 = vector.shape_cast %137 : vector<1x4x4xbf16> to vector<4x4xbf16>
    %cst_55 = arith.constant dense<0.000000e+00> : vector<4x256xf32>
    %139 = tpu.matmul %138, %136, %cst_55 {dimension_numbers = #tpu.dot_dimension_numbers<[1], [0], [0], [1], [0, 0, 1, 1], [], []>} : vector<4x4xbf16>, vector<4x256xbf16>, vector<4x256xf32> -> vector<4x256xf32>
    %140 = arith.addf %109, %139 : vector<4x256xf32>
    %c0_i32_56 = arith.constant 0 : i32
    %141 = vector.broadcast %c0_i32_56 : i32 to vector<1x256xi32>
    %142 = arith.addi %14, %141 : vector<1x256xi32>
    %c0_i32_57 = arith.constant 0 : i32
    %143 = vector.broadcast %c0_i32_57 : i32 to vector<1x256xi32>
    %144 = arith.cmpi sge, %142, %143 : vector<1x256xi32>
    %c0_i32_58 = arith.constant 0 : i32
    %145 = vector.broadcast %c0_i32_58 : i32 to vector<1x256xi32>
    %146 = arith.addi %14, %145 : vector<1x256xi32>
    %c16_i32_59 = arith.constant 16 : i32
    %147 = vector.broadcast %c16_i32_59 : i32 to vector<1x256xi32>
    %148 = arith.cmpi slt, %146, %147 : vector<1x256xi32>
    %149 = arith.andi %144, %148 : vector<1x256xi1>
    %c0_i32_60 = arith.constant 0 : i32
    %150 = vector.broadcast %c0_i32_60 : i32 to vector<1x256xi32>
    %151 = arith.addi %15, %150 : vector<1x256xi32>
    %c0_i32_61 = arith.constant 0 : i32
    %152 = vector.broadcast %c0_i32_61 : i32 to vector<1x256xi32>
    %153 = arith.cmpi sge, %151, %152 : vector<1x256xi32>
    %154 = arith.andi %149, %153 : vector<1x256xi1>
    %c0_i32_62 = arith.constant 0 : i32
    %155 = vector.broadcast %c0_i32_62 : i32 to vector<1x256xi32>
    %156 = arith.addi %15, %155 : vector<1x256xi32>
    %c16_i32_63 = arith.constant 16 : i32
    %157 = vector.broadcast %c16_i32_63 : i32 to vector<1x256xi32>
    %158 = arith.cmpi slt, %156, %157 : vector<1x256xi32>
    %159 = arith.andi %154, %158 : vector<1x256xi1>
    %cst_64 = arith.constant 0.000000e+00 : f32
    %160 = vector.shape_cast %159 : vector<1x256xi1> to vector<1x256xi1>
    %161 = vector.broadcast %160 : vector<1x256xi1> to vector<4x256xi1>
    %162 = vector.broadcast %cst_64 : f32 to vector<4x256xf32>
    %163 = arith.select %161, %12, %162 : vector<4x256xi1>, vector<4x256xf32>
    %164 = arith.truncf %163 : vector<4x256xf32> to vector<4x256xbf16>
    %c4 = arith.constant 4 : index
    %c0_65 = arith.constant 0 : index
    %c0_66 = arith.constant 0 : index
    %165 = vector.load %arg5[%c4, %c0_65, %c0_66] : memref<9x4x4xbf16, #tpu.memory_space<vmem>>, vector<1x4x4xbf16>
    %166 = vector.shape_cast %165 : vector<1x4x4xbf16> to vector<4x4xbf16>
    %cst_67 = arith.constant dense<0.000000e+00> : vector<4x256xf32>
    %167 = tpu.matmul %166, %164, %cst_67 {dimension_numbers = #tpu.dot_dimension_numbers<[1], [0], [0], [1], [0, 0, 1, 1], [], []>} : vector<4x4xbf16>, vector<4x256xbf16>, vector<4x256xf32> -> vector<4x256xf32>
    %168 = arith.addf %140, %167 : vector<4x256xf32>
    %169 = vector.extract_strided_slice %12 {offsets = [0, 1], sizes = [4, 255], strides = [1, 1]} : vector<4x256xf32> to vector<4x255xf32>
    %170 = vector.extract_strided_slice %12 {offsets = [0, 0], sizes = [4, 1], strides = [1, 1]} : vector<4x256xf32> to vector<4x1xf32>
    %171 = tpu.concatenate %169, %170 in 1 : vector<4x255xf32>, vector<4x1xf32> -> vector<4x256xf32>
    %c0_i32_68 = arith.constant 0 : i32
    %172 = vector.broadcast %c0_i32_68 : i32 to vector<1x256xi32>
    %173 = arith.addi %14, %172 : vector<1x256xi32>
    %c0_i32_69 = arith.constant 0 : i32
    %174 = vector.broadcast %c0_i32_69 : i32 to vector<1x256xi32>
    %175 = arith.cmpi sge, %173, %174 : vector<1x256xi32>
    %c0_i32_70 = arith.constant 0 : i32
    %176 = vector.broadcast %c0_i32_70 : i32 to vector<1x256xi32>
    %177 = arith.addi %14, %176 : vector<1x256xi32>
    %c16_i32_71 = arith.constant 16 : i32
    %178 = vector.broadcast %c16_i32_71 : i32 to vector<1x256xi32>
    %179 = arith.cmpi slt, %177, %178 : vector<1x256xi32>
    %180 = arith.andi %175, %179 : vector<1x256xi1>
    %c1_i32_72 = arith.constant 1 : i32
    %181 = vector.broadcast %c1_i32_72 : i32 to vector<1x256xi32>
    %182 = arith.addi %15, %181 : vector<1x256xi32>
    %c0_i32_73 = arith.constant 0 : i32
    %183 = vector.broadcast %c0_i32_73 : i32 to vector<1x256xi32>
    %184 = arith.cmpi sge, %182, %183 : vector<1x256xi32>
    %185 = arith.andi %180, %184 : vector<1x256xi1>
    %c1_i32_74 = arith.constant 1 : i32
    %186 = vector.broadcast %c1_i32_74 : i32 to vector<1x256xi32>
    %187 = arith.addi %15, %186 : vector<1x256xi32>
    %c16_i32_75 = arith.constant 16 : i32
    %188 = vector.broadcast %c16_i32_75 : i32 to vector<1x256xi32>
    %189 = arith.cmpi slt, %187, %188 : vector<1x256xi32>
    %190 = arith.andi %185, %189 : vector<1x256xi1>
    %cst_76 = arith.constant 0.000000e+00 : f32
    %191 = vector.shape_cast %190 : vector<1x256xi1> to vector<1x256xi1>
    %192 = vector.broadcast %191 : vector<1x256xi1> to vector<4x256xi1>
    %193 = vector.broadcast %cst_76 : f32 to vector<4x256xf32>
    %194 = arith.select %192, %171, %193 : vector<4x256xi1>, vector<4x256xf32>
    %195 = arith.truncf %194 : vector<4x256xf32> to vector<4x256xbf16>
    %c5 = arith.constant 5 : index
    %c0_77 = arith.constant 0 : index
    %c0_78 = arith.constant 0 : index
    %196 = vector.load %arg5[%c5, %c0_77, %c0_78] : memref<9x4x4xbf16, #tpu.memory_space<vmem>>, vector<1x4x4xbf16>
    %197 = vector.shape_cast %196 : vector<1x4x4xbf16> to vector<4x4xbf16>
    %cst_79 = arith.constant dense<0.000000e+00> : vector<4x256xf32>
    %198 = tpu.matmul %197, %195, %cst_79 {dimension_numbers = #tpu.dot_dimension_numbers<[1], [0], [0], [1], [0, 0, 1, 1], [], []>} : vector<4x4xbf16>, vector<4x256xbf16>, vector<4x256xf32> -> vector<4x256xf32>
    %199 = arith.addf %168, %198 : vector<4x256xf32>
    %200 = vector.extract_strided_slice %12 {offsets = [0, 15], sizes = [4, 241], strides = [1, 1]} : vector<4x256xf32> to vector<4x241xf32>
    %201 = vector.extract_strided_slice %12 {offsets = [0, 0], sizes = [4, 15], strides = [1, 1]} : vector<4x256xf32> to vector<4x15xf32>
    %202 = tpu.concatenate %200, %201 in 1 : vector<4x241xf32>, vector<4x15xf32> -> vector<4x256xf32>
    %c1_i32_80 = arith.constant 1 : i32
    %203 = vector.broadcast %c1_i32_80 : i32 to vector<1x256xi32>
    %204 = arith.addi %14, %203 : vector<1x256xi32>
    %c0_i32_81 = arith.constant 0 : i32
    %205 = vector.broadcast %c0_i32_81 : i32 to vector<1x256xi32>
    %206 = arith.cmpi sge, %204, %205 : vector<1x256xi32>
    %c1_i32_82 = arith.constant 1 : i32
    %207 = vector.broadcast %c1_i32_82 : i32 to vector<1x256xi32>
    %208 = arith.addi %14, %207 : vector<1x256xi32>
    %c16_i32_83 = arith.constant 16 : i32
    %209 = vector.broadcast %c16_i32_83 : i32 to vector<1x256xi32>
    %210 = arith.cmpi slt, %208, %209 : vector<1x256xi32>
    %211 = arith.andi %206, %210 : vector<1x256xi1>
    %c-1_i32_84 = arith.constant -1 : i32
    %212 = vector.broadcast %c-1_i32_84 : i32 to vector<1x256xi32>
    %213 = arith.addi %15, %212 : vector<1x256xi32>
    %c0_i32_85 = arith.constant 0 : i32
    %214 = vector.broadcast %c0_i32_85 : i32 to vector<1x256xi32>
    %215 = arith.cmpi sge, %213, %214 : vector<1x256xi32>
    %216 = arith.andi %211, %215 : vector<1x256xi1>
    %c-1_i32_86 = arith.constant -1 : i32
    %217 = vector.broadcast %c-1_i32_86 : i32 to vector<1x256xi32>
    %218 = arith.addi %15, %217 : vector<1x256xi32>
    %c16_i32_87 = arith.constant 16 : i32
    %219 = vector.broadcast %c16_i32_87 : i32 to vector<1x256xi32>
    %220 = arith.cmpi slt, %218, %219 : vector<1x256xi32>
    %221 = arith.andi %216, %220 : vector<1x256xi1>
    %cst_88 = arith.constant 0.000000e+00 : f32
    %222 = vector.shape_cast %221 : vector<1x256xi1> to vector<1x256xi1>
    %223 = vector.broadcast %222 : vector<1x256xi1> to vector<4x256xi1>
    %224 = vector.broadcast %cst_88 : f32 to vector<4x256xf32>
    %225 = arith.select %223, %202, %224 : vector<4x256xi1>, vector<4x256xf32>
    %226 = arith.truncf %225 : vector<4x256xf32> to vector<4x256xbf16>
    %c6 = arith.constant 6 : index
    %c0_89 = arith.constant 0 : index
    %c0_90 = arith.constant 0 : index
    %227 = vector.load %arg5[%c6, %c0_89, %c0_90] : memref<9x4x4xbf16, #tpu.memory_space<vmem>>, vector<1x4x4xbf16>
    %228 = vector.shape_cast %227 : vector<1x4x4xbf16> to vector<4x4xbf16>
    %cst_91 = arith.constant dense<0.000000e+00> : vector<4x256xf32>
    %229 = tpu.matmul %228, %226, %cst_91 {dimension_numbers = #tpu.dot_dimension_numbers<[1], [0], [0], [1], [0, 0, 1, 1], [], []>} : vector<4x4xbf16>, vector<4x256xbf16>, vector<4x256xf32> -> vector<4x256xf32>
    %230 = arith.addf %199, %229 : vector<4x256xf32>
    %231 = vector.extract_strided_slice %12 {offsets = [0, 16], sizes = [4, 240], strides = [1, 1]} : vector<4x256xf32> to vector<4x240xf32>
    %232 = vector.extract_strided_slice %12 {offsets = [0, 0], sizes = [4, 16], strides = [1, 1]} : vector<4x256xf32> to vector<4x16xf32>
    %233 = tpu.concatenate %231, %232 in 1 : vector<4x240xf32>, vector<4x16xf32> -> vector<4x256xf32>
    %c1_i32_92 = arith.constant 1 : i32
    %234 = vector.broadcast %c1_i32_92 : i32 to vector<1x256xi32>
    %235 = arith.addi %14, %234 : vector<1x256xi32>
    %c0_i32_93 = arith.constant 0 : i32
    %236 = vector.broadcast %c0_i32_93 : i32 to vector<1x256xi32>
    %237 = arith.cmpi sge, %235, %236 : vector<1x256xi32>
    %c1_i32_94 = arith.constant 1 : i32
    %238 = vector.broadcast %c1_i32_94 : i32 to vector<1x256xi32>
    %239 = arith.addi %14, %238 : vector<1x256xi32>
    %c16_i32_95 = arith.constant 16 : i32
    %240 = vector.broadcast %c16_i32_95 : i32 to vector<1x256xi32>
    %241 = arith.cmpi slt, %239, %240 : vector<1x256xi32>
    %242 = arith.andi %237, %241 : vector<1x256xi1>
    %c0_i32_96 = arith.constant 0 : i32
    %243 = vector.broadcast %c0_i32_96 : i32 to vector<1x256xi32>
    %244 = arith.addi %15, %243 : vector<1x256xi32>
    %c0_i32_97 = arith.constant 0 : i32
    %245 = vector.broadcast %c0_i32_97 : i32 to vector<1x256xi32>
    %246 = arith.cmpi sge, %244, %245 : vector<1x256xi32>
    %247 = arith.andi %242, %246 : vector<1x256xi1>
    %c0_i32_98 = arith.constant 0 : i32
    %248 = vector.broadcast %c0_i32_98 : i32 to vector<1x256xi32>
    %249 = arith.addi %15, %248 : vector<1x256xi32>
    %c16_i32_99 = arith.constant 16 : i32
    %250 = vector.broadcast %c16_i32_99 : i32 to vector<1x256xi32>
    %251 = arith.cmpi slt, %249, %250 : vector<1x256xi32>
    %252 = arith.andi %247, %251 : vector<1x256xi1>
    %cst_100 = arith.constant 0.000000e+00 : f32
    %253 = vector.shape_cast %252 : vector<1x256xi1> to vector<1x256xi1>
    %254 = vector.broadcast %253 : vector<1x256xi1> to vector<4x256xi1>
    %255 = vector.broadcast %cst_100 : f32 to vector<4x256xf32>
    %256 = arith.select %254, %233, %255 : vector<4x256xi1>, vector<4x256xf32>
    %257 = arith.truncf %256 : vector<4x256xf32> to vector<4x256xbf16>
    %c7 = arith.constant 7 : index
    %c0_101 = arith.constant 0 : index
    %c0_102 = arith.constant 0 : index
    %258 = vector.load %arg5[%c7, %c0_101, %c0_102] : memref<9x4x4xbf16, #tpu.memory_space<vmem>>, vector<1x4x4xbf16>
    %259 = vector.shape_cast %258 : vector<1x4x4xbf16> to vector<4x4xbf16>
    %cst_103 = arith.constant dense<0.000000e+00> : vector<4x256xf32>
    %260 = tpu.matmul %259, %257, %cst_103 {dimension_numbers = #tpu.dot_dimension_numbers<[1], [0], [0], [1], [0, 0, 1, 1], [], []>} : vector<4x4xbf16>, vector<4x256xbf16>, vector<4x256xf32> -> vector<4x256xf32>
    %261 = arith.addf %230, %260 : vector<4x256xf32>
    %262 = vector.extract_strided_slice %12 {offsets = [0, 17], sizes = [4, 239], strides = [1, 1]} : vector<4x256xf32> to vector<4x239xf32>
    %263 = vector.extract_strided_slice %12 {offsets = [0, 0], sizes = [4, 17], strides = [1, 1]} : vector<4x256xf32> to vector<4x17xf32>
    %264 = tpu.concatenate %262, %263 in 1 : vector<4x239xf32>, vector<4x17xf32> -> vector<4x256xf32>
    %c1_i32_104 = arith.constant 1 : i32
    %265 = vector.broadcast %c1_i32_104 : i32 to vector<1x256xi32>
    %266 = arith.addi %14, %265 : vector<1x256xi32>
    %c0_i32_105 = arith.constant 0 : i32
    %267 = vector.broadcast %c0_i32_105 : i32 to vector<1x256xi32>
    %268 = arith.cmpi sge, %266, %267 : vector<1x256xi32>
    %c1_i32_106 = arith.constant 1 : i32
    %269 = vector.broadcast %c1_i32_106 : i32 to vector<1x256xi32>
    %270 = arith.addi %14, %269 : vector<1x256xi32>
    %c16_i32_107 = arith.constant 16 : i32
    %271 = vector.broadcast %c16_i32_107 : i32 to vector<1x256xi32>
    %272 = arith.cmpi slt, %270, %271 : vector<1x256xi32>
    %273 = arith.andi %268, %272 : vector<1x256xi1>
    %c1_i32_108 = arith.constant 1 : i32
    %274 = vector.broadcast %c1_i32_108 : i32 to vector<1x256xi32>
    %275 = arith.addi %15, %274 : vector<1x256xi32>
    %c0_i32_109 = arith.constant 0 : i32
    %276 = vector.broadcast %c0_i32_109 : i32 to vector<1x256xi32>
    %277 = arith.cmpi sge, %275, %276 : vector<1x256xi32>
    %278 = arith.andi %273, %277 : vector<1x256xi1>
    %c1_i32_110 = arith.constant 1 : i32
    %279 = vector.broadcast %c1_i32_110 : i32 to vector<1x256xi32>
    %280 = arith.addi %15, %279 : vector<1x256xi32>
    %c16_i32_111 = arith.constant 16 : i32
    %281 = vector.broadcast %c16_i32_111 : i32 to vector<1x256xi32>
    %282 = arith.cmpi slt, %280, %281 : vector<1x256xi32>
    %283 = arith.andi %278, %282 : vector<1x256xi1>
    %cst_112 = arith.constant 0.000000e+00 : f32
    %284 = vector.shape_cast %283 : vector<1x256xi1> to vector<1x256xi1>
    %285 = vector.broadcast %284 : vector<1x256xi1> to vector<4x256xi1>
    %286 = vector.broadcast %cst_112 : f32 to vector<4x256xf32>
    %287 = arith.select %285, %264, %286 : vector<4x256xi1>, vector<4x256xf32>
    %288 = arith.truncf %287 : vector<4x256xf32> to vector<4x256xbf16>
    %c8 = arith.constant 8 : index
    %c0_113 = arith.constant 0 : index
    %c0_114 = arith.constant 0 : index
    %289 = vector.load %arg5[%c8, %c0_113, %c0_114] : memref<9x4x4xbf16, #tpu.memory_space<vmem>>, vector<1x4x4xbf16>
    %290 = vector.shape_cast %289 : vector<1x4x4xbf16> to vector<4x4xbf16>
    %cst_115 = arith.constant dense<0.000000e+00> : vector<4x256xf32>
    %291 = tpu.matmul %290, %288, %cst_115 {dimension_numbers = #tpu.dot_dimension_numbers<[1], [0], [0], [1], [0, 0, 1, 1], [], []>} : vector<4x4xbf16>, vector<4x256xbf16>, vector<4x256xf32> -> vector<4x256xf32>
    %292 = arith.addf %261, %291 : vector<4x256xf32>
    %293 = arith.truncf %292 : vector<4x256xf32> to vector<4x256xbf16>
    %c0_116 = arith.constant 0 : index
    %c0_117 = arith.constant 0 : index
    %c0_118 = arith.constant 0 : index
    %294 = vector.load %arg6[%c0_116, %c0_117, %c0_118] : memref<1x4x256xbf16, #tpu.memory_space<vmem>>, vector<1x4x256xbf16>
    %295 = vector.shape_cast %294 : vector<1x4x256xbf16> to vector<4x256xbf16>
    %296 = vector.shape_cast %293 : vector<4x256xbf16> to vector<1x4x256xbf16>
    tpu.vector_store %arg6[%c0_116, %c0_117, %c0_118], %296 {strides = array<i32>} : memref<1x4x256xbf16, #tpu.memory_space<vmem>>, vector<1x4x256xbf16>,
    %cst_119 = arith.constant dense<0.000000e+00> : vector<256xf32>
    %297 = vector.multi_reduction <add>, %292, %cst_119 [0] : vector<4x256xf32> to vector<256xf32>
    %298 = vector.shape_cast %297 : vector<256xf32> to vector<1x256xf32>
    %c0_120 = arith.constant 0 : index
    %c0_121 = arith.constant 0 : index
    %c0_122 = arith.constant 0 : index
    %299 = vector.load %arg7[%c0_120, %c0_121, %c0_122] : memref<1x1x256xf32, #tpu.memory_space<vmem>>, vector<1x1x256xf32>
    %300 = vector.shape_cast %299 : vector<1x1x256xf32> to vector<1x256xf32>
    %301 = vector.shape_cast %298 : vector<1x256xf32> to vector<1x1x256xf32>
    tpu.vector_store %arg7[%c0_120, %c0_121, %c0_122], %301 {strides = array<i32>} : memref<1x1x256xf32, #tpu.memory_space<vmem>>, vector<1x1x256xf32>,
    %302 = arith.mulf %292, %292 : vector<4x256xf32>
    %cst_123 = arith.constant dense<0.000000e+00> : vector<256xf32>
    %303 = vector.multi_reduction <add>, %302, %cst_123 [0] : vector<4x256xf32> to vector<256xf32>
    %304 = vector.shape_cast %303 : vector<256xf32> to vector<1x256xf32>
    %c0_124 = arith.constant 0 : index
    %c0_125 = arith.constant 0 : index
    %c0_126 = arith.constant 0 : index
    %305 = vector.load %arg8[%c0_124, %c0_125, %c0_126] : memref<1x1x256xf32, #tpu.memory_space<vmem>>, vector<1x1x256xf32>
    %306 = vector.shape_cast %305 : vector<1x1x256xf32> to vector<1x256xf32>
    %307 = vector.shape_cast %304 : vector<1x256xf32> to vector<1x1x256xf32>
    tpu.vector_store %arg8[%c0_124, %c0_125, %c0_126], %307 {strides = array<i32>} : memref<1x1x256xf32, #tpu.memory_space<vmem>>, vector<1x1x256xf32>,
    return
  }
  func.func @transform_0(%arg0: i32) -> (i32, i32) {
    %c0_i32 = arith.constant 0 : i32
    %c0_i32_0 = arith.constant 0 : i32
    %c0_i32_1 = arith.constant 0 : i32
    return %c0_i32, %c0_i32_0 : i32, i32
  }
  func.func @transform_1(%arg0: i32) -> (i32, i32, i32) {
    %c0_i32 = arith.constant 0 : i32
    %c0_i32_0 = arith.constant 0 : i32
    %c0_i32_1 = arith.constant 0 : i32
    return %arg0, %c0_i32, %c0_i32_0 : i32, i32, i32
  }
  func.func @transform_2(%arg0: i32) -> (i32, i32, i32) {
    %c0_i32 = arith.constant 0 : i32
    %c0_i32_0 = arith.constant 0 : i32
    %c0_i32_1 = arith.constant 0 : i32
    return %arg0, %c0_i32, %c0_i32_0 : i32, i32, i32
  }
  func.func @transform_3(%arg0: i32) -> (i32, i32, i32) {
    %c0_i32 = arith.constant 0 : i32
    %c0_i32_0 = arith.constant 0 : i32
    %c0_i32_1 = arith.constant 0 : i32
    return %arg0, %c0_i32, %c0_i32_0 : i32, i32, i32
  }
  func.func @transform_4(%arg0: i32) -> (i32, i32, i32) {
    %c0_i32 = arith.constant 0 : i32
    %c0_i32_0 = arith.constant 0 : i32
    %c0_i32_1 = arith.constant 0 : i32
    %c0_i32_2 = arith.constant 0 : i32
    return %c0_i32, %c0_i32_0, %c0_i32_1 : i32, i32, i32
  }
  func.func @transform_5(%arg0: i32) -> (i32, i32, i32) {
    %c0_i32 = arith.constant 0 : i32
    %c0_i32_0 = arith.constant 0 : i32
    %c0_i32_1 = arith.constant 0 : i32
    return %arg0, %c0_i32, %c0_i32_0 : i32, i32, i32
  }
  func.func @transform_6(%arg0: i32) -> (i32, i32, i32) {
    %c0_i32 = arith.constant 0 : i32
    %c0_i32_0 = arith.constant 0 : i32
    %c0_i32_1 = arith.constant 0 : i32
    return %arg0, %c0_i32, %c0_i32_0 : i32, i32, i32
  }
  func.func @transform_7(%arg0: i32) -> (i32, i32, i32) {
    %c0_i32 = arith.constant 0 : i32
    %c0_i32_0 = arith.constant 0 : i32
    %c0_i32_1 = arith.constant 0 : i32
    return %arg0, %c0_i32, %c0_i32_0 : i32, i32, i32
  }
}

</mosaic_0001>

<bundles_post_ra>
// kernel: tpu_custom_call.1
= control target key start
LH: loop header
LB: loop body
LE: loop exit
PB: predicated region body
PF: predicated region fallthrough
CT: control target
= control target key end

     0   :  { %6 = vsyncpa [#allocation3], 0  ;;  %s128_s0 = inlined_call_operand.hbm [shape: f32[1,128], index: 0, kind: input, shape index: {}]   ;;  %s129_s1 = inlined_call_operand.hbm [shape: f32[1,128], index: 1, kind: output, shape index: {}]  }
   0x1   :  { %7 = vsyncpa [#allocation4], 0  ;;  %s91_s6 = smov [#allocation2]   ;;  %s43_s10 = scalar_lea.hbm %s128_s0, 16 }
   0x2   :  { %s14_s7 = sshll.u32 %s91_s6, 4  ;;  %p44_p0 = scmp.ne.s32.totalorder %s128_s0, %s43_s10  ;;  %s15_s7 = int_to_ptr.vmem [resolvable:$true] %s14_s7 }
   0x3   :  { %p47_p1 = scmp.lt.u32.totalorder %s43_s10, %s128_s0 }
   0x5   :  { %p49_p2 = pnand %p47_p1, %p44_p0 }
   0x7   :  { %52 = shalt.err (!%p49_p2)
}
   0x8   :  { %s53_s15 = scalar_lea.vmem %s15_s7, 16  ;;  %s57_s16 = scalar_lea.vmem %s15_s7, 32 }
   0x9   :  { %p54_p3 = scmp.ne.s32.totalorder %s15_s7, %s53_s15  ;;  %p58_p4 = scmp.lt.s32.totalorder %s15_s7, %s15_s7 }
   0xa   :  { %p59_p5 = scmp.lt.s32.totalorder %s57_s16, %s53_s15 }
   0xc   :  { %p60_p6 = por %p59_p5, %p58_p4 }
   0xe   :  { %p61_p7 = pnand %p60_p6, %p54_p3 }
  0x10   :  { %64 = shalt.err (!%p61_p7)
}
  0x11   :  { %17 = dma.hbm_to_vmem [thread:$0]  %s128_s0, 16, %s15_s7, [#allocation3]  }
  0x12   :  { %87 = dma.done.wait [#allocation3], 16  }
  0x13   :  { %88 = vsyncadd [#allocation3], 4294967280  ;;  %v21_v0 = vld [vmem:[#allocation2] sm:$0x1]  ;;  %s92_s19 = smov 1   ;;  %s93_s20 = smov [#allocation5]  }
  0x14   :  { %22 = vrot.lane.b32.xlu0 %v21_v0, %s92_s19  ;;  %s31_s21 = sshll.u32 %s93_s20, 4  ;;  %s32_s21 = int_to_ptr.vmem [resolvable:$true] %s31_s21 }
  0x15   :  { %s65_s22 = scalar_lea.vmem %s32_s21, 16  ;;  %s69_s23 = scalar_lea.vmem %s32_s21, 32 }
  0x16   :  { %p66_p8 = scmp.ne.s32.totalorder %s32_s21, %s65_s22  ;;  %p70_p9 = scmp.lt.s32.totalorder %s32_s21, %s32_s21 }
  0x17   :  { %p71_p10 = scmp.lt.s32.totalorder %s69_s23, %s65_s22 }
  0x19   :  { %p72_p11 = por %p71_p10, %p70_p9 }
  0x1b   :  { %p73_p12 = pnand %p72_p11, %p66_p8 }
  0x86   :  { %v23_v1 = vpop.permute.xlu0 %22 }
  0x87   :  { %24 = vst [vmem:[#allocation5] sm:$0x1] %v23_v1 }
  0x88   :  { %76 = shalt.err (!%p73_p12)
}
  0x89   :  { %s77_s25 = scalar_lea.hbm %s129_s1, 16 }
  0x8a   :  { %p78_p13 = scmp.ne.s32.totalorder %s129_s1, %s77_s25  ;;  %p81_p0 = scmp.lt.u32.totalorder %s77_s25, %s129_s1 }
  0x8c   :  { %p83_p1 = pnand %p81_p0, %p78_p13 }
  0x8e   :  { %86 = shalt.err (!%p83_p1)
}
  0x8f   :  { %34 = dma.vmem_to_hbm [thread:$0]  %s32_s21, 16, %s129_s1, [#allocation4]  }
  0x90   :  { %89 = dma.done.wait [#allocation4], 16  }
  0x91   :  { %90 = vsyncadd [#allocation4], 4294967280 }
  0x92   :  { %38 = vsyncpa [#allocation3], 1 }
  0x93   :  { %39 = vsyncpa [#allocation4], 1 }

// kernel: basic_block_forward.6
= control target key start
LH: loop header
LB: loop body
LE: loop exit
PB: predicated region body
PF: predicated region fallthrough
CT: control target
= control target key end

     0   :  { %vm60_vm0 = vcmask 1043456   ;;  %v470_v0 = vmov 0.0   ;;  %vm471_vm1 = vmmov 0   ;;  %v300_v3 = vlaneseq  ;;  %s639_s1 = inlined_call_operand.vmem [shape: bf16[8,32], index: 1, kind: input, shape index: {}]   ;;  %s640_s5 = inlined_call_operand.vmem [shape: bf16[8,32], index: 5, kind: input, shape index: {}]   ;;  %s641_s0 = inlined_call_operand.vmem [shape: bf16[2,8], index: 0, kind: input, shape index: {}]   ;;  %s642_s11 = inlined_call_operand.vmem [shape: f32[2,1,256], index: 11, kind: input, shape index: {}]   ;;  %s643_s12 = inlined_call_operand.vmem [shape: f32[2,1,256], index: 12, kind: input, shape index: {}]   ;;  %s644_s3 = inlined_call_operand.vmem [shape: bf16[32,4], index: 3, kind: input, shape index: {}]   ;;  %s645_s7 = inlined_call_operand.vmem [shape: bf16[32,4], index: 7, kind: input, shape index: {}]   ;;  %s646_s2 = inlined_call_operand.vmem [shape: f32[1,32], index: 2, kind: input, shape index: {}]   ;;  %s647_s6 = inlined_call_operand.vmem [shape: f32[1,32], index: 6, kind: input, shape index: {}]   ;;  %s648_s4 = inlined_call_operand.vmem [shape: f32[1,4], index: 4, kind: input, shape index: {}]   ;;  %s649_s9 = inlined_call_operand.vmem [shape: f32[2,4], index: 9, kind: input, shape index: {}]   ;;  %s650_s8 = inlined_call_operand.vmem [shape: f32[1,4], index: 8, kind: input, shape index: {}]   ;;  %s651_s13 = inlined_call_operand.vmem [shape: f32[2,4], index: 13, kind: output, shape index: {0}]   ;;  %s652_s10 = inlined_call_operand.vmem [shape: f32[2,4], index: 10, kind: input, shape index: {}]   ;;  %s653_s14 = inlined_call_operand.vmem [shape: f32[2,4], index: 14, kind: output, shape index: {1}]  }
   0x1   :  { %428 = vmatprep.subr.bf16.mxu0 %v470_v0  ;;  %v48_v1 = vld [vmem:[%s639_s1] sm:$0xf]  ;;  %430 = vmatprep.mubr.msk.bf16.mxu0 %vm471_vm1, %v470_v0  ;;  %vm56_vm2 = vcmask 64512   ;;  %vm320_vm3 = vcmask 1040384   ;;  %v465_v37 = vld [vmem:[%s644_s3 + $0x8] sm:$0xff]   ;;  %vm129_vm4 = vcmask 261120  }
   0x2   :  { %v173_v2 = vld [vmem:[%s640_s5] sm:$0xf]  ;;  %v62_v4 = vsel %vm60_vm0, %v48_v1, 0  ;;  %434 = vmatprep.subr.bf16.mxu1 %v470_v0  ;;  %438 = vmatprep.mubr.msk.bf16.mxu1 %vm471_vm1, %v470_v0  ;;  %v301_v6 = vshrl.u32 %v300_v3, 7  ;;  %v467_v63 = vld [vmem:[%s645_s7 + $0x8] sm:$0xff]   ;;  %vm392_vm5 = vcmask 25600  }
   0x3   :  { %429 = vmatpush3.bf16.msra.mxu0 %v62_v4  ;;  %v47_v5 = vld [vmem:[%s641_s0] sm:$0x1]  ;;  %v182_v7 = vsel %vm60_vm0, %v173_v2, 0  ;;  %v297_v9 = vld [vmem:[%s642_s11 + $0x2] sm:$0x3] }
   0x4   :  { %442 = vmatprep.subr.bf16.mxu0 %v470_v0  ;;  %v296_v8 = vld [vmem:[%s642_s11] sm:$0x3]  ;;  %v302_v10 = vsub.s32 0, %v301_v6  ;;  %v306_v11 = vsub.s32 1, %v301_v6  ;;  %v338_v13 = vld [vmem:[%s643_s12 + $0x2] sm:$0x3] }
   0x5   :  { %v337_v12 = vld [vmem:[%s643_s12] sm:$0x3] }
   0x6   :  { %431 = vmatmul.mubr.msk.bf16.vlgmr.msra.gmra.mrb[0].mxu0 %vm56_vm2, %v47_v5  ;;  %v303_v14 = vrot.slane %v296_v8, %v302_v10  ;;  %v307_v15 = vrot.slane %v296_v8, %v306_v11  ;;  %v311_v16 = vrot.slane %v297_v9, %v302_v10  ;;  %v315_v17 = vrot.slane %v297_v9, %v306_v11  ;;  %v464_v36 = vld [vmem:[%s644_s3] sm:$0xff]  }
   0x7   :  { %443 = vmatpush3.bf16.msra.mxu0 %v182_v7  ;;  %444 = vmatprep.mubr.msk.bf16.mxu0 %vm471_vm1, %v470_v0  ;;  %v344_v18 = vrot.slane %v337_v12, %v302_v10  ;;  %v348_v19 = vrot.slane %v337_v12, %v306_v11  ;;  %v352_v20 = vrot.slane %v338_v13, %v302_v10  ;;  %v406_v52 = vld [vmem:[%s646_s2] ss:$0 sm:$0xff] }
   0x8   :  { %v321_v21 = vsel %vm320_vm3, %v303_v14, 0.0  ;;  %v322_v22 = vsel %vm320_vm3, %v307_v15, 0.0  ;;  %v324_v23 = vsel %vm320_vm3, %v311_v16, 0.0  ;;  %v356_v24 = vrot.slane %v338_v13, %v306_v11  ;;  %435 = vmatpush3.bf16.msra.mxu1 %v464_v36  ;;  %v466_v59 = vld [vmem:[%s645_s7] sm:$0xff]  }
   0x9   :  { %v323_v25 = vadd.f32 %v322_v22, %v321_v21  ;;  %v361_v26 = vsel %vm320_vm3, %v344_v18, 0.0  ;;  %v362_v27 = vsel %vm320_vm3, %v348_v19, 0.0  ;;  %v326_v28 = vsel %vm320_vm3, %v315_v17, 0.0  ;;  %436 = vmatprep.subr.bf16.mxu1 %v470_v0  ;;  %v412_v61 = vld [vmem:[%s647_s6] ss:$0 sm:$0xff] }
   0xa   :  { %v363_v29 = vadd.f32 %v362_v27, %v361_v26  ;;  %v364_v30 = vsel %vm320_vm3, %v352_v20, 0.0  ;;  %v366_v33 = vsel %vm320_vm3, %v356_v24, 0.0  ;;  %v408_v9 = vld [vmem:[%s648_s4] ss:$0 sm:$0xff] }
   0xb   :  { %v325_v31 = vadd.f32 %v324_v23, %v323_v25  ;;  %v292_v10 = vld [vmem:[%s649_s9] sm:$0x3] }
   0xc   :  { %v365_v32 = vadd.f32 %v364_v30, %v363_v29  ;;  %437 = vmatpush3.bf16.msra.mxu1 %v465_v37  ;;  %v414_v19 = vld [vmem:[%s650_s8] ss:$0 sm:$0xff] }
   0xd   :  { %v327_v34 = vadd.f32 %v326_v28, %v325_v31  ;;  %448 = vmatprep.subr.bf16.mxu1 %v470_v0  ;;  %v294_v22 = vld [vmem:[%s652_s10] sm:$0x3] }
   0xe   :  { %445 = vmatmul.mubr.msk.bf16.vlgmr.msra.gmra.mrb[4].mxu0 %vm56_vm2, %v47_v5  ;;  %v367_v35 = vadd.f32 %v366_v33, %v365_v32 }
   0xf   :  { %328 = vadd.xlane.f32.xlu0 %v327_v34 }
  0x13   :  { %368 = vadd.xlane.f32.xlu0 %v367_v35 }
  0x9c   :  { %v329_v38 = vpop.xlane.xlu0 %328 }
  0x9d   :  { %v330_v39 = vrot.slane %v329_v38, 4 }
  0x9f   :  { %v331_v40 = vadd.f32 %v330_v39, %v329_v38 }
  0xa0   :  { %v369_v41 = vpop.xlane.xlu0 %368 }
  0xa1   :  { %v332_v42 = vrot.slane %v331_v40, 2  ;;  %v370_v43 = vrot.slane %v369_v41, 4 }
  0xa3   :  { %v371_v44 = vadd.f32 %v370_v43, %v369_v41  ;;  %v333_v45 = vadd.f32 %v332_v42, %v331_v40 }
  0xa5   :  { %v372_v46 = vrot.slane %v371_v44, 2  ;;  %v334_v47 = vrot.slane %v333_v45, 1 }
  0xa7   :  { %v373_v48 = vadd.f32 %v372_v46, %v371_v44  ;;  %v335_v49 = vadd.f32 %v334_v47, %v333_v45 }
  0xa9   :  { %456 = vpush %v335_v49  ;;  %v374_v50 = vrot.slane %v373_v48, 1 }
  0xab   :  { %v375_v51 = vadd.f32 %v374_v50, %v373_v48 }
  0xad   :  { %458 = vpush %v375_v51 }
  0xd9   :  { %v98_v53 = vpop.f32.mrb[0].mxu0 }
  0xda   :  { %v99_v54 = vadd.f32 %v406_v52, %v98_v53  ;;  %v432_v55 = vpop.f32.mrb[1].mxu0  ;;  %s457_s27 = spop %456 }
  0xdb   :  { %v101_v56 = vpop.f32.mrb[2].mxu0  ;;  %s600_s28 = smul.f32 0.00048828125, %s457_s27 }
  0xdc   :  { %v104_v57 = vmax.f32 %v99_v54, 0.0  ;;  %v433_v58 = vpop.f32.mrb[3].mxu0 }
  0xdd   :  { %s380_s15 = smul.f32 2048.0, %s600_s28  ;;  %v394_v18 = vstv %s600_s28 }
  0xde   :  { %v105_v60 = vpack.c.bf16 %v104_v57, %v104_v57  ;;  %s459_s17 = spop %458 }
  0xdf   :  { %s381_s18 = smul.f32 %s380_s15, %s600_s28 }
  0xe0   :  { %439 = vmatmul.mubr.msk.bf16.vlgmr.msra.gmra.mrb[0].mxu1 %vm129_vm4, %v105_v60 }
  0xe1   :  { %v218_v62 = vpop.f32.mrb[4].mxu0  ;;  %449 = vmatpush3.bf16.msra.mxu1 %v466_v59  ;;  %452 = vmatprep.mubr.msk.bf16.mxu1 %vm471_vm1, %v470_v0  ;;  %s382_s19 = ssub.f32 %s459_s17, %s381_s18 }
  0xe2   :  { %v219_v1 = vadd.f32 %v412_v61, %v218_v62  ;;  %v446_v2 = vpop.f32.mrb[5].mxu0  ;;  %450 = vmatprep.subr.bf16.mxu1 %v470_v0 }
  0xe3   :  { %v221_v3 = vpop.f32.mrb[6].mxu0  ;;  %s385_s6 = smul.f32 0.0004885198, %s382_s19 }
  0xe4   :  { %v224_v4 = vmax.f32 %v219_v1, 0.0  ;;  %v447_v5 = vpop.f32.mrb[7].mxu0 }
  0xe5   :  { %451 = vmatpush3.bf16.msra.mxu1 %v467_v63  ;;  %s386_s20 = sadd.f32 1e-05, %s385_s6 }
  0xe6   :  { %v225_v6 = vpack.c.bf16 %v224_v4, %v224_v4 }
  0xe7   :  { %v387_v7 = vstv %s386_s20 }
  0xe8   :  { %453 = vmatmul.mubr.msk.bf16.vlgmr.msra.gmra.mrb[4].mxu1 %vm129_vm4, %v225_v6  ;;  %468 = vrsqrt.f32 %v387_v7 }
  0xf2   :  { %v469_v8 = vpop.eup %468 }
  0xf3   :  { %460 = vpush %v469_v8 }
 0x124   :  { %s461_s23 = spop %460 }
 0x125   :  { %v390_v16 = vstv %s461_s23 }
 0x1b3   :  { %v167_v0 = vpop.f32.mrb[0].mxu1 }
 0x1b4   :  { %v168_v11 = vadd.f32 %v408_v9, %v167_v0  ;;  %v440_v12 = vpop.f32.mrb[1].mxu1 }
 0x1b5   :  { %v170_v13 = vpop.f32.mrb[2].mxu1 }
 0x1b6   :  { %v293_v14 = vadd.f32 %v292_v10, %v168_v11  ;;  %v441_v15 = vpop.f32.mrb[3].mxu1 }
 0x1b8   :  { %v391_v17 = vmul.f32 %v390_v16, %v293_v14 }
 0x1ba   :  { %393 = vst.msk [vmem:[%s651_s13] sm:$0x3] %vm392_vm5, %v391_v17  ;;  %v395_v20 = vmul.f32 %v394_v18, %v391_v17 }
 0x1bb   :  { %v286_v21 = vpop.f32.mrb[4].mxu1 }
 0x1bc   :  { %v287_v23 = vadd.f32 %v414_v19, %v286_v21  ;;  %v454_v24 = vpop.f32.mrb[5].mxu1 }
 0x1bd   :  { %v289_v25 = vpop.f32.mrb[6].mxu1 }
 0x1be   :  { %v295_v26 = vadd.f32 %v294_v22, %v287_v23  ;;  %v455_v27 = vpop.f32.mrb[7].mxu1 }
 0x1c0   :  { %v396_v28 = vsub.f32 %v295_v26, %v395_v20 }
 0x1c2   :  { %397 = vst.msk [vmem:[%s653_s14] sm:$0x3] %vm392_vm5, %v396_v28 }

// kernel: basic_block_forward.9
= control target key start
LH: loop header
LB: loop body
LE: loop exit
PB: predicated region body
PF: predicated region fallthrough
CT: control target
= control target key end

     0   :  { %s566_s15 = smov 0   ;;  %s568_s16 = smov 0   ;;  %s608_s0 = inlined_call_operand.vmem [shape: bf16[2,4,256], index: 0, kind: input, shape index: {}]   ;;  %s609_s1 = inlined_call_operand.vmem [shape: f32[2,4,1], index: 1, kind: input, shape index: {}]   ;;  %s610_s2 = inlined_call_operand.vmem [shape: f32[2,4,1], index: 2, kind: input, shape index: {}]   ;;  %s611_s3 = inlined_call_operand.vmem [shape: f32[2,4,256], index: 3, kind: input, shape index: {}]   ;;  %s612_s4 = inlined_call_operand.vmem [shape: f32[2,4,256], index: 4, kind: output, shape index: {}]  }
   0x1   :  { %s570_s17 = smov 0  }
   0x2 LB: > { %s26_s18 = sadd.s32 1, %s533_s16  ;;  %p474_p0 = scmp.ge.s32.totalorder %s537_s17, 1  ;;  %s537_s17 = sphi %s570_s17, %s14_s17   ;;  %s533_s16 = sphi %s568_s16, %s614_s16   ;;  %s529_s15 = sphi %s566_s15, %s613_s15  }
   0x3   : > { %p28_p1 = scmp.ge.s32.totalorder %s26_s18, 2  ;;  %p218_p2 = scmp.lt.s32.totalorder %s537_s17, 3 }
   0x5   : > { %s616_s18 = smov (%p28_p1, %s26_s18), 0  ;;  %p219_p3 = pnand %p474_p0, %p218_p2 }
   0x6   : > { %p270_p4 = scmp.lt.s32.totalorder (!%p219_p3), %s529_s15, 1  ;;  %v539_v0 = vmov (!%p219_p3), 0   ;;  %v540_v3 = vmov (!%p219_p3), 839922192   ;;  %v317_v5 = vlaneseq (!%p219_p3) }
   0x7   : > { %222 = sbr.rel (%p219_p3) target bundleno = 159 (0x9f), region = 36  ;;  %514 = vset.pattern.permute.xlu0 (!%p219_p3), %v539_v0  ;;  %v315_v4 = vunpack.c.l.s4 (!%p219_p3), %v540_v3 }
   0x8   : > { %v318_v7 = vshrl.u32 (!%p219_p3), %v317_v5, 7 }
   0x9   : > { %v316_v6 = vunpack.c.0.s8 (!%p219_p3), %v315_v4 }
   0xb   : > { %v319_v8 = vsub.s32 (!%p219_p3), %v316_v6, %v318_v7 }
   0xe   : > { %s618_s15 = smov (!%p270_p4, %s529_s15), 1 }
   0xf   : > { %s485_s19 = sshll.u32 %s618_s15, 2  ;;  %s486_s29 = sshll.u32 %s618_s15, 3 }
  0x10   : > { %s282_s22 = scalar_lea.vmem %s609_s1, %s485_s19  ;;  %s286_s25 = scalar_lea.vmem %s610_s2, %s485_s19 }
  0x11   : > { %v309_v1 = vld [vmem:[%s282_s22] sm:$0xf]  ;;  %s277_s28 = scalar_lea.vmem %s608_s0, %s485_s19  ;;  %s295_s6 = scalar_lea.vmem %s611_s3, %s486_s29 }
  0x12   : > { %312 = vperm.xlu0 %514, %v309_v1   ;;  %v323_v2 = vld [vmem:[%s286_s25] sm:$0xf]  ;;  %s305_s9 = scalar_lea.vmem %s612_s4, %s486_s29 }
  0x13   : > { %v307_v9 = vld [vmem:[%s277_s28] sm:$0xf] }
  0x14   : > { %v308_v11 = vunpack.c.l.bf16 %v307_v9  ;;  %v337_v16 = vld [vmem:[%s295_s6] sm:$0xff] }
  0x16   : > { %326 = vperm.xlu0 %514, %v323_v2  }
  0x91   : > { %v313_v10 = vpop.permute.xlu0 %312 }
  0x92   : > { %v320_v12 = vrot.slane %v313_v10, %v319_v8 }
  0x94   : > { %v322_v14 = vmul.f32 %v320_v12, %v308_v11 }
  0x95   : > { %v327_v13 = vpop.permute.xlu0 %326 }
  0x96   : > { %v334_v15 = vrot.slane %v327_v13, %v319_v8 }
  0x98   : > { %v336_v17 = vadd.f32 %v334_v15, %v322_v14 }
  0x9a   : > { %v338_v18 = vadd.f32 %v337_v16, %v336_v17 }
  0x9c   : > { %v339_v19 = vmax.f32 %v338_v18, 0.0 }
  0x9e   : > { %340 = vst [vmem:[%s305_s9] sm:$0xff] %v339_v19 }
  0x9f PF: > { %s14_s17 = sadd.s32 1, %s537_s17   ;;  %s613_s15 = smov %s533_s16 }
  0xa0   : > { %p11_p5 = scmp.ge.s32.totalorder %s14_s17, 4   ;;  %s614_s16 = smov %s616_s18 }
  0xa2   :  { %13 = sbr.rel (!%p11_p5) target bundleno = 2 (0x2), region = 75 }

// kernel: basic_block_forward.5
= control target key start
LH: loop header
LB: loop body
LE: loop exit
PB: predicated region body
PF: predicated region fallthrough
CT: control target
= control target key end

     0   :  { %s1465_s18 = smov 0   ;;  %s1828_s0 = inlined_call_operand.vmem [shape: s32[2,256], index: 0, kind: input, shape index: {}]   ;;  %s1829_s1 = inlined_call_operand.vmem [shape: f32[2,4,256], index: 1, kind: input, shape index: {}]   ;;  %s1830_s2 = inlined_call_operand.vmem [shape: bf16[9,4,4], index: 2, kind: input, shape index: {}]   ;;  %s1831_s3 = inlined_call_operand.vmem [shape: bf16[2,4,256], index: 3, kind: output, shape index: {0}]   ;;  %s1832_s4 = inlined_call_operand.vmem [shape: f32[2,1,256], index: 4, kind: output, shape index: {1}]   ;;  %s1833_s5 = inlined_call_operand.vmem [shape: f32[2,1,256], index: 5, kind: output, shape index: {2}]  }
   0x1 LB: > { %s1279_s19 = sadd.s32 4294967295, %s1423_s18   ;;  %p1283_p0 = scmp.ge.s32.totalorder %s1423_s18, 1  ;;  %s1423_s18 = sphi %s1465_s18, %s16_s18  }
   0x2   : > { %p192_p1 = scmp.lt.s32.totalorder %s1423_s18, 3 }
   0x4   : > { %p193_p2 = pnand %p1283_p0, %p192_p1 }
   0x5   : > { %p228_p3 = scmp.lt.s32.totalorder (!%p193_p2), %s1279_s19, 1  ;;  %v248_v0 = vld [vmem:[%s1828_s0] sm:$0xf] (!%p193_p2)  ;;  %v276_v1 = vlaneseq (!%p193_p2)  ;;  %v1425_v3 = vmov (!%p193_p2), 0   ;;  %s1426_s26 = smov (!%p193_p2), 16  }
   0x6   : > { %196 = sbr.rel (%p193_p2) target bundleno = 423 (0x1a7), region = 32  ;;  %vm309_vm0 = vcmp.ge.s32.totalorder (!%p193_p2), %v248_v0, 0  ;;  %vm315_vm1 = vcmp.lt.s32.totalorder (!%p193_p2), %v248_v0, 16  ;;  %v458_v2 = vadd.s32 (!%p193_p2), 1, %v248_v0  ;;  %707 = vmatprep.mubr.bf16.mxu0 (!%p193_p2), %v1425_v3  ;;  %389 = vmatprep.mubr.bf16.mxu1 (!%p193_p2), %v1425_v3  ;;  %v261_v18 = vadd.s32 (!%p193_p2), 4294967295, %v248_v0  ;;  %s1427_s27 = smov (!%p193_p2), 17  }
   0x7   : > { %v1481_v4 = vshrl.u32 (!%p193_p2), %v276_v1, 7  ;;  %v310_v5 = vsel (!%p193_p2), %vm309_vm0, 1, %v1425_v3  ;;  %v316_v6 = vsel (!%p193_p2), %vm315_vm1, 1, %v1425_v3  ;;  %vm1485_vm4 = vmand (!%p193_p2), %vm309_vm0, %vm315_vm1  ;;  %s1428_s28 = smov (!%p193_p2), 127   ;;  %s1429_s29 = smov (!%p193_p2), 113  }
   0x8   : > { %v1292_v7 = vrot.slane (!%p193_p2), %v310_v5, 9  ;;  %v1293_v8 = vrot.slane (!%p193_p2), %v316_v6, 9  ;;  %vm459_vm2 = vcmp.ge.s32.totalorder (!%p193_p2), %v458_v2, 0  ;;  %vm465_vm3 = vcmp.lt.s32.totalorder (!%p193_p2), %v458_v2, 16  ;;  %s1430_s30 = smov (!%p193_p2), 15   ;;  %s1431_s6 = smov (!%p193_p2), 112  }
   0x9   : > { %v460_v10 = vsel (!%p193_p2), %vm459_vm2, 1, %v1425_v3  ;;  %v466_v11 = vsel (!%p193_p2), %vm465_vm3, 1, %v1425_v3  ;;  %vm1503_vm7 = vmand (!%p193_p2), %vm459_vm2, %vm465_vm3  ;;  %v1512_v20 = vsub.s32 (!%p193_p2), 0, %v1481_v4  ;;  %v1515_v21 = vsub.s32 (!%p193_p2), 2, %v1481_v4  ;;  %v1307_v58 = vld [vmem:[%s1830_s2 + $0x8] sm:$0x3] (!%p193_p2) }
   0xa   : > { %vm1495_vm5 = vcmp.ne.s32.totalorder (!%p193_p2), %v1292_v7, 0  ;;  %vm1499_vm6 = vcmp.ne.s32.totalorder (!%p193_p2), %v1293_v8, 0  ;;  %v1299_v14 = vrot.slane (!%p193_p2), %v460_v10, 9  ;;  %v1300_v16 = vrot.slane (!%p193_p2), %v466_v11, 9  ;;  %s1432_s9 = smov (!%p193_p2), 1   ;;  %s1433_s10 = smov (!%p193_p2), 111  }
   0xb   : > { %vm638_vm8 = vmand (!%p193_p2), %vm1485_vm4, %vm1495_vm5  ;;  %vm262_vm14 = vcmp.ge.s32.totalorder (!%p193_p2), %v261_v18, 0  ;;  %vm263_vm15 = vcmp.lt.s32.totalorder (!%p193_p2), %v261_v18, 16  ;;  %vm350_vm2 = vcmask (!%p193_p2), 1041408  }
   0xc   : > { %vm1517_vm9 = vcmp.ne.s32.totalorder (!%p193_p2), %v1299_v14, 0  ;;  %vm639_vm10 = vmand (!%p193_p2), %vm638_vm8, %vm1499_vm6  ;;  %vm1528_vm12 = vcmp.ne.s32.totalorder (!%p193_p2), %v1300_v16, 0  ;;  %v265_v30 = vsel (!%p193_p2), %vm262_vm14, 1, %v1425_v3  ;;  %v270_v31 = vsel (!%p193_p2), %vm263_vm15, 1, %v1425_v3 }
   0xd   : > { %s1866_s19 = smov (!%p228_p3, %s1279_s19), 1  ;;  %v640_v23 = vsel %vm639_vm10, 1, %v1425_v3  ;;  %vm728_vm11 = vmand %vm1485_vm4, %vm1517_vm9  ;;  %v1290_v34 = vrot.slane %v265_v30, 9  ;;  %v1291_v35 = vrot.slane %v270_v31, 9 }
   0xe   : > { %s1326_s22 = sshll.u32 %s1866_s19, 3  ;;  %vm907_vm13 = vmand %vm1503_vm7, %vm1495_vm5  ;;  %v648_v28 = vrot.slane %v640_v23, %v1515_v21  ;;  %v644_v29 = vrot.slane %v640_v23, %v1512_v20  ;;  %s1288_s8 = sshll.u32 %s1866_s19, 1 }
   0xf   : > { %s232_s25 = scalar_lea.vmem %s1829_s1, %s1326_s22  ;;  %vm1542_vm0 = vmand %vm907_vm13, %vm1499_vm6  ;;  %vm1569_vm10 = vcmp.ne.s32.totalorder %v1290_v34, 0  ;;  %s241_s11 = scalar_lea.vmem %s1832_s4, %s1288_s8 }
  0x10   : > { %v247_v17 = vld [vmem:[%s232_s25] sm:$0xff]  ;;  %vm729_vm1 = vmand %vm728_vm11, %vm1528_vm12  ;;  %v656_v36 = vrot.slane %v648_v28, %v1512_v20  ;;  %v652_v37 = vrot.slane %v644_v29, %v1512_v20  ;;  %vm1573_vm11 = vcmp.ne.s32.totalorder %v1291_v35, 0  ;;  %v909_v6 = vsel %vm1542_vm0, 1, %v1425_v3  ;;  %s245_s14 = scalar_lea.vmem %s1833_s5, %s1288_s8 }
  0x11   : > { %v250_v19 = vcombine.high %v247_v17, %v247_v17  ;;  %v730_v32 = vsel %vm729_vm1, 1, %v1425_v3  ;;  %vm1557_vm3 = vmand %vm262_vm14, %vm263_vm15  ;;  %v917_v10 = vrot.slane %v909_v6, %v1515_v21  ;;  %v913_v12 = vrot.slane %v909_v6, %v1512_v20 }
  0x12   : > { %v738_v38 = vrot.slane %v730_v32, %v1515_v21  ;;  %vm314_vm8 = vmand %vm1557_vm3, %vm1495_vm5  ;;  %v734_v39 = vrot.slane %v730_v32, %v1512_v20  ;;  %vm658_vm5 = vcmp.eq.s32.totalorder %v656_v36, 1  ;;  %vm657_vm14 = vcmp.eq.s32.totalorder %v652_v37, 1 }
  0x13   : > { %v1532_v25 = vpack.i.bf16 %v247_v17, %v250_v19  ;;  %v1538_v26 = vpack.i.bf16 %v250_v19, %v247_v17  ;;  %vm320_vm13 = vmand %vm314_vm8, %vm1499_vm6  ;;  %v661_v44 = vsel %vm658_vm5, %v250_v19, 0.0  ;;  %v660_v45 = vsel %vm657_vm14, %v247_v17, 0.0 }
  0x14   : > { %v1582_v42 = vrot.slane %v738_v38, %v1512_v20  ;;  %vm269_vm15 = vmand %vm1557_vm3, %vm1569_vm10  ;;  %v321_v43 = vsel %vm320_vm13, 1, %v1425_v3  ;;  %v663_v48 = vpack.c.bf16 %v661_v44, %v661_v44  ;;  %v662_v49 = vpack.c.bf16 %v660_v45, %v660_v45 }
  0x15   : > { %1377 = vrot.lane.b32.xlu0 %v1532_v25, %s1426_s26  ;;  %1387 = vrot.lane.b32.xlu1 %v1532_v25, %s1427_s27  ;;  %v329_v46 = vrot.slane %v321_v43, %v1515_v21  ;;  %vm464_vm6 = vmand %vm1557_vm3, %vm1517_vm9  ;;  %v325_v47 = vrot.slane %v321_v43, %v1512_v20  ;;  %v1598_v50 = vrot.slane %v734_v39, %v1512_v20  ;;  %vm1834_vm5 = vcmask 31744  }
  0x16   : > { %vm274_vm1 = vmand %vm269_vm15, %vm1573_vm11  ;;  %v670_v54 = vsel %vm350_vm2, %v662_v49, 0  ;;  %1308 = vmatprep.subr.msk.bf16.mxu0 %vm350_vm2, %v663_v48  ;;  %v1663_v13 = vrot.slane %v917_v10, %v1512_v20  ;;  %v1666_v14 = vrot.slane %v913_v12, %v1512_v20 }
  0x17   : > { %v1601_v51 = vrot.slane %v329_v46, %v1512_v20  ;;  %v1604_v52 = vrot.slane %v325_v47, %v1512_v20  ;;  %v275_v53 = vsel %vm274_vm1, 1, %v1425_v3  ;;  %vm818_vm8 = vmand %vm1503_vm7, %vm1569_vm10  ;;  %676 = vmatpush1.bf16.msra.mxu0 %v670_v54  ;;  %v1294_v54 = vld [vmem:[%s1830_s2 + $0x2] sm:$0x3] }
  0x18   : > { %v283_v55 = vrot.slane %v275_v53, %v1515_v21  ;;  %vm819_vm13 = vmand %vm818_vm8, %vm1573_vm11  ;;  %v279_v56 = vrot.slane %v275_v53, %v1512_v20 }
  0x19   : > { %1382 = vrot.lane.b32.xlu0 %v1538_v26, %s1428_s28  ;;  %1392 = vrot.lane.b32.xlu1 %v1538_v26, %s1429_s29  ;;  %v820_v57 = vsel %vm819_vm13, 1, %v1425_v3  ;;  %vm470_vm14 = vmand %vm464_vm6, %vm1528_vm12  ;;  %vm339_vm1 = vcmp.eq.s32.totalorder %v1601_v51, 1  ;;  %vm338_vm8 = vcmp.eq.s32.totalorder %v1604_v52, 1  ;;  %s1327_s29 = sshll.u32 %s1866_s19, 2 }
  0x1a   : > { %v1631_v59 = vrot.slane %v283_v55, %v1512_v20  ;;  %v828_v60 = vrot.slane %v820_v57, %v1515_v21  ;;  %v1635_v61 = vrot.slane %v279_v56, %v1512_v20  ;;  %v471_v62 = vsel %vm470_vm14, 1, %v1425_v3  ;;  %1309 = vmatmul.mubr.msk.bf16.vlgmr.msra.gmra.mrb[0].mxu0 %vm1834_vm5, %v1307_v58  ;;  %vm559_vm0 = vmand %vm1485_vm4, %vm1569_vm10  ;;  %s237_s7 = scalar_lea.vmem %s1831_s3, %s1327_s29 }
  0x1b   : > { %v479_v63 = vrot.slane %v471_v62, %v1515_v21  ;;  %v824_v0 = vrot.slane %v820_v57, %v1512_v20  ;;  %v475_v2 = vrot.slane %v471_v62, %v1512_v20  ;;  %796 = vmatprep.mubr.bf16.mxu0 %v1425_v3  ;;  %vm560_vm3 = vmand %vm559_vm0, %vm1573_vm11  ;;  %vm748_vm10 = vcmp.eq.s32.totalorder %v1582_v42, 1 }
  0x1c   : > { %v1644_v5 = vrot.slane %v828_v60, %v1512_v20  ;;  %v561_v16 = vsel %vm560_vm3, 1, %v1425_v3  ;;  %vm996_vm15 = vmand %vm1503_vm7, %vm1517_vm9  ;;  %vm722_vm7 = vcmask 1039360   ;;  %vm304_vm9 = vcmask 130048  }
  0x1d   : > { %1397 = vrot.lane.b32.xlu0 %v1532_v25, %s1430_s30  ;;  %1402 = vrot.lane.b32.xlu1 %v1538_v26, %s1431_s6  ;;  %v1651_v7 = vrot.slane %v479_v63, %v1512_v20  ;;  %v1654_v8 = vrot.slane %v824_v0, %v1512_v20  ;;  %v1659_v11 = vrot.slane %v475_v2, %v1512_v20  ;;  %vm997_vm4 = vmand %vm996_vm15, %vm1528_vm12  ;;  %vm256_vm12 = vcmask 138240  }
  0x1e   : > { %v569_v17 = vrot.slane %v561_v16, %v1515_v21  ;;  %v565_v18 = vrot.slane %v561_v16, %v1512_v20  ;;  %v998_v23 = vsel %vm997_vm4, 1, %v1425_v3  ;;  %vm747_vm11 = vcmp.eq.s32.totalorder %v1598_v50, 1  ;;  %v1310_v16 = vld [vmem:[%s1830_s2 + $0xa] sm:$0x3] }
  0x1f   : > { %vm293_vm13 = vcmp.eq.s32.totalorder %v1631_v59, 1  ;;  %vm292_vm14 = vcmp.eq.s32.totalorder %v1635_v61, 1  ;;  %vm453_vm0 = vcmask 121856   ;;  %vm838_vm3 = vcmp.eq.s32.totalorder %v1644_v5, 1 }
  0x20   : > { %v1682_v19 = vrot.slane %v569_v17, %v1512_v20  ;;  %v1687_v9 = vrot.slane %v565_v18, %v1512_v20  ;;  %vm489_vm15 = vcmp.eq.s32.totalorder %v1651_v7, 1  ;;  %vm837_vm4 = vcmp.eq.s32.totalorder %v1654_v8, 1 }
  0x21   : > { %1407 = vrot.lane.b32.xlu0 %v1532_v25, %s1432_s9  ;;  %1412 = vrot.lane.b32.xlu1 %v1538_v26, %s1433_s10  ;;  %v1006_v25 = vrot.slane %v998_v23, %v1515_v21  ;;  %v1002_v26 = vrot.slane %v998_v23, %v1512_v20  ;;  %vm901_vm5 = vcmask 916480   ;;  %vm488_vm6 = vcmp.eq.s32.totalorder %v1659_v11, 1 }
  0x23   : > { %v1693_v22 = vrot.slane %v1006_v25, %v1512_v20  ;;  %v1696_v15 = vrot.slane %v1002_v26, %v1512_v20 }
  0x87   : > { %v1378_v24 = vpop.permute.xlu0 %1377  ;;  %v1388_v21 = vpop.permute.xlu1 %1387 }
  0x88   : > { %v1380_v20 = vunpack.i.h.bf16 %v1378_v24  ;;  %v1379_v27 = vunpack.i.l.bf16 %v1378_v24  ;;  %v1390_v28 = vunpack.i.h.bf16 %v1388_v21  ;;  %v1389_v29 = vunpack.i.l.bf16 %v1388_v21 }
  0x8a   : > { %v305_v30 = vsel %vm304_vm9, %v1380_v20, %v1379_v27  ;;  %v308_v31 = vsel %vm304_vm9, %v1379_v27, %v1380_v20  ;;  %v257_v32 = vsel %vm256_vm12, %v1390_v28, %v1389_v29  ;;  %v260_v33 = vsel %vm256_vm12, %v1389_v29, %v1390_v28 }
  0x8b   : > { %v1383_v34 = vpop.permute.xlu0 %1382  ;;  %v341_v35 = vsel %vm339_vm1, %v305_v30, 0.0  ;;  %v340_v36 = vsel %vm338_vm8, %v308_v31, 0.0  ;;  %v295_v37 = vsel %vm293_vm13, %v257_v32, 0.0  ;;  %v1393_v38 = vpop.permute.xlu1 %1392  ;;  %v294_v39 = vsel %vm292_vm14, %v260_v33, 0.0 }
  0x8c   : > { %v1385_v40 = vunpack.i.h.bf16 %v1383_v34  ;;  %v1384_v41 = vunpack.i.l.bf16 %v1383_v34  ;;  %v343_v43 = vpack.c.bf16 %v341_v35, %v341_v35  ;;  %v342_v44 = vpack.c.bf16 %v340_v36, %v340_v36  ;;  %v298_v35 = vld [vmem:[%s1830_s2] sm:$0x3] }
  0x8d   : > { %v1395_v45 = vunpack.i.h.bf16 %v1393_v38  ;;  %v1394_v46 = vunpack.i.l.bf16 %v1393_v38  ;;  %v297_v47 = vpack.c.bf16 %v295_v37, %v295_v37  ;;  %v296_v48 = vpack.c.bf16 %v294_v39, %v294_v39 }
  0x8e   : > { %v723_v49 = vsel %vm722_vm7, %v1384_v41, %v1385_v40  ;;  %v727_v51 = vsel %vm722_vm7, %v1385_v40, %v1384_v41  ;;  %1295 = vmatprep.subr.msk.bf16.mxu1 %vm350_vm2, %v343_v43  ;;  %v352_v52 = vsel %vm350_vm2, %v342_v44, 0  ;;  %vm927_vm9 = vcmp.eq.s32.totalorder %v1663_v13, 1 }
  0x8f   : > { %v750_v53 = vsel %vm748_vm10, %v727_v51, 0.0  ;;  %358 = vmatpush1.bf16.msra.mxu1 %v352_v52  ;;  %v749_v55 = vsel %vm747_vm11, %v723_v49, 0.0  ;;  %vm1855_vm12 = vcmask 924672   ;;  %v1398_v58 = vpop.permute.xlu0 %1397  ;;  %v1403_v59 = vpop.permute.xlu1 %1402  ;;  %v402_v62 = vsel %vm350_vm2, %v296_v48, 0  ;;  %v1304_v51 = vld [vmem:[%s1830_s2 + $0x6] sm:$0x3] }
  0x90   : > { %v812_v56 = vsel %vm1855_vm12, %v1394_v46, %v1395_v45  ;;  %vm1856_vm7 = vmmov %vm1855_vm12  ;;  %v752_v60 = vpack.c.bf16 %v750_v53, %v750_v53  ;;  %v751_v61 = vpack.c.bf16 %v749_v55, %v749_v55  ;;  %1297 = vmatprep.subr.msk.bf16.mxu1 %vm350_vm2, %v297_v47  ;;  %v1400_v0 = vunpack.i.h.bf16 %v1398_v58  ;;  %v1319_v52 = vld [vmem:[%s1830_s2 + $0x10] sm:$0x3] }
  0x91   : > { %v816_v57 = vsel %vm1856_vm7, %v1395_v45, %v1394_v46  ;;  %v1399_v2 = vunpack.i.l.bf16 %v1398_v58  ;;  %v839_v50 = vsel %vm837_vm4, %v812_v56, 0.0  ;;  %vm1857_vm10 = vcmask 31744   ;;  %v1301_v46 = vld [vmem:[%s1830_s2 + $0x4] sm:$0x3] }
  0x92   : > { %v840_v42 = vsel %vm838_vm3, %v816_v57, 0.0  ;;  %1296 = vmatmul.mubr.msk.bf16.vlgmr.msra.gmra.mrb[0].mxu1 %vm1857_vm10, %v1294_v54  ;;  %1311 = vmatprep.subr.msk.bf16.mxu0 %vm350_vm2, %v752_v60  ;;  %v759_v6 = vsel %vm350_vm2, %v751_v61, 0  ;;  %v841_v10 = vpack.c.bf16 %v839_v50, %v839_v50  ;;  %v1405_v12 = vunpack.i.h.bf16 %v1403_v59  ;;  %vm1858_vm8 = vmmov %vm1857_vm10 }
  0x93   : > { %v842_v63 = vpack.c.bf16 %v840_v42, %v840_v42  ;;  %v1404_v5 = vunpack.i.l.bf16 %v1403_v59  ;;  %765 = vmatpush1.bf16.msra.mxu0 %v759_v6  ;;  %408 = vmatpush1.bf16.msra.mxu1 %v402_v62  ;;  %v454_v17 = vsel %vm453_vm0, %v1400_v0, %v1399_v2  ;;  %v457_v8 = vsel %vm453_vm0, %v1399_v2, %v1400_v0  ;;  %v1408_v18 = vpop.permute.xlu0 %1407  ;;  %v1413_v24 = vpop.permute.xlu1 %1412 }
  0x94   : > { %vm926_vm11 = vcmp.eq.s32.totalorder %v1666_v14, 1  ;;  %439 = vmatprep.mubr.bf16.mxu1 %v1425_v3  ;;  %v491_v23 = vsel %vm489_vm15, %v454_v17, 0.0  ;;  %v849_v25 = vsel %vm350_vm2, %v841_v10, 0  ;;  %vm553_vm1 = vcmask 7168   ;;  %v1313_v14 = vld [vmem:[%s1830_s2 + $0xc] sm:$0x3] }
  0x95   : > { %1314 = vmatprep.subr.msk.bf16.mxu0 %vm350_vm2, %v842_v63  ;;  %v906_v26 = vsel %vm901_vm5, %v1405_v12, %v1404_v5  ;;  %v493_v20 = vpack.c.bf16 %v491_v23, %v491_v23  ;;  %v490_v27 = vsel %vm488_vm6, %v457_v8, 0.0  ;;  %v1410_v28 = vunpack.i.h.bf16 %v1408_v18  ;;  %vm1859_vm6 = vmmov %vm1858_vm8 }
  0x96   : > { %v929_v21 = vsel %vm927_vm9, %v906_v26, 0.0  ;;  %1312 = vmatmul.mubr.msk.bf16.vlgmr.msra.gmra.mrb[0].mxu0 %vm1858_vm8, %v1310_v16  ;;  %v902_v29 = vsel %vm901_vm5, %v1404_v5, %v1405_v12  ;;  %vm579_vm13 = vcmp.eq.s32.totalorder %v1682_v19, 1  ;;  %v1409_v30 = vunpack.i.l.bf16 %v1408_v18  ;;  %vm1860_vm3 = vmmov %vm1859_vm6 }
  0x97   : > { %v931_v7 = vpack.c.bf16 %v929_v21, %v929_v21  ;;  %855 = vmatpush1.bf16.msra.mxu0 %v849_v25  ;;  %886 = vmatprep.mubr.bf16.mxu0 %v1425_v3  ;;  %vm990_vm14 = vcmask 908288   ;;  %v1415_v31 = vunpack.i.h.bf16 %v1413_v24  ;;  %v1414_v13 = vunpack.i.l.bf16 %v1413_v24  ;;  %vm1861_vm4 = vmmov %vm1860_vm3 }
  0x98   : > { %1302 = vmatprep.subr.msk.bf16.mxu1 %vm350_vm2, %v493_v20  ;;  %v492_v32 = vpack.c.bf16 %v490_v27, %v490_v27  ;;  %v554_v11 = vsel %vm553_vm1, %v1410_v28, %v1409_v30  ;;  %v928_v34 = vsel %vm926_vm11, %v902_v29, 0.0  ;;  %vm1016_vm5 = vcmp.eq.s32.totalorder %v1693_v22, 1  ;;  %vm1862_vm9 = vmmov %vm1860_vm3 }
  0x99   : > { %1317 = vmatprep.subr.msk.bf16.mxu0 %vm350_vm2, %v931_v7  ;;  %v581_v33 = vsel %vm579_vm13, %v554_v11, 0.0  ;;  %v995_v19 = vsel %vm990_vm14, %v1415_v31, %v1414_v13  ;;  %v930_v38 = vpack.c.bf16 %v928_v34, %v928_v34  ;;  %v557_v40 = vsel %vm553_vm1, %v1409_v30, %v1410_v28  ;;  %vm1863_vm12 = vmmov %vm1860_vm3 }
  0x9a   : > { %v500_v36 = vsel %vm350_vm2, %v492_v32, 0  ;;  %v583_v37 = vpack.c.bf16 %v581_v33, %v581_v33  ;;  %v1018_v39 = vsel %vm1016_vm5, %v995_v19, 0.0  ;;  %vm578_vm0 = vcmp.eq.s32.totalorder %v1687_v9, 1  ;;  %vm1864_vm7 = vmmov %vm1860_vm3 }
  0x9b   : > { %v938_v22 = vsel %vm350_vm2, %v930_v38, 0  ;;  %v1020_v41 = vpack.c.bf16 %v1018_v39, %v1018_v39  ;;  %v580_v43 = vsel %vm578_vm0, %v557_v40, 0.0  ;;  %v991_v44 = vsel %vm990_vm14, %v1414_v13, %v1415_v31 }
  0x9c   : > { %vm1015_vm15 = vcmp.eq.s32.totalorder %v1696_v15, 1  ;;  %v582_v9 = vpack.c.bf16 %v580_v43, %v580_v43  ;;  %v1316_v15 = vld [vmem:[%s1830_s2 + $0xe] sm:$0x3]  ;;  %v1434_v8 = vmov 1966171168   ;;  %vm1124_vm10 = vcmp.lt.s32.totalorder %v276_v1, 256 }
  0x9d   : > { %v1017_v45 = vsel %vm1015_vm15, %v991_v44, 0.0  ;;  %v1108_v18 = vunpack.c.l.s4 %v1434_v8 }
  0x9e   : > { %1298 = vmatmul.mubr.msk.bf16.vlgmr.msra.gmra.mrb[0].mxu1 %vm1859_vm6, %v298_v35  ;;  %v590_v47 = vsel %vm350_vm2, %v582_v9, 0  ;;  %v1019_v48 = vpack.c.bf16 %v1017_v45, %v1017_v45 }
  0x9f   : > { %506 = vmatpush1.bf16.msra.mxu1 %v500_v36  ;;  %537 = vmatprep.mubr.bf16.mxu1 %v1425_v3  ;;  %v1109_v29 = vunpack.c.0.s8 %v1108_v18 }
  0xa0   : > { %1305 = vmatprep.subr.msk.bf16.mxu1 %vm350_vm2, %v583_v37  ;;  %v1027_v49 = vsel %vm350_vm2, %v1019_v48, 0 }
  0xa1   : > { %v1112_v19 = vsub.s32 %v1109_v29, %v1481_v4 }
  0xa2   : > { %1315 = vmatmul.mubr.msk.bf16.vlgmr.msra.gmra.mrb[0].mxu0 %vm1860_vm3, %v1313_v14 }
  0xa3   : > { %944 = vmatpush1.bf16.msra.mxu0 %v938_v22  ;;  %975 = vmatprep.mubr.bf16.mxu0 %v1425_v3 }
  0xa4   : > { %1320 = vmatprep.subr.msk.bf16.mxu0 %vm350_vm2, %v1020_v41  ;;  %vm1089_vm2 = vcmask 1043456  }
  0xaa   : > { %1303 = vmatmul.mubr.msk.bf16.vlgmr.msra.gmra.mrb[0].mxu1 %vm1861_vm4, %v1301_v46 }
  0xab   : > { %596 = vmatpush1.bf16.msra.mxu1 %v590_v47  ;;  %627 = vmatprep.mubr.bf16.mxu1 %v1425_v3 }
  0xae   : > { %1318 = vmatmul.mubr.msk.bf16.vlgmr.msra.gmra.mrb[0].mxu0 %vm1862_vm9, %v1316_v15 }
  0xaf   : > { %1033 = vmatpush1.bf16.msra.mxu0 %v1027_v49  ;;  %1064 = vmatprep.mubr.bf16.mxu0 %v1425_v3 }
  0xb6   : > { %1306 = vmatmul.mubr.msk.bf16.vlgmr.msra.gmra.mrb[0].mxu1 %vm1863_vm12, %v1304_v51 }
  0xba   : > { %1321 = vmatmul.mubr.msk.bf16.vlgmr.msra.gmra.mrb[0].mxu0 %vm1864_vm7, %v1319_v52 }
 0x189   : > { %v629_v53 = vpop.f32.mrb[0].mxu1 }
 0x18a   : > { %v631_v54 = vpop.f32.mrb[1].mxu1 }
 0x18b   : > { %v633_v55 = vpop.f32.mrb[2].mxu1 }
 0x18c   : > { %v634_v56 = vpop.f32.mrb[3].mxu1 }
 0x18d   : > { %v1066_v57 = vpop.f32.mrb[0].mxu0 }
 0x18e   : > { %v1328_v3 = vadd.f32 %v1066_v57, %v629_v53  ;;  %v1068_v58 = vpop.f32.mrb[1].mxu0 }
 0x18f   : > { %v1329_v59 = vadd.f32 %v1068_v58, %v631_v54  ;;  %v1070_v60 = vpop.f32.mrb[2].mxu0 }
 0x190   : > { %v1090_v61 = vsel %vm1089_vm2, %v1328_v3, 0.0  ;;  %v1127_v42 = vmul.f32 %v1328_v3, %v1328_v3  ;;  %v1071_v62 = vpop.f32.mrb[3].mxu0 }
 0x191   : > { %v1091_v63 = vrot.slane %v1090_v61, 4  ;;  %v1322_v0 = vpack.c.bf16 %v1329_v59, %v1328_v3  ;;  %v1097_v2 = vsel %vm1089_vm2, %v1329_v59, 0.0  ;;  %v1128_v50 = vmul.f32 %v1329_v59, %v1329_v59 }
 0x192   : > { %v1129_v6 = vsel %vm1089_vm2, %v1127_v42, 0.0  ;;  %v1098_v10 = vrot.slane %v1097_v2, 4 }
 0x193   : > { %v1092_v12 = vadd.f32 %v1091_v63, %v1090_v61  ;;  %v1130_v5 = vrot.slane %v1129_v6, 4  ;;  %1323 = vst.sshfl [vmem:[%s237_s7] sm:$0x33 pattern:$0x76325410] %v1322_v0  ;;  %v1136_v16 = vsel %vm1089_vm2, %v1128_v50, 0.0 }
 0x194   : > { %v1099_v17 = vadd.f32 %v1098_v10, %v1097_v2  ;;  %v1137_v23 = vrot.slane %v1136_v16, 4 }
 0x195   : > { %v1093_v25 = vrot.slane %v1092_v12, 2  ;;  %v1131_v26 = vadd.f32 %v1130_v5, %v1129_v6 }
 0x196   : > { %v1100_v24 = vrot.slane %v1099_v17, 2  ;;  %v1138_v21 = vadd.f32 %v1137_v23, %v1136_v16 }
 0x197   : > { %v1094_v20 = vadd.f32 %v1093_v25, %v1092_v12  ;;  %v1132_v27 = vrot.slane %v1131_v26, 2 }
 0x198   : > { %v1101_v28 = vadd.f32 %v1100_v24, %v1099_v17  ;;  %v1139_v7 = vrot.slane %v1138_v21, 2 }
 0x199   : > { %v1095_v30 = vrot.slane %v1094_v20, 1  ;;  %v1133_v31 = vadd.f32 %v1132_v27, %v1131_v26 }
 0x19a   : > { %v1102_v13 = vrot.slane %v1101_v28, 1  ;;  %v1140_v32 = vadd.f32 %v1139_v7, %v1138_v21 }
 0x19b   : > { %v1096_v11 = vadd.f32 %v1095_v30, %v1094_v20  ;;  %v1134_v33 = vrot.slane %v1133_v31, 1 }
 0x19c   : > { %v1103_v34 = vadd.f32 %v1102_v13, %v1101_v28  ;;  %v1141_v35 = vrot.slane %v1140_v32, 1 }
 0x19d   : > { %v1135_v36 = vadd.f32 %v1134_v33, %v1133_v31 }
 0x19e   : > { %v1106_v37 = vcombine.low %v1096_v11, %v1103_v34  ;;  %v1142_v38 = vadd.f32 %v1141_v35, %v1140_v32 }
 0x1a0   : > { %v1113_v39 = vrot.slane %v1106_v37, %v1112_v19  ;;  %v1145_v40 = vcombine.low %v1135_v36, %v1142_v38 }
 0x1a2   : > { %v1120_v14 = vrot.slane %v1113_v39, %v1112_v19  ;;  %v1152_v22 = vrot.slane %v1145_v40, %v1112_v19 }
 0x1a4   : > { %1126 = vst.msk [vmem:[%s241_s11] sm:$0x3] %vm1124_vm10, %v1120_v14  ;;  %v1159_v4 = vrot.slane %v1152_v22, %v1112_v19 }
 0x1a6   : > { %1161 = vst.msk [vmem:[%s245_s14] sm:$0x3] %vm1124_vm10, %v1159_v4 }
 0x1a7 PF: > { %s16_s18 = sadd.s32 1, %s1423_s18  }
 0x1a8   : > { %p13_p4 = scmp.ge.s32.totalorder %s16_s18, 4  }
 0x1aa   :  { %15 = sbr.rel (!%p13_p4) target bundleno = 1 (0x1), region = 94 }

// kernel: basic_block_forward.7
= control target key start
LH: loop header
LB: loop body
LE: loop exit
PB: predicated region body
PF: predicated region fallthrough
CT: control target
= control target key end

     0   :  { %s1621_s24 = smov 0   ;;  %s1958_s0 = inlined_call_operand.vmem [shape: s32[2,256], index: 0, kind: input, shape index: {}]   ;;  %s1959_s1 = inlined_call_operand.vmem [shape: bf16[2,4,256], index: 1, kind: input, shape index: {}]   ;;  %s1960_s2 = inlined_call_operand.vmem [shape: f32[2,4,1], index: 2, kind: input, shape index: {}]   ;;  %s1961_s3 = inlined_call_operand.vmem [shape: f32[2,4,1], index: 3, kind: input, shape index: {}]   ;;  %s1962_s4 = inlined_call_operand.vmem [shape: bf16[9,4,4], index: 4, kind: input, shape index: {}]   ;;  %s1963_s5 = inlined_call_operand.vmem [shape: bf16[2,4,256], index: 5, kind: output, shape index: {0}]   ;;  %s1964_s6 = inlined_call_operand.vmem [shape: f32[2,1,256], index: 6, kind: output, shape index: {1}]   ;;  %s1965_s7 = inlined_call_operand.vmem [shape: f32[2,1,256], index: 7, kind: output, shape index: {2}]  }
   0x1 LB: > { %s1421_s25 = sadd.s32 4294967295, %s1568_s24   ;;  %p1425_p0 = scmp.ge.s32.totalorder %s1568_s24, 1  ;;  %s1568_s24 = sphi %s1621_s24, %s18_s24  }
   0x2   : > { %p260_p1 = scmp.lt.s32.totalorder %s1568_s24, 3 }
   0x4   : > { %p261_p2 = pnand %p1425_p0, %p260_p1 }
   0x5   : > { %p308_p3 = scmp.lt.s32.totalorder (!%p261_p2), %s1421_s25, 1  ;;  %v1570_v0 = vmov (!%p261_p2), 0   ;;  %v1648_v3 = vld [vmem:[%s1958_s0] sm:$0xf] (!%p261_p2)  ;;  %v1971_v9 = vmov (!%p261_p2), 0  ;;  %v345_v12 = vlaneseq (!%p261_p2)  ;;  %vm1967_vm9 = vcmask (!%p261_p2), 1041408  }
   0x6   : > { %264 = sbr.rel (%p261_p2) target bundleno = 564 (0x234), region = 40  ;;  %1521 = vset.pattern.permute.xlu0 (!%p261_p2), %v1570_v0  ;;  %825 = vmatprep.mubr.bf16.mxu0 (!%p261_p2), %v1570_v0  ;;  %vm427_vm0 = vcmp.ge.s32.totalorder (!%p261_p2), %v1648_v3, 0  ;;  %vm433_vm1 = vcmp.lt.s32.totalorder (!%p261_p2), %v1648_v3, 16  ;;  %v1571_v10 = vmov (!%p261_p2), 839922192   ;;  %s1572_s15 = smov (!%p261_p2), 17  }
   0x7   : > { %507 = vmatprep.mubr.bf16.mxu1 (!%p261_p2), %v1570_v0  ;;  %v428_v4 = vsel (!%p261_p2), %vm427_vm0, 1, %v1570_v0  ;;  %v434_v6 = vsel (!%p261_p2), %vm433_vm1, 1, %v1570_v0  ;;  %vm1658_vm3 = vmand (!%p261_p2), %vm427_vm0, %vm433_vm1  ;;  %v343_v11 = vunpack.c.l.s4 (!%p261_p2), %v1571_v10  ;;  %v1671_v15 = vshrl.u32 (!%p261_p2), %v345_v12, 7  ;;  %s1573_s16 = smov (!%p261_p2), 16   ;;  %v1451_v41 = vld [vmem:[%s1962_s4 + $0x8] sm:$0x3] (!%p261_p2) }
   0x8   : > { %v1436_v5 = vrot.slane (!%p261_p2), %v428_v4, 9  ;;  %v1437_v7 = vrot.slane (!%p261_p2), %v434_v6, 9  ;;  %v1972_v9 = vsel (!%p261_p2), %vm1658_vm3, 4294967295, %v1971_v9  ;;  %vm1966_vm10 = vcmask (!%p261_p2), 31744   ;;  %s1574_s19 = smov (!%p261_p2), 15   ;;  %s1575_s20 = smov (!%p261_p2), 127  }
   0x9   : > { %v344_v14 = vunpack.c.0.s8 (!%p261_p2), %v343_v11  ;;  %v1680_v16 = vsub.s32 (!%p261_p2), 0, %v1671_v15  ;;  %v1685_v19 = vsub.s32 (!%p261_p2), 2, %v1671_v15  ;;  %s1576_s21 = smov (!%p261_p2), 1   ;;  %s1577_s22 = smov (!%p261_p2), 113   ;;  %v379_v42 = vadd.s32 (!%p261_p2), 4294967295, %v1648_v3 }
   0xa   : > { %vm1654_vm2 = vcmp.ne.s32.totalorder (!%p261_p2), %v1436_v5, 0  ;;  %vm1662_vm4 = vcmp.ne.s32.totalorder (!%p261_p2), %v1437_v7, 0  ;;  %s1578_s23 = smov (!%p261_p2), 112   ;;  %s1579_s27 = smov (!%p261_p2), 111   ;;  %v576_v43 = vadd.s32 (!%p261_p2), 1, %v1648_v3 }
   0xb   : > { %vm756_vm5 = vmand (!%p261_p2), %vm1658_vm3, %vm1654_vm2  ;;  %v347_v17 = vsub.s32 (!%p261_p2), %v344_v14, %v1671_v15  ;;  %vm380_vm11 = vcmp.ge.s32.totalorder (!%p261_p2), %v379_v42, 0  ;;  %vm381_vm13 = vcmp.lt.s32.totalorder (!%p261_p2), %v379_v42, 16  ;;  %v1438_v56 = vld [vmem:[%s1962_s4 + $0x2] sm:$0x3] (!%p261_p2) }
   0xc   : > { %vm757_vm6 = vmand (!%p261_p2), %vm756_vm5, %vm1662_vm4  ;;  %vm577_vm12 = vcmp.ge.s32.totalorder (!%p261_p2), %v576_v43, 0  ;;  %v383_v44 = vsel (!%p261_p2), %vm380_vm11, 1, %v1570_v0  ;;  %v388_v47 = vsel (!%p261_p2), %vm381_vm13, 1, %v1570_v0  ;;  %vm583_vm14 = vcmp.lt.s32.totalorder (!%p261_p2), %v576_v43, 16 }
   0xd   : > { %s2014_s25 = smov (!%p308_p3, %s1421_s25), 1  ;;  %v758_v18 = vsel %vm757_vm6, 1, %v1570_v0  ;;  %v578_v45 = vsel %vm577_vm12, 1, %v1570_v0  ;;  %v1434_v46 = vrot.slane %v383_v44, 9  ;;  %v1435_v49 = vrot.slane %v388_v47, 9  ;;  %vm1704_vm15 = vmand %vm380_vm11, %vm381_vm13 }
   0xe   : > { %s1635_s26 = sshll.u32 %s2014_s25, 2  ;;  %v762_v22 = vrot.slane %v758_v18, %v1680_v16  ;;  %v766_v25 = vrot.slane %v758_v18, %v1685_v19  ;;  %v1443_v48 = vrot.slane %v578_v45, 9  ;;  %v584_v52 = vsel %vm583_vm14, 1, %v1570_v0 }
   0xf   : > { %s316_s29 = scalar_lea.vmem %s1960_s2, %s1635_s26  ;;  %s320_s9 = scalar_lea.vmem %s1961_s3, %s1635_s26  ;;  %vm1708_vm0 = vcmp.ne.s32.totalorder %v1434_v46, 0  ;;  %vm1722_vm6 = vcmp.ne.s32.totalorder %v1435_v49, 0  ;;  %v1444_v55 = vrot.slane %v584_v52, 9 }
  0x10   : > { %v337_v1 = vld [vmem:[%s316_s29] sm:$0xf]  ;;  %s312_s14 = scalar_lea.vmem %s1959_s1, %s1635_s26  ;;  %v770_v27 = vrot.slane %v762_v22, %v1680_v16  ;;  %v774_v30 = vrot.slane %v766_v25, %v1680_v16  ;;  %vm1714_vm1 = vcmp.ne.s32.totalorder %v1443_v48, 0  ;;  %vm387_vm5 = vmand %vm1704_vm15, %vm1708_vm0 }
  0x11   : > { %340 = vperm.xlu0 %1521, %v337_v1   ;;  %v351_v2 = vld [vmem:[%s320_s9] sm:$0xf]  ;;  %vm392_vm11 = vmand %vm387_vm5, %vm1722_vm6 }
  0x12   : > { %v335_v20 = vld [vmem:[%s312_s14] sm:$0xf]  ;;  %vm775_vm7 = vcmp.eq.s32.totalorder %v770_v27, 1  ;;  %vm776_vm8 = vcmp.eq.s32.totalorder %v774_v30, 1  ;;  %vm582_vm13 = vmand %vm1704_vm15, %vm1714_vm1  ;;  %v393_v58 = vsel %vm392_vm11, 1, %v1570_v0 }
  0x13   : > { %v336_v23 = vunpack.c.l.bf16 %v335_v20  ;;  %v401_v61 = vrot.slane %v393_v58, %v1685_v19  ;;  %v397_v3 = vrot.slane %v393_v58, %v1680_v16 }
  0x15   : > { %354 = vperm.xlu0 %1521, %v351_v2   ;;  %v409_v6 = vrot.slane %v401_v61, %v1680_v16 }
  0x17   : > { %vm411_vm11 = vcmp.eq.s32.totalorder %v409_v6, 1 }
  0x90   : > { %v341_v21 = vpop.permute.xlu0 %340 }
  0x91   : > { %v348_v24 = vrot.slane %v341_v21, %v347_v17 }
  0x93   : > { %v350_v28 = vmul.f32 %v348_v24, %v336_v23 }
  0x94   : > { %v355_v26 = vpop.permute.xlu0 %354 }
  0x95   : > { %v362_v29 = vrot.slane %v355_v26, %v347_v17  ;;  %v405_v17 = vrot.slane %v397_v3, %v1680_v16 }
  0x97   : > { %v364_v31 = vadd.f32 %v362_v29, %v350_v28 }
  0x99   : > { %v365_v32 = vmax.f32 %v364_v31, 0.0 }
  0x9b   : > { %v368_v33 = vcombine.high %v365_v32, %v365_v32  ;;  %v778_v34 = vsel %vm775_vm7, %v365_v32, 0.0  ;;  %vm846_vm7 = vmand %vm1658_vm3, %vm1714_vm1 }
  0x9c   : > { %v780_v35 = vpack.c.bf16 %v778_v34, %v778_v34  ;;  %vm1748_vm3 = vmand %vm577_vm12, %vm583_vm14 }
  0x9d   : > { %v1532_v36 = vpack.i.bf16 %v365_v32, %v368_v33  ;;  %v779_v37 = vsel %vm776_vm8, %v368_v33, 0.0  ;;  %v1527_v40 = vpack.i.bf16 %v368_v33, %v365_v32  ;;  %vm432_vm8 = vmand %vm1704_vm15, %vm1654_vm2 }
  0x9e   : > { %v781_v38 = vpack.c.bf16 %v779_v37, %v779_v37  ;;  %v788_v39 = vsel %vm1967_vm9, %v780_v35, 0  ;;  %vm936_vm14 = vmand %vm1748_vm3, %vm1708_vm0 }
  0x9f   : > { %1533 = vrot.lane.b32.xlu0 %v1532_v36, %s1572_s15  ;;  %1523 = vrot.lane.b32.xlu1 %v1532_v36, %s1573_s16 }
  0xa0   : > { %1452 = vmatprep.subr.msk.bf16.mxu0 %vm1967_vm9, %v781_v38  ;;  %vm438_vm9 = vmand %vm432_vm8, %vm1662_vm4  ;;  %vm1987_vm8 = vnez %v1972_v9 }
  0xa1   : > { %794 = vmatpush1.bf16.msra.mxu0 %v788_v39  ;;  %v439_v59 = vsel %vm438_vm9, 1, %v1570_v0  ;;  %vm677_vm12 = vmand %vm1987_vm8, %vm1708_vm0 }
  0xa2   : > { %v447_v63 = vrot.slane %v439_v59, %v1685_v19  ;;  %v443_v1 = vrot.slane %v439_v59, %v1680_v16  ;;  %vm678_vm9 = vmand %vm677_vm12, %vm1722_vm6  ;;  %vm840_vm12 = vcmask 1039360  }
  0xa3   : > { %1543 = vrot.lane.b32.xlu0 %v1532_v36, %s1574_s19  ;;  %1528 = vrot.lane.b32.xlu1 %v1527_v40, %s1575_s20  ;;  %vm1025_vm0 = vmand %vm1748_vm3, %vm1654_vm2  ;;  %v1790_v11 = vsel %vm678_vm9, 1, %v1570_v0  ;;  %vm374_vm2 = vcmask 138240  }
  0xa4   : > { %1453 = vmatmul.mubr.msk.bf16.vlgmr.msra.gmra.mrb[0].mxu0 %vm1966_vm10, %v1451_v41  ;;  %vm1740_vm10 = vcmp.ne.s32.totalorder %v1444_v55, 0  ;;  %v455_v7 = vrot.slane %v447_v63, %v1680_v16  ;;  %v451_v9 = vrot.slane %v443_v1, %v1680_v16  ;;  %v687_v21 = vrot.slane %v1790_v11, %v1685_v19 }
  0xa5   : > { %914 = vmatprep.mubr.bf16.mxu0 %v1570_v0  ;;  %vm588_vm5 = vmand %vm582_vm13, %vm1740_vm10  ;;  %vm571_vm13 = vcmask 121856  }
  0xa6   : > { %vm847_vm15 = vmand %vm846_vm7, %vm1740_vm10  ;;  %v589_v60 = vsel %vm588_vm5, 1, %v1570_v0  ;;  %vm422_vm5 = vcmask 130048   ;;  %vm456_vm8 = vcmp.eq.s32.totalorder %v451_v9, 1  ;;  %v1814_v31 = vrot.slane %v687_v21, %v1680_v16 }
  0xa7   : > { %1553 = vrot.lane.b32.xlu0 %v1532_v36, %s1576_s21  ;;  %1538 = vrot.lane.b32.xlu1 %v1527_v40, %s1577_s22  ;;  %v848_v62 = vsel %vm847_vm15, 1, %v1570_v0  ;;  %v597_v2 = vrot.slane %v589_v60, %v1685_v19  ;;  %vm937_vm7 = vmand %vm936_vm14, %vm1722_vm6  ;;  %v593_v20 = vrot.slane %v589_v60, %v1680_v16  ;;  %vm457_vm15 = vcmp.eq.s32.totalorder %v455_v7, 1 }
  0xa8   : > { %v856_v4 = vrot.slane %v848_v62, %v1685_v19  ;;  %v852_v5 = vrot.slane %v848_v62, %v1680_v16  ;;  %v938_v14 = vsel %vm937_vm7, 1, %v1570_v0  ;;  %vm1026_vm6 = vmand %vm1025_vm0, %vm1662_vm4  ;;  %vm410_vm14 = vcmp.eq.s32.totalorder %v405_v17, 1 }
  0xa9   : > { %v1787_v10 = vrot.slane %v597_v2, %v1680_v16  ;;  %v946_v22 = vrot.slane %v938_v14, %v1685_v19  ;;  %v942_v13 = vrot.slane %v938_v14, %v1680_v16  ;;  %v1807_v23 = vsel %vm1026_vm6, 1, %v1570_v0  ;;  %vm1114_vm6 = vmand %vm1748_vm3, %vm1714_vm1 }
  0xaa   : > { %v864_v8 = vrot.slane %v856_v4, %v1680_v16  ;;  %v1798_v18 = vrot.slane %v852_v5, %v1680_v16  ;;  %vm929_vm7 = vcmask 924672   ;;  %v1811_v26 = vrot.slane %v593_v20, %v1680_v16  ;;  %vm1839_vm3 = vmand %vm1114_vm6, %vm1740_vm10 }
  0xab   : > { %1548 = vrot.lane.b32.xlu1 %v1527_v40, %s1578_s23  ;;  %vm607_vm4 = vcmp.eq.s32.totalorder %v1787_v10, 1  ;;  %v954_v32 = vrot.slane %v946_v22, %v1680_v16  ;;  %v1035_v33 = vrot.slane %v1807_v23, %v1685_v19  ;;  %v950_v34 = vrot.slane %v942_v13, %v1680_v16  ;;  %s325_s23 = scalar_lea.vmem %s1963_s5, %s1635_s26  ;;  %s1432_s26 = sshll.u32 %s2014_s25, 1 }
  0xac   : > { %vm866_vm9 = vcmp.eq.s32.totalorder %v864_v8, 1  ;;  %vm865_vm0 = vcmp.eq.s32.totalorder %v1798_v18, 1  ;;  %vm1990_vm1 = vcmask 1041408   ;;  %v1857_v4 = vsel %vm1839_vm3, 1, %v1570_v0  ;;  %s329_s29 = scalar_lea.vmem %s1964_s6, %s1432_s26  ;;  %s333_s9 = scalar_lea.vmem %s1965_s7, %s1432_s26 }
  0xad   : > { %v1043_v51 = vrot.slane %v1035_v33, %v1680_v16  ;;  %vm955_vm10 = vcmp.eq.s32.totalorder %v950_v34, 1  ;;  %v1031_v5 = vrot.slane %v1807_v23, %v1680_v16  ;;  %vm671_vm6 = vcmask 7168  }
  0xaf   : > { %1558 = vrot.lane.b32.xlu1 %v1527_v40, %s1579_s27  ;;  %v1039_v33 = vrot.slane %v1031_v5, %v1680_v16 }
 0x111   : > { %v1534_v24 = vpop.permute.xlu0 %1533  ;;  %v1524_v25 = vpop.permute.xlu1 %1523 }
 0x112   : > { %v1536_v27 = vunpack.i.h.bf16 %v1534_v24  ;;  %v1535_v28 = vunpack.i.l.bf16 %v1534_v24  ;;  %v1526_v29 = vunpack.i.h.bf16 %v1524_v25  ;;  %v1525_v30 = vunpack.i.l.bf16 %v1524_v25 }
 0x114   : > { %v375_v35 = vsel %vm374_vm2, %v1536_v27, %v1535_v28  ;;  %v378_v36 = vsel %vm374_vm2, %v1535_v28, %v1536_v27  ;;  %v423_v37 = vsel %vm422_vm5, %v1526_v29, %v1525_v30  ;;  %v426_v38 = vsel %vm422_vm5, %v1525_v30, %v1526_v29  ;;  %v1454_v30 = vld [vmem:[%s1962_s4 + $0xa] sm:$0x3] }
 0x115   : > { %v413_v39 = vsel %vm411_vm11, %v375_v35, 0.0  ;;  %v1544_v40 = vpop.permute.xlu0 %1543  ;;  %v1529_v41 = vpop.permute.xlu1 %1528  ;;  %v459_v42 = vsel %vm457_vm15, %v423_v37, 0.0  ;;  %v458_v43 = vsel %vm456_vm8, %v426_v38, 0.0  ;;  %v412_v44 = vsel %vm410_vm14, %v378_v36, 0.0  ;;  %vm1991_vm15 = vmmov %vm1990_vm1 }
 0x116   : > { %v1546_v45 = vunpack.i.h.bf16 %v1544_v40  ;;  %v1545_v46 = vunpack.i.l.bf16 %v1544_v40  ;;  %v1531_v47 = vunpack.i.h.bf16 %v1529_v41  ;;  %v1530_v48 = vunpack.i.l.bf16 %v1529_v41  ;;  %vm1992_vm8 = vmmov %vm1990_vm1 }
 0x117   : > { %v461_v49 = vpack.c.bf16 %v459_v42, %v459_v42  ;;  %v460_v50 = vpack.c.bf16 %v458_v43, %v458_v43  ;;  %vm1019_vm2 = vcmask 916480   ;;  %vm606_vm11 = vcmp.eq.s32.totalorder %v1811_v26, 1 }
 0x118   : > { %v572_v52 = vsel %vm571_vm13, %v1546_v45, %v1545_v46  ;;  %v841_v54 = vsel %vm840_vm12, %v1530_v48, %v1531_v47  ;;  %v845_v53 = vsel %vm840_vm12, %v1531_v47, %v1530_v48  ;;  %v414_v55 = vpack.c.bf16 %v412_v44, %v412_v44  ;;  %vm1993_vm12 = vmmov %vm1990_vm1  ;;  %v416_v44 = vld [vmem:[%s1962_s4] sm:$0x3] }
 0x119   : > { %v868_v58 = vsel %vm866_vm9, %v845_v53, 0.0  ;;  %1439 = vmatprep.subr.msk.bf16.mxu1 %vm1990_vm1, %v461_v49  ;;  %vm956_vm5 = vcmp.eq.s32.totalorder %v954_v32, 1  ;;  %v1539_v59 = vpop.permute.xlu1 %1538  ;;  %v470_v60 = vsel %vm1991_vm15, %v460_v50, 0  ;;  %v415_v61 = vpack.c.bf16 %v413_v39, %v413_v39  ;;  %v1861_v6 = vpop.permute.xlu0 %1553  ;;  %vm1995_vm9 = vmmov %vm1990_vm1 }
 0x11a   : > { %v609_v62 = vsel %vm607_vm4, %v572_v52, 0.0  ;;  %v1541_v63 = vunpack.i.h.bf16 %v1539_v59  ;;  %v1540_v1 = vunpack.i.l.bf16 %v1539_v59  ;;  %476 = vmatpush1.bf16.msra.mxu1 %v470_v60  ;;  %v870_v2 = vpack.c.bf16 %v868_v58, %v868_v58 }
 0x11b   : > { %1441 = vmatprep.subr.msk.bf16.mxu1 %vm1992_vm8, %v415_v61  ;;  %v867_v3 = vsel %vm865_vm0, %v841_v54, 0.0  ;;  %vm1045_vm4 = vcmp.eq.s32.totalorder %v1043_v51, 1  ;;  %v520_v10 = vsel %vm1993_vm12, %v414_v55, 0  ;;  %vm1994_vm14 = vcmask 31744   ;;  %vm1997_vm0 = vmmov %vm1990_vm1  ;;  %v1457_v54 = vld [vmem:[%s1962_s4 + $0xc] sm:$0x3] }
 0x11c   : > { %v930_v7 = vsel %vm929_vm7, %v1540_v1, %v1541_v63  ;;  %v934_v9 = vsel %vm929_vm7, %v1541_v63, %v1540_v1  ;;  %1455 = vmatprep.subr.msk.bf16.mxu0 %vm1995_vm9, %v870_v2  ;;  %v869_v8 = vpack.c.bf16 %v867_v3, %v867_v3  ;;  %v611_v18 = vpack.c.bf16 %v609_v62, %v609_v62  ;;  %vm1996_vm7 = vmmov %vm1990_vm1  ;;  %v1445_v61 = vld [vmem:[%s1962_s4 + $0x4] sm:$0x3]  ;;  %v1460_v1 = vld [vmem:[%s1962_s4 + $0xe] sm:$0x3] }
 0x11d   : > { %v958_v14 = vsel %vm956_vm5, %v934_v9, 0.0  ;;  %1440 = vmatmul.mubr.msk.bf16.vlgmr.msra.gmra.mrb[0].mxu1 %vm1994_vm14, %v1438_v56  ;;  %v1549_v17 = vpop.permute.xlu1 %1548  ;;  %v957_v20 = vsel %vm955_vm10, %v930_v7, 0.0  ;;  %v575_v21 = vsel %vm571_vm13, %v1545_v46, %v1546_v45  ;;  %v1556_v24 = vunpack.i.h.bf16 %v1861_v6  ;;  %vm1998_vm13 = vmmov %vm1997_vm0  ;;  %v1448_v2 = vld [vmem:[%s1962_s4 + $0x6] sm:$0x3]  ;;  %v1463_v3 = vld [vmem:[%s1962_s4 + $0x10] sm:$0x3] }
 0x11e   : > { %v1551_v22 = vunpack.i.h.bf16 %v1549_v17  ;;  %v1550_v13 = vunpack.i.l.bf16 %v1549_v17  ;;  %526 = vmatpush1.bf16.msra.mxu1 %v520_v10  ;;  %v960_v23 = vpack.c.bf16 %v958_v14, %v958_v14  ;;  %557 = vmatprep.mubr.bf16.mxu1 %v1570_v0  ;;  %v1555_v25 = vunpack.i.l.bf16 %v1861_v6  ;;  %vm1999_vm3 = vmmov %vm1997_vm0 }
 0x11f   : > { %v877_v27 = vsel %vm1996_vm7, %v869_v8, 0  ;;  %1446 = vmatprep.subr.msk.bf16.mxu1 %vm1997_vm0, %v611_v18  ;;  %v959_v28 = vpack.c.bf16 %v957_v20, %v957_v20  ;;  %v1124_v32 = vrot.slane %v1857_v4, %v1685_v19  ;;  %v608_v38 = vsel %vm606_vm11, %v575_v21, 0.0  ;;  %vm2000_vm5 = vmmov %vm1994_vm14 }
 0x120   : > { %v1024_v29 = vsel %vm1019_vm2, %v1551_v22, %v1550_v13  ;;  %883 = vmatpush1.bf16.msra.mxu0 %v877_v27  ;;  %vm697_vm1 = vcmp.eq.s32.totalorder %v1814_v31, 1  ;;  %v672_v39 = vsel %vm671_vm6, %v1556_v24, %v1555_v25  ;;  %v683_v19 = vrot.slane %v1790_v11, %v1680_v16  ;;  %vm2001_vm11 = vmmov %vm1997_vm0 }
 0x121   : > { %v1047_v34 = vsel %vm1045_vm4, %v1024_v29, 0.0  ;;  %1458 = vmatprep.subr.msk.bf16.mxu0 %vm1998_vm13, %v960_v23  ;;  %v967_v35 = vsel %vm1999_vm3, %v959_v28, 0  ;;  %v1559_v36 = vpop.permute.xlu1 %1558  ;;  %v1132_v40 = vrot.slane %v1124_v32, %v1680_v16  ;;  %vm1044_vm15 = vcmp.eq.s32.totalorder %v1039_v33, 1  ;;  %vm2003_vm4 = vmmov %vm1997_vm0 }
 0x122   : > { %v1049_v37 = vpack.c.bf16 %v1047_v34, %v1047_v34  ;;  %v1020_v41 = vsel %vm1019_vm2, %v1550_v13, %v1551_v22  ;;  %v1561_v42 = vunpack.i.h.bf16 %v1559_v36  ;;  %v1560_v26 = vunpack.i.l.bf16 %v1559_v36  ;;  %vm2002_vm2 = vmmov %vm2000_vm5 }
 0x123   : > { %1456 = vmatmul.mubr.msk.bf16.vlgmr.msra.gmra.mrb[0].mxu0 %vm2000_vm5, %v1454_v30  ;;  %v610_v31 = vpack.c.bf16 %v608_v38, %v608_v38  ;;  %v699_v43 = vsel %vm697_vm1, %v672_v39, 0.0  ;;  %vm1108_vm10 = vcmask 908288   ;;  %v691_v11 = vrot.slane %v683_v19, %v1680_v16  ;;  %vm2004_vm12 = vmmov %vm1997_vm0 }
 0x124   : > { %973 = vmatpush1.bf16.msra.mxu0 %v967_v35  ;;  %1004 = vmatprep.mubr.bf16.mxu0 %v1570_v0  ;;  %v1046_v45 = vsel %vm1044_vm15, %v1020_v41, 0.0  ;;  %v1120_v46 = vrot.slane %v1857_v4, %v1680_v16  ;;  %v701_v47 = vpack.c.bf16 %v699_v43, %v699_v43  ;;  %vm1134_vm8 = vcmp.eq.s32.totalorder %v1132_v40, 1  ;;  %vm2005_vm9 = vmmov %vm2002_vm2 }
 0x125   : > { %1461 = vmatprep.subr.msk.bf16.mxu0 %vm2001_vm11, %v1049_v37  ;;  %v1113_v48 = vsel %vm1108_vm10, %v1561_v42, %v1560_v26  ;;  %v618_v49 = vsel %vm2003_vm4, %v610_v31, 0  ;;  %v675_v50 = vsel %vm671_vm6, %v1555_v25, %v1556_v24  ;;  %v1048_v51 = vpack.c.bf16 %v1046_v45, %v1046_v45  ;;  %vm2006_vm7 = vmmov %vm1997_vm0 }
 0x126   : > { %vm696_vm14 = vcmp.eq.s32.totalorder %v691_v11, 1  ;;  %v1136_v52 = vsel %vm1134_vm8, %v1113_v48, 0.0  ;;  %v1128_v53 = vrot.slane %v1120_v46, %v1680_v16  ;;  %v1109_v59 = vsel %vm1108_vm10, %v1560_v26, %v1561_v42  ;;  %vm2007_vm13 = vmmov %vm2002_vm2 }
 0x127   : > { %v698_v55 = vsel %vm696_vm14, %v675_v50, 0.0  ;;  %v1138_v57 = vpack.c.bf16 %v1136_v52, %v1136_v52  ;;  %v1056_v58 = vsel %vm2006_vm7, %v1048_v51, 0  ;;  %vm2008_vm3 = vmmov %vm1997_vm0  ;;  %vm1207_vm10 = vcmask 1043456  }
 0x128   : > { %v700_v60 = vpack.c.bf16 %v698_v55, %v698_v55  ;;  %vm1133_vm6 = vcmp.eq.s32.totalorder %v1128_v53, 1  ;;  %vm2009_vm1 = vmmov %vm2002_vm2  ;;  %v1580_v30 = vmov 1966171168   ;;  %vm1242_vm8 = vcmp.lt.s32.totalorder %v345_v12, 256 }
 0x129   : > { %1442 = vmatmul.mubr.msk.bf16.vlgmr.msra.gmra.mrb[0].mxu1 %vm2002_vm2, %v416_v44  ;;  %v1135_v16 = vsel %vm1133_vm6, %v1109_v59, 0.0  ;;  %vm2010_vm5 = vmmov %vm1997_vm0  ;;  %v1226_v32 = vunpack.c.l.s4 %v1580_v30 }
 0x12a   : > { %624 = vmatpush1.bf16.msra.mxu1 %v618_v49  ;;  %655 = vmatprep.mubr.bf16.mxu1 %v1570_v0  ;;  %v708_v62 = vsel %vm2008_vm3, %v700_v60, 0  ;;  %v1137_v63 = vpack.c.bf16 %v1135_v16, %v1135_v16  ;;  %vm2011_vm15 = vmmov %vm2009_vm1 }
 0x12b   : > { %1449 = vmatprep.subr.msk.bf16.mxu1 %vm2004_vm12, %v701_v47  ;;  %vm2012_vm11 = vmmov %vm2009_vm1  ;;  %v1227_v40 = vunpack.c.0.s8 %v1226_v32 }
 0x12c   : > { %v1145_v56 = vsel %vm2010_vm5, %v1137_v63, 0 }
 0x12d   : > { %v1230_v46 = vsub.s32 %v1227_v40, %v1671_v15 }
 0x12f   : > { %1459 = vmatmul.mubr.msk.bf16.vlgmr.msra.gmra.mrb[0].mxu0 %vm2005_vm9, %v1457_v54 }
 0x130   : > { %1062 = vmatpush1.bf16.msra.mxu0 %v1056_v58  ;;  %1093 = vmatprep.mubr.bf16.mxu0 %v1570_v0 }
 0x131   : > { %1464 = vmatprep.subr.msk.bf16.mxu0 %vm1997_vm0, %v1138_v57 }
 0x135   : > { %1447 = vmatmul.mubr.msk.bf16.vlgmr.msra.gmra.mrb[0].mxu1 %vm2007_vm13, %v1445_v61 }
 0x136   : > { %714 = vmatpush1.bf16.msra.mxu1 %v708_v62  ;;  %745 = vmatprep.mubr.bf16.mxu1 %v1570_v0 }
 0x13b   : > { %1462 = vmatmul.mubr.msk.bf16.vlgmr.msra.gmra.mrb[0].mxu0 %vm2009_vm1, %v1460_v1 }
 0x13c   : > { %1151 = vmatpush1.bf16.msra.mxu0 %v1145_v56  ;;  %1182 = vmatprep.mubr.bf16.mxu0 %v1570_v0 }
 0x141   : > { %1450 = vmatmul.mubr.msk.bf16.vlgmr.msra.gmra.mrb[0].mxu1 %vm2011_vm15, %v1448_v2 }
 0x147   : > { %1465 = vmatmul.mubr.msk.bf16.vlgmr.msra.gmra.mrb[0].mxu0 %vm2012_vm11, %v1463_v3 }
 0x214   : > { %v747_v4 = vpop.f32.mrb[0].mxu1 }
 0x215   : > { %v749_v5 = vpop.f32.mrb[1].mxu1 }
 0x216   : > { %v751_v6 = vpop.f32.mrb[2].mxu1 }
 0x217   : > { %v752_v7 = vpop.f32.mrb[3].mxu1 }
 0x21a   : > { %v1184_v9 = vpop.f32.mrb[0].mxu0 }
 0x21b   : > { %v1472_v0 = vadd.f32 %v1184_v9, %v747_v4  ;;  %v1186_v10 = vpop.f32.mrb[1].mxu0 }
 0x21c   : > { %v1473_v14 = vadd.f32 %v1186_v10, %v749_v5  ;;  %v1188_v17 = vpop.f32.mrb[2].mxu0 }
 0x21d   : > { %v1208_v8 = vsel %vm1207_vm10, %v1472_v0, 0.0  ;;  %v1245_v18 = vmul.f32 %v1472_v0, %v1472_v0  ;;  %v1189_v20 = vpop.f32.mrb[3].mxu0 }
 0x21e   : > { %v1209_v21 = vrot.slane %v1208_v8, 4  ;;  %v1466_v22 = vpack.c.bf16 %v1473_v14, %v1472_v0  ;;  %v1215_v13 = vsel %vm1207_vm10, %v1473_v14, 0.0  ;;  %v1246_v23 = vmul.f32 %v1473_v14, %v1473_v14 }
 0x21f   : > { %v1247_v24 = vsel %vm1207_vm10, %v1245_v18, 0.0  ;;  %v1216_v25 = vrot.slane %v1215_v13, 4 }
 0x220   : > { %v1210_v27 = vadd.f32 %v1209_v21, %v1208_v8  ;;  %v1248_v28 = vrot.slane %v1247_v24, 4  ;;  %1467 = vst.sshfl [vmem:[%s325_s23] sm:$0x33 pattern:$0x76325410] %v1466_v22  ;;  %v1254_v29 = vsel %vm1207_vm10, %v1246_v23, 0.0 }
 0x221   : > { %v1217_v33 = vadd.f32 %v1216_v25, %v1215_v13  ;;  %v1255_v34 = vrot.slane %v1254_v29, 4 }
 0x222   : > { %v1211_v35 = vrot.slane %v1210_v27, 2  ;;  %v1249_v36 = vadd.f32 %v1248_v28, %v1247_v24 }
 0x223   : > { %v1218_v37 = vrot.slane %v1217_v33, 2  ;;  %v1256_v38 = vadd.f32 %v1255_v34, %v1254_v29 }
 0x224   : > { %v1212_v39 = vadd.f32 %v1211_v35, %v1210_v27  ;;  %v1250_v19 = vrot.slane %v1249_v36, 2 }
 0x225   : > { %v1219_v41 = vadd.f32 %v1218_v37, %v1217_v33  ;;  %v1257_v42 = vrot.slane %v1256_v38, 2 }
 0x226   : > { %v1213_v26 = vrot.slane %v1212_v39, 1  ;;  %v1251_v31 = vadd.f32 %v1250_v19, %v1249_v36 }
 0x227   : > { %v1220_v43 = vrot.slane %v1219_v41, 1  ;;  %v1258_v44 = vadd.f32 %v1257_v42, %v1256_v38 }
 0x228   : > { %v1214_v11 = vadd.f32 %v1213_v26, %v1212_v39  ;;  %v1252_v45 = vrot.slane %v1251_v31, 1 }
 0x229   : > { %v1221_v47 = vadd.f32 %v1220_v43, %v1219_v41  ;;  %v1259_v48 = vrot.slane %v1258_v44, 1 }
 0x22a   : > { %v1253_v49 = vadd.f32 %v1252_v45, %v1251_v31 }
 0x22b   : > { %v1224_v50 = vcombine.low %v1214_v11, %v1221_v47  ;;  %v1260_v51 = vadd.f32 %v1259_v48, %v1258_v44 }
 0x22d   : > { %v1231_v52 = vrot.slane %v1224_v50, %v1230_v46  ;;  %v1263_v54 = vcombine.low %v1253_v49, %v1260_v51 }
 0x22f   : > { %v1238_v53 = vrot.slane %v1231_v52, %v1230_v46  ;;  %v1270_v55 = vrot.slane %v1263_v54, %v1230_v46 }
 0x231   : > { %1244 = vst.msk [vmem:[%s329_s29] sm:$0x3] %vm1242_vm8, %v1238_v53  ;;  %v1277_v15 = vrot.slane %v1270_v55, %v1230_v46 }
 0x233   : > { %1279 = vst.msk [vmem:[%s333_s9] sm:$0x3] %vm1242_vm8, %v1277_v15 }
 0x234 PF: > { %s18_s24 = sadd.s32 1, %s1568_s24  }
 0x235   : > { %p15_p4 = scmp.ge.s32.totalorder %s18_s24, 4  }
 0x237   :  { %17 = sbr.rel (!%p15_p4) target bundleno = 1 (0x1), region = 108 }

</bundles_post_ra>
